<compile_context>
chip_gen: v5e
topology: v5e:2x2
jax: 0.10.0
libtpu: 0.0.40
codegen_flags: <defaults>
</compile_context>

<pallas_src>
import functools

import numpy as np
import jax
import jax.numpy as jnp
from jax.experimental import pallas as pl
from jax.experimental.pallas import tpu as pltpu


# -----------------------------------------------------------------------------
# Pallas kernel: the whole encoder as a chain of folded matmuls
# -----------------------------------------------------------------------------
def _encoder_kernel(meta, x_ref, *refs):
    """meta: tuple of (act, res_mode, save_flag) per layer.

    refs layout: w0, b0, w1, b1, ..., w_{n-1}, b_{n-1}, out_ref
      w_i : bf16 (K_i, N_i) Toeplitz weight with BN / bias-shortcut already folded in
      b_i : f32  (1,  N_i) folded bias
    """
    out_ref = refs[-1]
    h = x_ref[...].astype(jnp.float32)               # (TILE_B, L0*Cin)
    saved = None                                     # residual-stack block input
    for i, (act, res, save) in enumerate(meta):
        w = refs[2 * i][...]                         # bf16
        b = refs[2 * i + 1][...]                     # f32 (1, N)
        if save:
            saved = h                                # remember stack input (f32, exact)
        y = jnp.dot(h.astype(jnp.bfloat16), w,
                    preferred_element_type=jnp.float32)
        y = y + b
        if res == "cur":                             # identity shortcut of this layer
            y = y + h
        elif res == "saved":                         # residual-stack skip connection
            y = y + saved
        if act == "leaky":
            y = jnp.where(y >= 0.0, y, 0.2 * y)      # nn.LeakyReLU(0.2)
        elif act == "relu":
            y = jnp.maximum(y, 0.0)
        h = y
    out_ref[...] = h


def _pick_tile_b(batch):
    """Largest sublane-aligned tile that divides batch; fall back to 8 (with padding)
    for awkward large batches, or the full batch for tiny ones."""
    for t in (256, 128, 64, 32, 16, 8):
        if batch % t == 0:
            return t
    if batch > 8:
        return 8
    return batch                                     # tiny batch -> one full block


def make_encoder_forward(ops, in_dim, seq_len, embedding_dim):
    """ops: list of dicts {w (np K,N), b (np N,), act, res, save} in execution order."""
    meta = tuple((o["act"], o["res"], o["save"]) for o in ops)
    ws = [jnp.asarray(o["w"], jnp.bfloat16) for o in ops]
    bs = [jnp.asarray(o["b"], jnp.float32).reshape(1, -1) for o in ops]
    k_in = in_dim * seq_len
    n_out = ws[-1].shape[1]
    l_out = n_out // embedding_dim

    def forward(x_ncl):                              # x: (B, in_dim, T)  -- PyTorch NCL
        B = x_ncl.shape[0]
        # First Toeplitz matrix is row-permuted for NCL order -> plain reshape suffices.
        x2d = x_ncl.reshape(B, k_in)
        tile_b = _pick_tile_b(B)
        b_pad = ((B + tile_b - 1) // tile_b) * tile_b
        if b_pad != B:
            x2d = jnp.pad(x2d, ((0, b_pad - B), (0, 0)))
        grid = (b_pad // tile_b,)

        in_specs = [pl.BlockSpec((tile_b, k_in), lambda i: (i, 0))]
        flat_args = [x2d]
        for w, b in zip(ws, bs):
            flat_args += [w, b]
            # Constant index_map -> block stays resident across batch tiles.
            in_specs += [pl.BlockSpec(w.shape, lambda i: (0, 0)),
                         pl.BlockSpec(b.shape, lambda i: (0, 0))]

        y2d = pl.pallas_call(
            functools.partial(_encoder_kernel, meta),
            out_shape=jax.ShapeDtypeStruct((b_pad, n_out), jnp.float32),
            grid=grid,
            in_specs=in_specs,
            out_specs=pl.BlockSpec((tile_b, n_out), lambda i: (i, 0)),
            compiler_params=pltpu.CompilerParams(
                dimension_semantics=("parallel",)),
        )(*flat_args)
        if b_pad != B:
            y2d = y2d[:B]
        # Last Toeplitz matrix is column-permuted to channel-major -> reshape is NCL.
        return y2d.reshape(B, embedding_dim, l_out)

    return forward


# -----------------------------------------------------------------------------
# Parameter prep: Conv1d + BN (+ shortcut) -> folded spatial-Toeplitz matmuls
# -----------------------------------------------------------------------------
_BN_EPS = 1e-5


def conv1d_toeplitz_np(w, b, l_in, stride, pad):
    """w: (Cout, Cin, k), b: (Cout,) ->  W: (l_in*Cin, l_out*Cout) position-major, bias."""
    w = np.asarray(w, np.float32)
    b = np.asarray(b, np.float32)
    c_out, c_in, k = w.shape
    l_out = (l_in + 2 * pad - k) // stride + 1
    big = np.zeros((l_in * c_in, l_out * c_out), np.float32)
    for lo in range(l_out):
        for kk in range(k):
            li = lo * stride - pad + kk
            if 0 <= li < l_in:
                big[li * c_in:(li + 1) * c_in, lo * c_out:(lo + 1) * c_out] = w[:, :, kk].T
    bias = np.tile(b[None, :], (l_out, 1)).reshape(l_out * c_out)
    return big, bias, l_out


def fold_bn_np(big, bias, bn, l_out, c_out, eps=_BN_EPS):
    scale = np.asarray(bn["gamma"], np.float32) / np.sqrt(np.asarray(bn["var"], np.float32) + eps)
    shift = np.asarray(bn["beta"], np.float32) - np.asarray(bn["mean"], np.float32) * scale
    col_scale = np.tile(scale[None, :], (l_out, 1)).reshape(-1)
    col_shift = np.tile(shift[None, :], (l_out, 1)).reshape(-1)
    return big * col_scale[None, :], bias * col_scale + col_shift


def perm_rows_to_ncl(big, l_in, c_in):
    """Reorder rows from position-major (l,c) to channel-major (c,l) so the kernel can
    consume the NCL-flattened input without any XLA-side transpose."""
    return big.reshape(l_in, c_in, -1).transpose(1, 0, 2).reshape(c_in * l_in, -1)


def perm_cols_to_ncl(big, bias, l_out, c_out):
    """Reorder output columns to channel-major so the output reshapes straight to NCL."""
    k = big.shape[0]
    big_p = big.reshape(k, l_out, c_out).transpose(0, 2, 1).reshape(k, c_out * l_out)
    bias_p = bias.reshape(l_out, c_out).T.reshape(-1)
    return big_p, bias_p


def cnr_to_op(p, l_in, leaky=True, in_ncl=False):
    """One ConvNormRelu block -> (W, bias, l_out, act, res_mode).
    Conv shortcut (no BN) is folded into W; identity shortcut is added in-kernel."""
    if p["sample"] == "none":
        k, s, pad = 3, 1, 1
    elif p["sample"] == "down":
        k, s, pad = 4, 2, 1
    else:
        raise NotImplementedError("encoder uses only 'none'/'down'")
    c_out, c_in, _ = p["conv"]["w"].shape
    big, bias, l_out = conv1d_toeplitz_np(p["conv"]["w"], p["conv"]["b"], l_in, s, pad)
    big, bias = fold_bn_np(big, bias, p["bn"], l_out, c_out)
    res_mode = None
    if p["residual"]:
        if p["res"] is None:
            res_mode = "cur"                        # identity shortcut, added in f32
        else:                                       # conv shortcut: fold (same linear map domain)
            big_s, bias_s, _ = conv1d_toeplitz_np(p["res"]["w"], p["res"]["b"], l_in, s, pad)
            big, bias = big + big_s, bias + bias_s
    if in_ncl:
        big = perm_rows_to_ncl(big, l_in, c_in)
    return big, bias, l_out, ("leaky" if leaky else "relu"), res_mode


def res_stack_to_ops(p, l_in, leaky=True):
    ops = []
    l_cur = l_in
    for j, lp in enumerate(p["layers"]):
        big, bias, l_cur, act, res = cnr_to_op(lp, l_cur, leaky)
        ops.append(dict(w=big, b=bias, act=act, res=res, save=(j == 0)))
    c = p["conv"]["w"].shape[0]
    big, bias, l_out = conv1d_toeplitz_np(p["conv"]["w"], p["conv"]["b"], l_cur, 1, 1)
    big, bias = fold_bn_np(big, bias, p["bn"], l_out, c)
    final_res = "saved" if p["layers"] else "cur"
    ops.append(dict(w=big, b=bias, act="relu", res=final_res, save=False))
    return ops, l_out


def build_encoder_ops(params, in_dim, seq_len, embedding_dim):
    ops = []
    l_cur = seq_len
    # project (ConvNormRelu, leaky, no residual) — row-permuted to accept NCL input
    big, bias, l_cur, act, res = cnr_to_op(params["project"], l_cur, leaky=True, in_ncl=True)
    ops.append(dict(w=big, b=bias, act=act, res=res, save=False))
    for stack_name, down_name in (("enc1", "down1"), ("enc2", "down2"), ("enc3", None)):
        s_ops, l_cur = res_stack_to_ops(params[stack_name], l_cur, leaky=True)
        ops.extend(s_ops)
        if down_name is not None:
            big, bias, l_cur, act, res = cnr_to_op(params[down_name], l_cur, leaky=True)
            ops.append(dict(w=big, b=bias, act=act, res=res, save=False))
    # pre_vq_conv: plain Conv1d k=1 s=1, no BN, no activation — column-permuted to NCL
    big, bias, l_cur = conv1d_toeplitz_np(params["pre_vq"]["w"], params["pre_vq"]["b"],
                                          l_cur, 1, 0)
    big, bias = perm_cols_to_ncl(big, bias, l_cur, embedding_dim)
    ops.append(dict(w=big, b=bias, act="none", res=None, save=False))
    return ops, l_cur


# -----------------------------------------------------------------------------
# Pure-JAX reference (im2col formulation) used only for a numerical sanity check
# -----------------------------------------------------------------------------
def _fold_wmat(w, b, bn=None, shortcut=None):
    c_out, c_in, k = w.shape
    w_mat = jnp.transpose(w, (2, 1, 0)).reshape(k * c_in, c_out)
    bias = b
    if bn is not None:
        scale = bn["gamma"] / jnp.sqrt(bn["var"] + _BN_EPS)
        w_mat = w_mat * scale[None, :]
        bias = b * scale + (bn["beta"] - bn["mean"] * scale)
    if shortcut is not None:
        ws, bs = shortcut
        w_mat = w_mat + jnp.transpose(ws, (2, 1, 0)).reshape(k * c_in, c_out)
        bias = bias + bs
    return w_mat, bias


def _ref_conv_mm(x, w_mat, bias, k, stride, pad, residual=None, act="none"):
    batch, l_in, _ = x.shape
    c_in = w_mat.shape[0] // k
    xp = jnp.pad(x, ((0, 0), (pad, pad), (0, 0)))
    l_out = (l_in + 2 * pad - k) // stride + 1
    cols = jnp.concatenate(
        [xp[:, kk:kk + (l_out - 1) * stride + 1:stride, :] for kk in range(k)], axis=-1)
    y = jnp.dot(cols.reshape(batch * l_out, k * c_in).astype(jnp.bfloat16),
                w_mat.astype(jnp.bfloat16),
                preferred_element_type=jnp.float32).reshape(batch, l_out, -1)
    y = y + bias[None, None, :]
    if residual is not None:
        y = y + residual
    if act == "leaky":
        y = jnp.where(y >= 0.0, y, 0.2 * y)
    elif act == "relu":
        y = jnp.maximum(y, 0.0)
    return y


def _ref_cnr(x, p, leaky=True):
    k, s, pad = (3, 1, 1) if p["sample"] == "none" else (4, 2, 1)
    residual, shortcut = None, None
    if p["residual"]:
        if p["res"] is None:
            residual = x
        else:
            shortcut = (p["res"]["w"], p["res"]["b"])
    w_mat, bias = _fold_wmat(p["conv"]["w"], p["conv"]["b"], p["bn"], shortcut)
    return _ref_conv_mm(x, w_mat, bias, k, s, pad, residual, "leaky" if leaky else "relu")


def _ref_stack(x, p):
    h = x
    for lp in p["layers"]:
        h = _ref_cnr(h, lp, leaky=True)
    w_mat, bias = _fold_wmat(p["conv"]["w"], p["conv"]["b"], p["bn"])
    return _ref_conv_mm(h, w_mat, bias, 3, 1, 1, residual=x, act="relu")


def _ref_encoder(params, x_ncl):
    x = jnp.transpose(x_ncl, (0, 2, 1))              # (B, L, C)
    h = _ref_cnr(x, params["project"])
    h = _ref_stack(h, params["enc1"])
    h = _ref_cnr(h, params["down1"])
    h = _ref_stack(h, params["enc2"])
    h = _ref_cnr(h, params["down2"])
    h = _ref_stack(h, params["enc3"])
    w_mat, bias = _fold_wmat(params["pre_vq"]["w"], params["pre_vq"]["b"])
    h = _ref_conv_mm(h, w_mat, bias, 1, 1, 0)
    return jnp.transpose(h, (0, 2, 1))               # NCL, like the PyTorch module


# -----------------------------------------------------------------------------
# Deterministic synthetic parameters matching the module structure
# -----------------------------------------------------------------------------
class KeyGen:
    def __init__(self, seed):
        self.key = jax.random.PRNGKey(seed)

    def __call__(self):
        self.key, sub = jax.random.split(self.key)
        return sub


def init_conv1d(kg, cin, cout, k):
    bound = 1.0 / np.sqrt(cin * k)
    return {"w": jax.random.uniform(kg(), (cout, cin, k), jnp.float32, -bound, bound),
            "b": jax.random.uniform(kg(), (cout,), jnp.float32, -bound, bound)}


def init_bn(kg, c):
    return {"gamma": 1.0 + 0.1 * jax.random.normal(kg(), (c,), jnp.float32),
            "beta": 0.1 * jax.random.normal(kg(), (c,), jnp.float32),
            "mean": 0.1 * jax.random.normal(kg(), (c,), jnp.float32),
            "var": 1.0 + 0.1 * jax.random.uniform(kg(), (c,), jnp.float32)}


def init_cnr(kg, cin, cout, sample="none", residual=False):
    p = {"sample": sample, "residual": residual, "res": None}
    p["conv"] = init_conv1d(kg, cin, cout, 3 if sample == "none" else 4)
    p["bn"] = init_bn(kg, cout)
    if residual:
        if sample == "down":
            p["res"] = init_conv1d(kg, cin, cout, 4)
        elif cin != cout:
            p["res"] = init_conv1d(kg, cin, cout, 3)
    return p


def init_res_cnr_stack(kg, channels, layers):
    return {"layers": [init_cnr(kg, channels, channels, "none", True) for _ in range(layers)],
            "conv": init_conv1d(kg, channels, channels, 3),
            "bn": init_bn(kg, channels)}


def init_encoder(kg, in_dim, emb_dim, nh, nrl):
    return {"project": init_cnr(kg, in_dim, nh // 4),
            "enc1": init_res_cnr_stack(kg, nh // 4, nrl),
            "down1": init_cnr(kg, nh // 4, nh // 2, "down", True),
            "enc2": init_res_cnr_stack(kg, nh // 2, nrl),
            "down2": init_cnr(kg, nh // 2, nh, "down", True),
            "enc3": init_res_cnr_stack(kg, nh, nrl),
            "pre_vq": init_conv1d(kg, nh, emb_dim, 1)}


# -----------------------------------------------------------------------------
if __name__ == "__main__":
    B, T = 2, 16
    in_dim = 6
    embedding_dim = 64
    num_hiddens = 64
    num_residual_layers = 2
    num_residual_hiddens = 64      # present in the PyTorch signature; unused by the blocks

    kg = KeyGen(0)
    params = init_encoder(kg, in_dim, embedding_dim, num_hiddens, num_residual_layers)

    # Fold every layer into bf16 Toeplitz matmuls and build the single fused kernel.
    ops, l_final = build_encoder_ops(params, in_dim, T, embedding_dim)
    encoder_forward = make_encoder_forward(ops, in_dim, T, embedding_dim)

    # Input in PyTorch NCL convention: (B, in_dim, T)
    x = jax.random.normal(jax.random.PRNGKey(0), (B, in_dim, T), jnp.float32)

    fwd = jax.jit(encoder_forward)
    h = fwd(x)
    jax.block_until_ready(h)

    assert h.shape == (B, embedding_dim, T // 4), h.shape
    assert bool(jnp.all(jnp.isfinite(h)))

    # Numerical sanity check against an independent pure-JAX im2col reference
    # (same bf16-rounded folded weights; loose tolerance covers accumulation-order noise).
    ref = jax.jit(lambda xx: _ref_encoder(params, xx))(x)
    jax.block_until_ready(ref)
    np.testing.assert_allclose(np.asarray(h), np.asarray(ref), rtol=5e-2, atol=5e-2)

    print("KERNEL_OK")
</pallas_src>

<mosaic_0001>
module attributes {stable_mosaic.version = 11 : i64} {
  func.func @_encoder_kernel(%arg0: i32, %arg1: memref<2x96xf32, #tpu.memory_space<vmem>>, %arg2: memref<96x256xbf16, #tpu.memory_space<vmem>>, %arg3: memref<1x256xf32, #tpu.memory_space<vmem>>, %arg4: memref<256x256xbf16, #tpu.memory_space<vmem>>, %arg5: memref<1x256xf32, #tpu.memory_space<vmem>>, %arg6: memref<256x256xbf16, #tpu.memory_space<vmem>>, %arg7: memref<1x256xf32, #tpu.memory_space<vmem>>, %arg8: memref<256x256xbf16, #tpu.memory_space<vmem>>, %arg9: memref<1x256xf32, #tpu.memory_space<vmem>>, %arg10: memref<256x256xbf16, #tpu.memory_space<vmem>>, %arg11: memref<1x256xf32, #tpu.memory_space<vmem>>, %arg12: memref<256x256xbf16, #tpu.memory_space<vmem>>, %arg13: memref<1x256xf32, #tpu.memory_space<vmem>>, %arg14: memref<256x256xbf16, #tpu.memory_space<vmem>>, %arg15: memref<1x256xf32, #tpu.memory_space<vmem>>, %arg16: memref<256x256xbf16, #tpu.memory_space<vmem>>, %arg17: memref<1x256xf32, #tpu.memory_space<vmem>>, %arg18: memref<256x256xbf16, #tpu.memory_space<vmem>>, %arg19: memref<1x256xf32, #tpu.memory_space<vmem>>, %arg20: memref<256x256xbf16, #tpu.memory_space<vmem>>, %arg21: memref<1x256xf32, #tpu.memory_space<vmem>>, %arg22: memref<256x256xbf16, #tpu.memory_space<vmem>>, %arg23: memref<1x256xf32, #tpu.memory_space<vmem>>, %arg24: memref<256x256xbf16, #tpu.memory_space<vmem>>, %arg25: memref<1x256xf32, #tpu.memory_space<vmem>>, %arg26: memref<256x256xbf16, #tpu.memory_space<vmem>>, %arg27: memref<1x256xf32, #tpu.memory_space<vmem>>, %arg28: memref<2x256xf32, #tpu.memory_space<vmem>>) attributes {dimension_semantics = [#tpu.dimension_semantics<parallel>], iteration_bounds = array<i64: 1>, scalar_prefetch = 0 : i64, scratch_operands = 0 : i64, tpu.core_type = #tpu.core_type<tc>, window_params = [{transform_indices = @transform_0, window_bounds = array<i64: 2, 96>}, {pipeline_mode = #tpu.pipeline_mode<synchronous>, transform_indices = @transform_1, window_bounds = array<i64: 96, 256>}, {pipeline_mode = #tpu.pipeline_mode<synchronous>, transform_indices = @transform_2, window_bounds = array<i64: 1, 256>}, {pipeline_mode = #tpu.pipeline_mode<synchronous>, transform_indices = @transform_3, window_bounds = array<i64: 256, 256>}, {pipeline_mode = #tpu.pipeline_mode<synchronous>, transform_indices = @transform_4, window_bounds = array<i64: 1, 256>}, {pipeline_mode = #tpu.pipeline_mode<synchronous>, transform_indices = @transform_5, window_bounds = array<i64: 256, 256>}, {pipeline_mode = #tpu.pipeline_mode<synchronous>, transform_indices = @transform_6, window_bounds = array<i64: 1, 256>}, {pipeline_mode = #tpu.pipeline_mode<synchronous>, transform_indices = @transform_7, window_bounds = array<i64: 256, 256>}, {pipeline_mode = #tpu.pipeline_mode<synchronous>, transform_indices = @transform_8, window_bounds = array<i64: 1, 256>}, {pipeline_mode = #tpu.pipeline_mode<synchronous>, transform_indices = @transform_9, window_bounds = array<i64: 256, 256>}, {pipeline_mode = #tpu.pipeline_mode<synchronous>, transform_indices = @transform_10, window_bounds = array<i64: 1, 256>}, {pipeline_mode = #tpu.pipeline_mode<synchronous>, transform_indices = @transform_11, window_bounds = array<i64: 256, 256>}, {pipeline_mode = #tpu.pipeline_mode<synchronous>, transform_indices = @transform_12, window_bounds = array<i64: 1, 256>}, {pipeline_mode = #tpu.pipeline_mode<synchronous>, transform_indices = @transform_13, window_bounds = array<i64: 256, 256>}, {pipeline_mode = #tpu.pipeline_mode<synchronous>, transform_indices = @transform_14, window_bounds = array<i64: 1, 256>}, {pipeline_mode = #tpu.pipeline_mode<synchronous>, transform_indices = @transform_15, window_bounds = array<i64: 256, 256>}, {pipeline_mode = #tpu.pipeline_mode<synchronous>, transform_indices = @transform_16, window_bounds = array<i64: 1, 256>}, {pipeline_mode = #tpu.pipeline_mode<synchronous>, transform_indices = @transform_17, window_bounds = array<i64: 256, 256>}, {pipeline_mode = #tpu.pipeline_mode<synchronous>, transform_indices = @transform_18, window_bounds = array<i64: 1, 256>}, {pipeline_mode = #tpu.pipeline_mode<synchronous>, transform_indices = @transform_19, window_bounds = array<i64: 256, 256>}, {pipeline_mode = #tpu.pipeline_mode<synchronous>, transform_indices = @transform_20, window_bounds = array<i64: 1, 256>}, {pipeline_mode = #tpu.pipeline_mode<synchronous>, transform_indices = @transform_21, window_bounds = array<i64: 256, 256>}, {pipeline_mode = #tpu.pipeline_mode<synchronous>, transform_indices = @transform_22, window_bounds = array<i64: 1, 256>}, {pipeline_mode = #tpu.pipeline_mode<synchronous>, transform_indices = @transform_23, window_bounds = array<i64: 256, 256>}, {pipeline_mode = #tpu.pipeline_mode<synchronous>, transform_indices = @transform_24, window_bounds = array<i64: 1, 256>}, {pipeline_mode = #tpu.pipeline_mode<synchronous>, transform_indices = @transform_25, window_bounds = array<i64: 256, 256>}, {pipeline_mode = #tpu.pipeline_mode<synchronous>, transform_indices = @transform_26, window_bounds = array<i64: 1, 256>}, {transform_indices = @transform_27, window_bounds = array<i64: 2, 256>}]} {
    %c0 = arith.constant 0 : index
    %c0_0 = arith.constant 0 : index
    %0 = vector.load %arg1[%c0, %c0_0] : memref<2x96xf32, #tpu.memory_space<vmem>>, vector<2x96xf32>
    %c0_1 = arith.constant 0 : index
    %c0_2 = arith.constant 0 : index
    %1 = vector.load %arg2[%c0_1, %c0_2] : memref<96x256xbf16, #tpu.memory_space<vmem>>, vector<96x256xbf16>
    %c0_3 = arith.constant 0 : index
    %c0_4 = arith.constant 0 : index
    %2 = vector.load %arg3[%c0_3, %c0_4] : memref<1x256xf32, #tpu.memory_space<vmem>>, vector<1x256xf32>
    %3 = arith.truncf %0 : vector<2x96xf32> to vector<2x96xbf16>
    %cst = arith.constant dense<0.000000e+00> : vector<2x256xf32>
    %4 = tpu.matmul %3, %1, %cst {dimension_numbers = #tpu.dot_dimension_numbers<[1], [0], [0], [1], [0, 0, 1, 1], [], []>} : vector<2x96xbf16>, vector<96x256xbf16>, vector<2x256xf32> -> vector<2x256xf32>
    %5 = vector.broadcast %2 : vector<1x256xf32> to vector<2x256xf32>
    %6 = arith.addf %4, %5 : vector<2x256xf32>
    %cst_5 = arith.constant 0.000000e+00 : f32
    %7 = vector.broadcast %cst_5 : f32 to vector<2x256xf32>
    %8 = arith.cmpf oge, %6, %7 : vector<2x256xf32>
    %cst_6 = arith.constant 2.000000e-01 : f32
    %9 = vector.broadcast %cst_6 : f32 to vector<2x256xf32>
    %10 = arith.mulf %9, %6 : vector<2x256xf32>
    %11 = arith.select %8, %6, %10 : vector<2x256xi1>, vector<2x256xf32>
    %c0_7 = arith.constant 0 : index
    %c0_8 = arith.constant 0 : index
    %12 = vector.load %arg4[%c0_7, %c0_8] : memref<256x256xbf16, #tpu.memory_space<vmem>>, vector<256x256xbf16>
    %c0_9 = arith.constant 0 : index
    %c0_10 = arith.constant 0 : index
    %13 = vector.load %arg5[%c0_9, %c0_10] : memref<1x256xf32, #tpu.memory_space<vmem>>, vector<1x256xf32>
    %14 = arith.truncf %11 : vector<2x256xf32> to vector<2x256xbf16>
    %cst_11 = arith.constant dense<0.000000e+00> : vector<2x256xf32>
    %15 = tpu.matmul %14, %12, %cst_11 {dimension_numbers = #tpu.dot_dimension_numbers<[1], [0], [0], [1], [0, 0, 1, 1], [], []>} : vector<2x256xbf16>, vector<256x256xbf16>, vector<2x256xf32> -> vector<2x256xf32>
    %16 = vector.broadcast %13 : vector<1x256xf32> to vector<2x256xf32>
    %17 = arith.addf %15, %16 : vector<2x256xf32>
    %18 = arith.addf %17, %11 : vector<2x256xf32>
    %cst_12 = arith.constant 0.000000e+00 : f32
    %19 = vector.broadcast %cst_12 : f32 to vector<2x256xf32>
    %20 = arith.cmpf oge, %18, %19 : vector<2x256xf32>
    %cst_13 = arith.constant 2.000000e-01 : f32
    %21 = vector.broadcast %cst_13 : f32 to vector<2x256xf32>
    %22 = arith.mulf %21, %18 : vector<2x256xf32>
    %23 = arith.select %20, %18, %22 : vector<2x256xi1>, vector<2x256xf32>
    %c0_14 = arith.constant 0 : index
    %c0_15 = arith.constant 0 : index
    %24 = vector.load %arg6[%c0_14, %c0_15] : memref<256x256xbf16, #tpu.memory_space<vmem>>, vector<256x256xbf16>
    %c0_16 = arith.constant 0 : index
    %c0_17 = arith.constant 0 : index
    %25 = vector.load %arg7[%c0_16, %c0_17] : memref<1x256xf32, #tpu.memory_space<vmem>>, vector<1x256xf32>
    %26 = arith.truncf %23 : vector<2x256xf32> to vector<2x256xbf16>
    %cst_18 = arith.constant dense<0.000000e+00> : vector<2x256xf32>
    %27 = tpu.matmul %26, %24, %cst_18 {dimension_numbers = #tpu.dot_dimension_numbers<[1], [0], [0], [1], [0, 0, 1, 1], [], []>} : vector<2x256xbf16>, vector<256x256xbf16>, vector<2x256xf32> -> vector<2x256xf32>
    %28 = vector.broadcast %25 : vector<1x256xf32> to vector<2x256xf32>
    %29 = arith.addf %27, %28 : vector<2x256xf32>
    %30 = arith.addf %29, %23 : vector<2x256xf32>
    %cst_19 = arith.constant 0.000000e+00 : f32
    %31 = vector.broadcast %cst_19 : f32 to vector<2x256xf32>
    %32 = arith.cmpf oge, %30, %31 : vector<2x256xf32>
    %cst_20 = arith.constant 2.000000e-01 : f32
    %33 = vector.broadcast %cst_20 : f32 to vector<2x256xf32>
    %34 = arith.mulf %33, %30 : vector<2x256xf32>
    %35 = arith.select %32, %30, %34 : vector<2x256xi1>, vector<2x256xf32>
    %c0_21 = arith.constant 0 : index
    %c0_22 = arith.constant 0 : index
    %36 = vector.load %arg8[%c0_21, %c0_22] : memref<256x256xbf16, #tpu.memory_space<vmem>>, vector<256x256xbf16>
    %c0_23 = arith.constant 0 : index
    %c0_24 = arith.constant 0 : index
    %37 = vector.load %arg9[%c0_23, %c0_24] : memref<1x256xf32, #tpu.memory_space<vmem>>, vector<1x256xf32>
    %38 = arith.truncf %35 : vector<2x256xf32> to vector<2x256xbf16>
    %cst_25 = arith.constant dense<0.000000e+00> : vector<2x256xf32>
    %39 = tpu.matmul %38, %36, %cst_25 {dimension_numbers = #tpu.dot_dimension_numbers<[1], [0], [0], [1], [0, 0, 1, 1], [], []>} : vector<2x256xbf16>, vector<256x256xbf16>, vector<2x256xf32> -> vector<2x256xf32>
    %40 = vector.broadcast %37 : vector<1x256xf32> to vector<2x256xf32>
    %41 = arith.addf %39, %40 : vector<2x256xf32>
    %42 = arith.addf %41, %11 : vector<2x256xf32>
    %cst_26 = arith.constant 0.000000e+00 : f32
    %43 = vector.broadcast %cst_26 : f32 to vector<2x256xf32>
    %44 = arith.maximumf %42, %43 : vector<2x256xf32>
    %c0_27 = arith.constant 0 : index
    %c0_28 = arith.constant 0 : index
    %45 = vector.load %arg10[%c0_27, %c0_28] : memref<256x256xbf16, #tpu.memory_space<vmem>>, vector<256x256xbf16>
    %c0_29 = arith.constant 0 : index
    %c0_30 = arith.constant 0 : index
    %46 = vector.load %arg11[%c0_29, %c0_30] : memref<1x256xf32, #tpu.memory_space<vmem>>, vector<1x256xf32>
    %47 = arith.truncf %44 : vector<2x256xf32> to vector<2x256xbf16>
    %cst_31 = arith.constant dense<0.000000e+00> : vector<2x256xf32>
    %48 = tpu.matmul %47, %45, %cst_31 {dimension_numbers = #tpu.dot_dimension_numbers<[1], [0], [0], [1], [0, 0, 1, 1], [], []>} : vector<2x256xbf16>, vector<256x256xbf16>, vector<2x256xf32> -> vector<2x256xf32>
    %49 = vector.broadcast %46 : vector<1x256xf32> to vector<2x256xf32>
    %50 = arith.addf %48, %49 : vector<2x256xf32>
    %cst_32 = arith.constant 0.000000e+00 : f32
    %51 = vector.broadcast %cst_32 : f32 to vector<2x256xf32>
    %52 = arith.cmpf oge, %50, %51 : vector<2x256xf32>
    %cst_33 = arith.constant 2.000000e-01 : f32
    %53 = vector.broadcast %cst_33 : f32 to vector<2x256xf32>
    %54 = arith.mulf %53, %50 : vector<2x256xf32>
    %55 = arith.select %52, %50, %54 : vector<2x256xi1>, vector<2x256xf32>
    %c0_34 = arith.constant 0 : index
    %c0_35 = arith.constant 0 : index
    %56 = vector.load %arg12[%c0_34, %c0_35] : memref<256x256xbf16, #tpu.memory_space<vmem>>, vector<256x256xbf16>
    %c0_36 = arith.constant 0 : index
    %c0_37 = arith.constant 0 : index
    %57 = vector.load %arg13[%c0_36, %c0_37] : memref<1x256xf32, #tpu.memory_space<vmem>>, vector<1x256xf32>
    %58 = arith.truncf %55 : vector<2x256xf32> to vector<2x256xbf16>
    %cst_38 = arith.constant dense<0.000000e+00> : vector<2x256xf32>
    %59 = tpu.matmul %58, %56, %cst_38 {dimension_numbers = #tpu.dot_dimension_numbers<[1], [0], [0], [1], [0, 0, 1, 1], [], []>} : vector<2x256xbf16>, vector<256x256xbf16>, vector<2x256xf32> -> vector<2x256xf32>
    %60 = vector.broadcast %57 : vector<1x256xf32> to vector<2x256xf32>
    %61 = arith.addf %59, %60 : vector<2x256xf32>
    %62 = arith.addf %61, %55 : vector<2x256xf32>
    %cst_39 = arith.constant 0.000000e+00 : f32
    %63 = vector.broadcast %cst_39 : f32 to vector<2x256xf32>
    %64 = arith.cmpf oge, %62, %63 : vector<2x256xf32>
    %cst_40 = arith.constant 2.000000e-01 : f32
    %65 = vector.broadcast %cst_40 : f32 to vector<2x256xf32>
    %66 = arith.mulf %65, %62 : vector<2x256xf32>
    %67 = arith.select %64, %62, %66 : vector<2x256xi1>, vector<2x256xf32>
    %c0_41 = arith.constant 0 : index
    %c0_42 = arith.constant 0 : index
    %68 = vector.load %arg14[%c0_41, %c0_42] : memref<256x256xbf16, #tpu.memory_space<vmem>>, vector<256x256xbf16>
    %c0_43 = arith.constant 0 : index
    %c0_44 = arith.constant 0 : index
    %69 = vector.load %arg15[%c0_43, %c0_44] : memref<1x256xf32, #tpu.memory_space<vmem>>, vector<1x256xf32>
    %70 = arith.truncf %67 : vector<2x256xf32> to vector<2x256xbf16>
    %cst_45 = arith.constant dense<0.000000e+00> : vector<2x256xf32>
    %71 = tpu.matmul %70, %68, %cst_45 {dimension_numbers = #tpu.dot_dimension_numbers<[1], [0], [0], [1], [0, 0, 1, 1], [], []>} : vector<2x256xbf16>, vector<256x256xbf16>, vector<2x256xf32> -> vector<2x256xf32>
    %72 = vector.broadcast %69 : vector<1x256xf32> to vector<2x256xf32>
    %73 = arith.addf %71, %72 : vector<2x256xf32>
    %74 = arith.addf %73, %67 : vector<2x256xf32>
    %cst_46 = arith.constant 0.000000e+00 : f32
    %75 = vector.broadcast %cst_46 : f32 to vector<2x256xf32>
    %76 = arith.cmpf oge, %74, %75 : vector<2x256xf32>
    %cst_47 = arith.constant 2.000000e-01 : f32
    %77 = vector.broadcast %cst_47 : f32 to vector<2x256xf32>
    %78 = arith.mulf %77, %74 : vector<2x256xf32>
    %79 = arith.select %76, %74, %78 : vector<2x256xi1>, vector<2x256xf32>
    %c0_48 = arith.constant 0 : index
    %c0_49 = arith.constant 0 : index
    %80 = vector.load %arg16[%c0_48, %c0_49] : memref<256x256xbf16, #tpu.memory_space<vmem>>, vector<256x256xbf16>
    %c0_50 = arith.constant 0 : index
    %c0_51 = arith.constant 0 : index
    %81 = vector.load %arg17[%c0_50, %c0_51] : memref<1x256xf32, #tpu.memory_space<vmem>>, vector<1x256xf32>
    %82 = arith.truncf %79 : vector<2x256xf32> to vector<2x256xbf16>
    %cst_52 = arith.constant dense<0.000000e+00> : vector<2x256xf32>
    %83 = tpu.matmul %82, %80, %cst_52 {dimension_numbers = #tpu.dot_dimension_numbers<[1], [0], [0], [1], [0, 0, 1, 1], [], []>} : vector<2x256xbf16>, vector<256x256xbf16>, vector<2x256xf32> -> vector<2x256xf32>
    %84 = vector.broadcast %81 : vector<1x256xf32> to vector<2x256xf32>
    %85 = arith.addf %83, %84 : vector<2x256xf32>
    %86 = arith.addf %85, %55 : vector<2x256xf32>
    %cst_53 = arith.constant 0.000000e+00 : f32
    %87 = vector.broadcast %cst_53 : f32 to vector<2x256xf32>
    %88 = arith.maximumf %86, %87 : vector<2x256xf32>
    %c0_54 = arith.constant 0 : index
    %c0_55 = arith.constant 0 : index
    %89 = vector.load %arg18[%c0_54, %c0_55] : memref<256x256xbf16, #tpu.memory_space<vmem>>, vector<256x256xbf16>
    %c0_56 = arith.constant 0 : index
    %c0_57 = arith.constant 0 : index
    %90 = vector.load %arg19[%c0_56, %c0_57] : memref<1x256xf32, #tpu.memory_space<vmem>>, vector<1x256xf32>
    %91 = arith.truncf %88 : vector<2x256xf32> to vector<2x256xbf16>
    %cst_58 = arith.constant dense<0.000000e+00> : vector<2x256xf32>
    %92 = tpu.matmul %91, %89, %cst_58 {dimension_numbers = #tpu.dot_dimension_numbers<[1], [0], [0], [1], [0, 0, 1, 1], [], []>} : vector<2x256xbf16>, vector<256x256xbf16>, vector<2x256xf32> -> vector<2x256xf32>
    %93 = vector.broadcast %90 : vector<1x256xf32> to vector<2x256xf32>
    %94 = arith.addf %92, %93 : vector<2x256xf32>
    %cst_59 = arith.constant 0.000000e+00 : f32
    %95 = vector.broadcast %cst_59 : f32 to vector<2x256xf32>
    %96 = arith.cmpf oge, %94, %95 : vector<2x256xf32>
    %cst_60 = arith.constant 2.000000e-01 : f32
    %97 = vector.broadcast %cst_60 : f32 to vector<2x256xf32>
    %98 = arith.mulf %97, %94 : vector<2x256xf32>
    %99 = arith.select %96, %94, %98 : vector<2x256xi1>, vector<2x256xf32>
    %c0_61 = arith.constant 0 : index
    %c0_62 = arith.constant 0 : index
    %100 = vector.load %arg20[%c0_61, %c0_62] : memref<256x256xbf16, #tpu.memory_space<vmem>>, vector<256x256xbf16>
    %c0_63 = arith.constant 0 : index
    %c0_64 = arith.constant 0 : index
    %101 = vector.load %arg21[%c0_63, %c0_64] : memref<1x256xf32, #tpu.memory_space<vmem>>, vector<1x256xf32>
    %102 = arith.truncf %99 : vector<2x256xf32> to vector<2x256xbf16>
    %cst_65 = arith.constant dense<0.000000e+00> : vector<2x256xf32>
    %103 = tpu.matmul %102, %100, %cst_65 {dimension_numbers = #tpu.dot_dimension_numbers<[1], [0], [0], [1], [0, 0, 1, 1], [], []>} : vector<2x256xbf16>, vector<256x256xbf16>, vector<2x256xf32> -> vector<2x256xf32>
    %104 = vector.broadcast %101 : vector<1x256xf32> to vector<2x256xf32>
    %105 = arith.addf %103, %104 : vector<2x256xf32>
    %106 = arith.addf %105, %99 : vector<2x256xf32>
    %cst_66 = arith.constant 0.000000e+00 : f32
    %107 = vector.broadcast %cst_66 : f32 to vector<2x256xf32>
    %108 = arith.cmpf oge, %106, %107 : vector<2x256xf32>
    %cst_67 = arith.constant 2.000000e-01 : f32
    %109 = vector.broadcast %cst_67 : f32 to vector<2x256xf32>
    %110 = arith.mulf %109, %106 : vector<2x256xf32>
    %111 = arith.select %108, %106, %110 : vector<2x256xi1>, vector<2x256xf32>
    %c0_68 = arith.constant 0 : index
    %c0_69 = arith.constant 0 : index
    %112 = vector.load %arg22[%c0_68, %c0_69] : memref<256x256xbf16, #tpu.memory_space<vmem>>, vector<256x256xbf16>
    %c0_70 = arith.constant 0 : index
    %c0_71 = arith.constant 0 : index
    %113 = vector.load %arg23[%c0_70, %c0_71] : memref<1x256xf32, #tpu.memory_space<vmem>>, vector<1x256xf32>
    %114 = arith.truncf %111 : vector<2x256xf32> to vector<2x256xbf16>
    %cst_72 = arith.constant dense<0.000000e+00> : vector<2x256xf32>
    %115 = tpu.matmul %114, %112, %cst_72 {dimension_numbers = #tpu.dot_dimension_numbers<[1], [0], [0], [1], [0, 0, 1, 1], [], []>} : vector<2x256xbf16>, vector<256x256xbf16>, vector<2x256xf32> -> vector<2x256xf32>
    %116 = vector.broadcast %113 : vector<1x256xf32> to vector<2x256xf32>
    %117 = arith.addf %115, %116 : vector<2x256xf32>
    %118 = arith.addf %117, %111 : vector<2x256xf32>
    %cst_73 = arith.constant 0.000000e+00 : f32
    %119 = vector.broadcast %cst_73 : f32 to vector<2x256xf32>
    %120 = arith.cmpf oge, %118, %119 : vector<2x256xf32>
    %cst_74 = arith.constant 2.000000e-01 : f32
    %121 = vector.broadcast %cst_74 : f32 to vector<2x256xf32>
    %122 = arith.mulf %121, %118 : vector<2x256xf32>
    %123 = arith.select %120, %118, %122 : vector<2x256xi1>, vector<2x256xf32>
    %c0_75 = arith.constant 0 : index
    %c0_76 = arith.constant 0 : index
    %124 = vector.load %arg24[%c0_75, %c0_76] : memref<256x256xbf16, #tpu.memory_space<vmem>>, vector<256x256xbf16>
    %c0_77 = arith.constant 0 : index
    %c0_78 = arith.constant 0 : index
    %125 = vector.load %arg25[%c0_77, %c0_78] : memref<1x256xf32, #tpu.memory_space<vmem>>, vector<1x256xf32>
    %126 = arith.truncf %123 : vector<2x256xf32> to vector<2x256xbf16>
    %cst_79 = arith.constant dense<0.000000e+00> : vector<2x256xf32>
    %127 = tpu.matmul %126, %124, %cst_79 {dimension_numbers = #tpu.dot_dimension_numbers<[1], [0], [0], [1], [0, 0, 1, 1], [], []>} : vector<2x256xbf16>, vector<256x256xbf16>, vector<2x256xf32> -> vector<2x256xf32>
    %128 = vector.broadcast %125 : vector<1x256xf32> to vector<2x256xf32>
    %129 = arith.addf %127, %128 : vector<2x256xf32>
    %130 = arith.addf %129, %99 : vector<2x256xf32>
    %cst_80 = arith.constant 0.000000e+00 : f32
    %131 = vector.broadcast %cst_80 : f32 to vector<2x256xf32>
    %132 = arith.maximumf %130, %131 : vector<2x256xf32>
    %c0_81 = arith.constant 0 : index
    %c0_82 = arith.constant 0 : index
    %133 = vector.load %arg26[%c0_81, %c0_82] : memref<256x256xbf16, #tpu.memory_space<vmem>>, vector<256x256xbf16>
    %c0_83 = arith.constant 0 : index
    %c0_84 = arith.constant 0 : index
    %134 = vector.load %arg27[%c0_83, %c0_84] : memref<1x256xf32, #tpu.memory_space<vmem>>, vector<1x256xf32>
    %135 = arith.truncf %132 : vector<2x256xf32> to vector<2x256xbf16>
    %cst_85 = arith.constant dense<0.000000e+00> : vector<2x256xf32>
    %136 = tpu.matmul %135, %133, %cst_85 {dimension_numbers = #tpu.dot_dimension_numbers<[1], [0], [0], [1], [0, 0, 1, 1], [], []>} : vector<2x256xbf16>, vector<256x256xbf16>, vector<2x256xf32> -> vector<2x256xf32>
    %137 = vector.broadcast %134 : vector<1x256xf32> to vector<2x256xf32>
    %138 = arith.addf %136, %137 : vector<2x256xf32>
    %c0_86 = arith.constant 0 : index
    %c0_87 = arith.constant 0 : index
    %139 = vector.load %arg28[%c0_86, %c0_87] : memref<2x256xf32, #tpu.memory_space<vmem>>, vector<2x256xf32>
    tpu.vector_store %arg28[%c0_86, %c0_87], %138 {strides = array<i32>} : memref<2x256xf32, #tpu.memory_space<vmem>>, vector<2x256xf32>,
    return
  }
  func.func @transform_0(%arg0: i32) -> (i32, i32) {
    %c0_i32 = arith.constant 0 : i32
    %c0_i32_0 = arith.constant 0 : i32
    return %arg0, %c0_i32 : i32, i32
  }
  func.func @transform_1(%arg0: i32) -> (i32, i32) {
    %c0_i32 = arith.constant 0 : i32
    %c0_i32_0 = arith.constant 0 : i32
    %c0_i32_1 = arith.constant 0 : i32
    return %c0_i32, %c0_i32_0 : i32, i32
  }
  func.func @transform_2(%arg0: i32) -> (i32, i32) {
    %c0_i32 = arith.constant 0 : i32
    %c0_i32_0 = arith.constant 0 : i32
    %c0_i32_1 = arith.constant 0 : i32
    return %c0_i32, %c0_i32_0 : i32, i32
  }
  func.func @transform_3(%arg0: i32) -> (i32, i32) {
    %c0_i32 = arith.constant 0 : i32
    %c0_i32_0 = arith.constant 0 : i32
    %c0_i32_1 = arith.constant 0 : i32
    return %c0_i32, %c0_i32_0 : i32, i32
  }
  func.func @transform_4(%arg0: i32) -> (i32, i32) {
    %c0_i32 = arith.constant 0 : i32
    %c0_i32_0 = arith.constant 0 : i32
    %c0_i32_1 = arith.constant 0 : i32
    return %c0_i32, %c0_i32_0 : i32, i32
  }
  func.func @transform_5(%arg0: i32) -> (i32, i32) {
    %c0_i32 = arith.constant 0 : i32
    %c0_i32_0 = arith.constant 0 : i32
    %c0_i32_1 = arith.constant 0 : i32
    return %c0_i32, %c0_i32_0 : i32, i32
  }
  func.func @transform_6(%arg0: i32) -> (i32, i32) {
    %c0_i32 = arith.constant 0 : i32
    %c0_i32_0 = arith.constant 0 : i32
    %c0_i32_1 = arith.constant 0 : i32
    return %c0_i32, %c0_i32_0 : i32, i32
  }
  func.func @transform_7(%arg0: i32) -> (i32, i32) {
    %c0_i32 = arith.constant 0 : i32
    %c0_i32_0 = arith.constant 0 : i32
    %c0_i32_1 = arith.constant 0 : i32
    return %c0_i32, %c0_i32_0 : i32, i32
  }
  func.func @transform_8(%arg0: i32) -> (i32, i32) {
    %c0_i32 = arith.constant 0 : i32
    %c0_i32_0 = arith.constant 0 : i32
    %c0_i32_1 = arith.constant 0 : i32
    return %c0_i32, %c0_i32_0 : i32, i32
  }
  func.func @transform_9(%arg0: i32) -> (i32, i32) {
    %c0_i32 = arith.constant 0 : i32
    %c0_i32_0 = arith.constant 0 : i32
    %c0_i32_1 = arith.constant 0 : i32
    return %c0_i32, %c0_i32_0 : i32, i32
  }
  func.func @transform_10(%arg0: i32) -> (i32, i32) {
    %c0_i32 = arith.constant 0 : i32
    %c0_i32_0 = arith.constant 0 : i32
    %c0_i32_1 = arith.constant 0 : i32
    return %c0_i32, %c0_i32_0 : i32, i32
  }
  func.func @transform_11(%arg0: i32) -> (i32, i32) {
    %c0_i32 = arith.constant 0 : i32
    %c0_i32_0 = arith.constant 0 : i32
    %c0_i32_1 = arith.constant 0 : i32
    return %c0_i32, %c0_i32_0 : i32, i32
  }
  func.func @transform_12(%arg0: i32) -> (i32, i32) {
    %c0_i32 = arith.constant 0 : i32
    %c0_i32_0 = arith.constant 0 : i32
    %c0_i32_1 = arith.constant 0 : i32
    return %c0_i32, %c0_i32_0 : i32, i32
  }
  func.func @transform_13(%arg0: i32) -> (i32, i32) {
    %c0_i32 = arith.constant 0 : i32
    %c0_i32_0 = arith.constant 0 : i32
    %c0_i32_1 = arith.constant 0 : i32
    return %c0_i32, %c0_i32_0 : i32, i32
  }
  func.func @transform_14(%arg0: i32) -> (i32, i32) {
    %c0_i32 = arith.constant 0 : i32
    %c0_i32_0 = arith.constant 0 : i32
    %c0_i32_1 = arith.constant 0 : i32
    return %c0_i32, %c0_i32_0 : i32, i32
  }
  func.func @transform_15(%arg0: i32) -> (i32, i32) {
    %c0_i32 = arith.constant 0 : i32
    %c0_i32_0 = arith.constant 0 : i32
    %c0_i32_1 = arith.constant 0 : i32
    return %c0_i32, %c0_i32_0 : i32, i32
  }
  func.func @transform_16(%arg0: i32) -> (i32, i32) {
    %c0_i32 = arith.constant 0 : i32
    %c0_i32_0 = arith.constant 0 : i32
    %c0_i32_1 = arith.constant 0 : i32
    return %c0_i32, %c0_i32_0 : i32, i32
  }
  func.func @transform_17(%arg0: i32) -> (i32, i32) {
    %c0_i32 = arith.constant 0 : i32
    %c0_i32_0 = arith.constant 0 : i32
    %c0_i32_1 = arith.constant 0 : i32
    return %c0_i32, %c0_i32_0 : i32, i32
  }
  func.func @transform_18(%arg0: i32) -> (i32, i32) {
    %c0_i32 = arith.constant 0 : i32
    %c0_i32_0 = arith.constant 0 : i32
    %c0_i32_1 = arith.constant 0 : i32
    return %c0_i32, %c0_i32_0 : i32, i32
  }
  func.func @transform_19(%arg0: i32) -> (i32, i32) {
    %c0_i32 = arith.constant 0 : i32
    %c0_i32_0 = arith.constant 0 : i32
    %c0_i32_1 = arith.constant 0 : i32
    return %c0_i32, %c0_i32_0 : i32, i32
  }
  func.func @transform_20(%arg0: i32) -> (i32, i32) {
    %c0_i32 = arith.constant 0 : i32
    %c0_i32_0 = arith.constant 0 : i32
    %c0_i32_1 = arith.constant 0 : i32
    return %c0_i32, %c0_i32_0 : i32, i32
  }
  func.func @transform_21(%arg0: i32) -> (i32, i32) {
    %c0_i32 = arith.constant 0 : i32
    %c0_i32_0 = arith.constant 0 : i32
    %c0_i32_1 = arith.constant 0 : i32
    return %c0_i32, %c0_i32_0 : i32, i32
  }
  func.func @transform_22(%arg0: i32) -> (i32, i32) {
    %c0_i32 = arith.constant 0 : i32
    %c0_i32_0 = arith.constant 0 : i32
    %c0_i32_1 = arith.constant 0 : i32
    return %c0_i32, %c0_i32_0 : i32, i32
  }
  func.func @transform_23(%arg0: i32) -> (i32, i32) {
    %c0_i32 = arith.constant 0 : i32
    %c0_i32_0 = arith.constant 0 : i32
    %c0_i32_1 = arith.constant 0 : i32
    return %c0_i32, %c0_i32_0 : i32, i32
  }
  func.func @transform_24(%arg0: i32) -> (i32, i32) {
    %c0_i32 = arith.constant 0 : i32
    %c0_i32_0 = arith.constant 0 : i32
    %c0_i32_1 = arith.constant 0 : i32
    return %c0_i32, %c0_i32_0 : i32, i32
  }
  func.func @transform_25(%arg0: i32) -> (i32, i32) {
    %c0_i32 = arith.constant 0 : i32
    %c0_i32_0 = arith.constant 0 : i32
    %c0_i32_1 = arith.constant 0 : i32
    return %c0_i32, %c0_i32_0 : i32, i32
  }
  func.func @transform_26(%arg0: i32) -> (i32, i32) {
    %c0_i32 = arith.constant 0 : i32
    %c0_i32_0 = arith.constant 0 : i32
    %c0_i32_1 = arith.constant 0 : i32
    return %c0_i32, %c0_i32_0 : i32, i32
  }
  func.func @transform_27(%arg0: i32) -> (i32, i32) {
    %c0_i32 = arith.constant 0 : i32
    %c0_i32_0 = arith.constant 0 : i32
    return %arg0, %c0_i32 : i32, i32
  }
}

</mosaic_0001>

<bundles_post_ra>
// kernel: forward.1
= control target key start
LH: loop header
LB: loop body
LE: loop exit
PB: predicated region body
PF: predicated region fallthrough
CT: control target
= control target key end

     0   :  { %s6188_s0 = inlined_call_operand.vmem [shape: f32[2,96], index: 0, kind: input, shape index: {}]   ;;  %s6189_s1 = inlined_call_operand.hbm [shape: bf16[96,256], index: 1, kind: input, shape index: {}]   ;;  %s6190_s2 = inlined_call_operand.vmem [shape: f32[1,256], index: 2, kind: input, shape index: {}]   ;;  %s6191_s3 = inlined_call_operand.hbm [shape: bf16[256,256], index: 3, kind: input, shape index: {}]   ;;  %s6192_s4 = inlined_call_operand.vmem [shape: f32[1,256], index: 4, kind: input, shape index: {}]   ;;  %s6193_s5 = inlined_call_operand.hbm [shape: bf16[256,256], index: 5, kind: input, shape index: {}]   ;;  %s6194_s6 = inlined_call_operand.vmem [shape: f32[1,256], index: 6, kind: input, shape index: {}]   ;;  %s6195_s7 = inlined_call_operand.hbm [shape: bf16[256,256], index: 7, kind: input, shape index: {}]   ;;  %s6196_s8 = inlined_call_operand.vmem [shape: f32[1,256], index: 8, kind: input, shape index: {}]   ;;  %s6197_s9 = inlined_call_operand.hbm [shape: bf16[256,256], index: 9, kind: input, shape index: {}]   ;;  %s6198_s10 = inlined_call_operand.vmem [shape: f32[1,256], index: 10, kind: input, shape index: {}]   ;;  %s6199_s11 = inlined_call_operand.hbm [shape: bf16[256,256], index: 11, kind: input, shape index: {}]   ;;  %s6200_s12 = inlined_call_operand.vmem [shape: f32[1,256], index: 12, kind: input, shape index: {}]   ;;  %s6201_s13 = inlined_call_operand.hbm [shape: bf16[256,256], index: 13, kind: input, shape index: {}]   ;;  %s6202_s14 = inlined_call_operand.vmem [shape: f32[1,256], index: 14, kind: input, shape index: {}]   ;;  %s6203_s15 = inlined_call_operand.hbm [shape: bf16[256,256], index: 15, kind: input, shape index: {}]   ;;  %s6204_s16 = inlined_call_operand.vmem [shape: f32[1,256], index: 16, kind: input, shape index: {}]   ;;  %s6205_s17 = inlined_call_operand.hbm [shape: bf16[256,256], index: 17, kind: input, shape index: {}]   ;;  %s6206_s18 = inlined_call_operand.vmem [shape: f32[1,256], index: 18, kind: input, shape index: {}]   ;;  %s6207_s19 = inlined_call_operand.hbm [shape: bf16[256,256], index: 19, kind: input, shape index: {}]   ;;  %s6208_s20 = inlined_call_operand.vmem [shape: f32[1,256], index: 20, kind: input, shape index: {}]   ;;  %s6209_s21 = inlined_call_operand.hbm [shape: bf16[256,256], index: 21, kind: input, shape index: {}]   ;;  %s6210_s22 = inlined_call_operand.vmem [shape: f32[1,256], index: 22, kind: input, shape index: {}]   ;;  %s6211_s23 = inlined_call_operand.hbm [shape: bf16[256,256], index: 23, kind: input, shape index: {}]   ;;  %s6212_s24 = inlined_call_operand.vmem [shape: f32[1,256], index: 24, kind: input, shape index: {}]   ;;  %s6213_s25 = inlined_call_operand.hbm [shape: bf16[256,256], index: 25, kind: input, shape index: {}]   ;;  %s6214_s26 = inlined_call_operand.vmem [shape: f32[1,256], index: 26, kind: input, shape index: {}]   ;;  %s6215_s27 = inlined_call_operand.vmem [shape: f32[2,256], index: 27, kind: output, shape index: {}]  }
   0x1   :  { %6216 = sst [smem:[#allocation29_spill]] %s6188_s0 }
   0x2   :  { %6217 = sst [smem:[#allocation30_spill]] %s6189_s1 }
   0x3   :  { %6218 = sst [smem:[#allocation31_spill]] %s6190_s2 }
   0x4   :  { %6219 = sst [smem:[#allocation32_spill]] %s6191_s3 }
   0x5   :  { %6220 = sst [smem:[#allocation33_spill]] %s6192_s4 }
   0x6   :  { %6221 = sst [smem:[#allocation34_spill]] %s6193_s5 }
   0x7   :  { %6222 = sst [smem:[#allocation35_spill]] %s6194_s6 }
   0x8   :  { %6223 = sst [smem:[#allocation36_spill]] %s6195_s7 }
   0x9   :  { %6224 = sst [smem:[#allocation37_spill]] %s6196_s8 }
   0xa   :  { %6225 = sst [smem:[#allocation38_spill]] %s6197_s9 }
   0xb   :  { %6226 = sst [smem:[#allocation39_spill]] %s6198_s10 }
   0xc   :  { %6227 = sst [smem:[#allocation40_spill]] %s6199_s11 }
   0xd   :  { %6228 = sst [smem:[#allocation41_spill]] %s6215_s27 }
   0xe   :  { %32 = vsyncpa [#allocation3], 0 }
   0xf   :  { %33 = vsyncpa [#allocation5], 0 }
  0x10   :  { %34 = vsyncpa [#allocation8], 0 }
  0x11   :  { %35 = vsyncpa [#allocation11], 0 }
  0x12   :  { %36 = vsyncpa [#allocation14], 0 }
  0x13   :  { %37 = vsyncpa [#allocation17], 0 }
  0x14   :  { %38 = vsyncpa [#allocation20], 0  ;;  %s6229_s8 = sld [smem:[#allocation32_spill]]  ;;  %s5842_s9 = smov [#allocation4]  }
  0x15   :  { %s62_s5 = sshll.u32 %s5842_s9, 4  ;;  %s6230_s10 = sld [smem:[#allocation36_spill]]  ;;  %s63_s5 = int_to_ptr.vmem [resolvable:$true] %s62_s5 }
  0x16   :  { %s5843_s1 = smov 128   ;;  %s5844_s6 = smov 8  }
  0x17   :  { %s5845_s11 = smov [#allocation7]   ;;  %s6231_s4 = sld [smem:[#allocation40_spill]] }
  0x18   :  { %s92_s2 = sshll.u32 %s5845_s11, 4  ;;  %s150_s0 = sshll.u32 %s6203_s15, 4  ;;  %s93_s2 = int_to_ptr.vmem [resolvable:$true] %s92_s2  ;;  %s151_s0 = int_to_ptr.hbm [resolvable:$true] %s150_s0 }
  0x19   :  { %s180_s7 = sshll.u32 %s6207_s19, 4  ;;  %s5850_s3 = smov [#allocation2]   ;;  %s181_s7 = int_to_ptr.hbm [resolvable:$true] %s180_s7 }
  0x1a   :  { %s60_s30 = sshll.u32 %s6229_s8, 4  ;;  %s47_s15 = sshll.u32 %s5850_s3, 4  ;;  %s61_s30 = int_to_ptr.hbm [resolvable:$true] %s60_s30  ;;  %s48_s15 = int_to_ptr.vmem [resolvable:$true] %s47_s15 }
  0x1b   :  { %s90_s29 = sshll.u32 %s6230_s10, 4  ;;  %s5846_s10 = smov [#allocation10]   ;;  %s91_s29 = int_to_ptr.hbm [resolvable:$true] %s90_s29 }
  0x1c   :  { %68 = dma.hbm_to_vmem [thread:$0]  %s61_s30, 4096, %s63_s5, [#allocation5], %s5843_s1, %s5843_s1, %s5844_s6  }
  0x1d   :  { %s120_s8 = sshll.u32 %s6231_s4, 4  ;;  %s122_s27 = sshll.u32 %s5846_s10, 4  ;;  %s121_s8 = int_to_ptr.hbm [resolvable:$true] %s120_s8  ;;  %s123_s27 = int_to_ptr.vmem [resolvable:$true] %s122_s27 }
  0x1e   :  { %98 = dma.hbm_to_vmem [thread:$0]  %s91_s29, 4096, %s93_s2, [#allocation8], %s5843_s1, %s5843_s1, %s5844_s6  }
  0x1f   :  { %128 = dma.hbm_to_vmem [thread:$0]  %s121_s8, 4096, %s123_s27, [#allocation11], %s5843_s1, %s5843_s1, %s5844_s6  }
  0x20   :  { %s5847_s30 = smov [#allocation13]   ;;  %s210_s2 = sshll.u32 %s6211_s23, 4  ;;  %s211_s2 = int_to_ptr.hbm [resolvable:$true] %s210_s2 }
  0x21   :  { %s152_s5 = sshll.u32 %s5847_s30, 4  ;;  %s5848_s4 = smov [#allocation16]   ;;  %s153_s5 = int_to_ptr.vmem [resolvable:$true] %s152_s5 }
  0x22   :  { %158 = dma.hbm_to_vmem [thread:$0]  %s151_s0, 4096, %s153_s5, [#allocation14], %s5843_s1, %s5843_s1, %s5844_s6  }
  0x23   :  { %s182_s9 = sshll.u32 %s5848_s4, 4  ;;  %s5849_s27 = smov [#allocation19]   ;;  %s183_s9 = int_to_ptr.vmem [resolvable:$true] %s182_s9 }
  0x24   :  { %188 = dma.hbm_to_vmem [thread:$0]  %s181_s7, 4096, %s183_s9, [#allocation17], %s5843_s1, %s5843_s1, %s5844_s6  }
  0x25   :  { %s212_s19 = sshll.u32 %s5849_s27, 4  ;;  %s6232_s10 = sld [smem:[#allocation30_spill]]  ;;  %s213_s19 = int_to_ptr.vmem [resolvable:$true] %s212_s19 }
  0x26   :  { %218 = dma.hbm_to_vmem [thread:$0]  %s211_s2, 4096, %s213_s19, [#allocation20], %s5843_s1, %s5843_s1, %s5844_s6  }
  0x27   :  { %s6233_s5 = sld [smem:[#allocation34_spill]]  ;;  %s5851_s7 = smov [#allocation6]  }
  0x28   :  { %s77_s29 = sshll.u32 %s5851_s7, 4  ;;  %s6234_s27 = sld [smem:[#allocation38_spill]]  ;;  %s78_s29 = int_to_ptr.vmem [resolvable:$true] %s77_s29 }
  0x29   :  { %s135_s28 = sshll.u32 %s6201_s13, 4  ;;  %s195_s7 = sshll.u32 %s6209_s21, 4  ;;  %s136_s28 = int_to_ptr.hbm [resolvable:$true] %s135_s28  ;;  %s196_s7 = int_to_ptr.hbm [resolvable:$true] %s195_s7 }
  0x2a   :  { %s5855_s9 = smov [#allocation18]   ;;  %s225_s2 = sshll.u32 %s6213_s25, 4  ;;  %s226_s2 = int_to_ptr.hbm [resolvable:$true] %s225_s2 }
  0x2b   :  { %s45_s30 = sshll.u32 %s6232_s10, 4  ;;  %s5852_s10 = smov [#allocation9]   ;;  %s46_s30 = int_to_ptr.hbm [resolvable:$true] %s45_s30 }
  0x2c   :  { %53 = dma.hbm_to_vmem [thread:$0]  %s46_s30, 1536, %s48_s15, [#allocation3], %s5843_s1, %s5843_s1, %s5844_s6  }
  0x2d   :  { %s75_s11 = sshll.u32 %s6233_s5, 4  ;;  %s107_s23 = sshll.u32 %s5852_s10, 4  ;;  %s76_s11 = int_to_ptr.hbm [resolvable:$true] %s75_s11  ;;  %s108_s23 = int_to_ptr.vmem [resolvable:$true] %s107_s23 }
  0x2e   :  { %s105_s8 = sshll.u32 %s6234_s27, 4  ;;  %s5853_s30 = smov [#allocation12]   ;;  %s106_s8 = int_to_ptr.hbm [resolvable:$true] %s105_s8 }
  0x2f   :  { %83 = dma.hbm_to_vmem [thread:$0]  %s76_s11, 4096, %s78_s29, [#allocation5], %s5843_s1, %s5843_s1, %s5844_s6  }
  0x30   :  { %113 = dma.hbm_to_vmem [thread:$0]  %s106_s8, 4096, %s108_s23, [#allocation8], %s5843_s1, %s5843_s1, %s5844_s6  }
  0x31   :  { %s137_s0 = sshll.u32 %s5853_s30, 4  ;;  %s165_s15 = sshll.u32 %s6205_s17, 4  ;;  %s138_s0 = int_to_ptr.vmem [resolvable:$true] %s137_s0  ;;  %s166_s15 = int_to_ptr.hbm [resolvable:$true] %s165_s15 }
  0x32   :  { %143 = dma.hbm_to_vmem [thread:$0]  %s136_s28, 4096, %s138_s0, [#allocation11], %s5843_s1, %s5843_s1, %s5844_s6  }
  0x33   :  { %s5854_s29 = smov [#allocation15]   ;;  %s197_s17 = sshll.u32 %s5855_s9, 4  ;;  %s198_s17 = int_to_ptr.vmem [resolvable:$true] %s197_s17 }
  0x34   :  { %s167_s4 = sshll.u32 %s5854_s29, 4  ;;  %s5856_s21 = smov [#allocation21]   ;;  %s168_s4 = int_to_ptr.vmem [resolvable:$true] %s167_s4 }
  0x35   :  { %173 = dma.hbm_to_vmem [thread:$0]  %s166_s15, 4096, %s168_s4, [#allocation14], %s5843_s1, %s5843_s1, %s5844_s6  }
  0x36   :  { %203 = dma.hbm_to_vmem [thread:$0]  %s196_s7, 4096, %s198_s17, [#allocation17], %s5843_s1, %s5843_s1, %s5844_s6  }
  0x37   :  { %s227_s19 = sshll.u32 %s5856_s21, 4  ;;  %s228_s19 = int_to_ptr.vmem [resolvable:$true] %s227_s19 }
  0x38   :  { %233 = dma.hbm_to_vmem [thread:$0]  %s226_s2, 4096, %s228_s19, [#allocation20], %s5843_s1, %s5843_s1, %s5844_s6  }
  0x39   :  { %5828 = dma.done.wait [#allocation3], 1536  }
  0x3a   :  { %5829 = vsyncadd [#allocation3], 4294965760 }
  0x3b   :  { %5830 = dma.done.wait [#allocation5], 8192  }
  0x3c   :  { %5831 = vsyncadd [#allocation5], 4294959104 }
  0x3d   :  { %5832 = dma.done.wait [#allocation8], 8192  }
  0x3e   :  { %5833 = vsyncadd [#allocation8], 4294959104 }
  0x3f   :  { %5834 = dma.done.wait [#allocation11], 8192  }
  0x40   :  { %5835 = vsyncadd [#allocation11], 4294959104 }
  0x41   :  { %5836 = dma.done.wait [#allocation14], 8192  }
  0x42   :  { %5837 = vsyncadd [#allocation14], 4294959104 }
  0x43   :  { %5838 = dma.done.wait [#allocation17], 8192  }
  0x44   :  { %5839 = vsyncadd [#allocation17], 4294959104 }
  0x45   :  { %5840 = dma.done.wait [#allocation20], 8192  }
  0x46   :  { %5841 = vsyncadd [#allocation20], 4294959104  ;;  %v3561_v0 = vld [vmem:[#allocation2 + $0x50] sm:$0xf]  ;;  %v5116_v1 = vld [vmem:[#allocation2 + $0x54] sm:$0xf0] }
  0x47   :  { %v5115_v2 = vld [vmem:[#allocation2 + $0x54] sm:$0xf]  ;;  %v3562_v3 = vor.u32 %v5116_v1, %v3561_v0  ;;  %v3563_v4 = vld [vmem:[#allocation2 + $0x58] sm:$0xf0]  ;;  %v3553_v5 = vld [vmem:[#allocation2 + $0x40] sm:$0xf] }
  0x48   :  { %v5114_v6 = vld [vmem:[#allocation2 + $0x44] sm:$0xf0]  ;;  %v3566_v7 = vor.u32 %v5115_v2, %v3563_v4  ;;  %v5113_v8 = vld [vmem:[#allocation2 + $0x44] sm:$0xf]  ;;  %v3555_v9 = vld [vmem:[#allocation2 + $0x48] sm:$0xf0] }
  0x49   :  { %375 = vmatpush.bf16.msra.mxu0 %v3562_v3  ;;  %v3554_v10 = vor.u32 %v5114_v6, %v3553_v5  ;;  %v3558_v11 = vor.u32 %v5113_v8, %v3555_v9  ;;  %v3545_v12 = vld [vmem:[#allocation2 + $0x30] sm:$0xf]  ;;  %v5112_v13 = vld [vmem:[#allocation2 + $0x34] sm:$0xf0]  ;;  %v5111_v14 = vld [vmem:[#allocation2 + $0x34] sm:$0xf] }
  0x4a   :  { %388 = vmatpush.bf16.msra.mxu1 %v3566_v7  ;;  %v3547_v15 = vld [vmem:[#allocation2 + $0x38] sm:$0xf0]  ;;  %v3546_v16 = vor.u32 %v5112_v13, %v3545_v12  ;;  %v3537_v17 = vld [vmem:[#allocation2 + $0x20] sm:$0xf]  ;;  %v5110_v18 = vld [vmem:[#allocation2 + $0x24] sm:$0xf0] }
  0x4b   :  { %v3550_v19 = vor.u32 %v5111_v14, %v3547_v15  ;;  %v5109_v20 = vld [vmem:[#allocation2 + $0x24] sm:$0xf]  ;;  %v3627_v21 = vld [vmem:[#allocation4 + $0x70] sm:$0xf]  ;;  %v5132_v22 = vld [vmem:[#allocation4 + $0x74] sm:$0xf0]  ;;  %v3538_v28 = vor.u32 %v5110_v18, %v3537_v17 }
  0x4c   :  { %v3539_v23 = vld [vmem:[#allocation2 + $0x28] sm:$0xf0]  ;;  %v3628_v24 = vor.u32 %v5132_v22, %v3627_v21  ;;  %v3691_v25 = vld [vmem:[#allocation4 + $0xf0] sm:$0xf]  ;;  %v5148_v26 = vld [vmem:[#allocation4 + $0xf4] sm:$0xf0] }
  0x4d   :  { %376 = vmatpush.bf16.msra.mxu0 %v3554_v10  ;;  %v3692_v27 = vor.u32 %v5148_v26, %v3691_v25  ;;  %v3619_v29 = vld [vmem:[#allocation4 + $0x60] sm:$0xf]  ;;  %v5130_v30 = vld [vmem:[#allocation4 + $0x64] sm:$0xf0]  ;;  %v3542_v32 = vor.u32 %v5109_v20, %v3539_v23  ;;  %v3529_v33 = vld [vmem:[#allocation2 + $0x10] sm:$0xf] }
  0x4e   :  { %389 = vmatpush.bf16.msra.mxu1 %v3558_v11  ;;  %605 = vmatpush.bf16.msra.mxu2 %v3628_v24  ;;  %v3683_v31 = vld [vmem:[#allocation4 + $0xe0] sm:$0xf]  ;;  %v5108_v34 = vld [vmem:[#allocation2 + $0x14] sm:$0xf0]  ;;  %v3620_v35 = vor.u32 %v5130_v30, %v3619_v29  ;;  %v5146_v36 = vld [vmem:[#allocation4 + $0xe4] sm:$0xf0] }
  0x4f   :  { %618 = vmatpush.bf16.msra.mxu3 %v3692_v27  ;;  %v5107_v37 = vld [vmem:[#allocation2 + $0x14] sm:$0xf]  ;;  %v3531_v38 = vld [vmem:[#allocation2 + $0x18] sm:$0xf0]  ;;  %v3684_v39 = vor.u32 %v5146_v36, %v3683_v31  ;;  %v3611_v40 = vld [vmem:[#allocation4 + $0x50] sm:$0xf]  ;;  %v3530_v44 = vor.u32 %v5108_v34, %v3529_v33 }
  0x50   :  { %v5128_v41 = vld [vmem:[#allocation4 + $0x54] sm:$0xf0]  ;;  %v3675_v42 = vld [vmem:[#allocation4 + $0xd0] sm:$0xf]  ;;  %v3521_v45 = vld [vmem:[#allocation2] sm:$0xf]  ;;  %v3534_v49 = vor.u32 %v5107_v37, %v3531_v38 }
  0x51   :  { %377 = vmatpush.bf16.msra.mxu0 %v3546_v16  ;;  %v5144_v43 = vld [vmem:[#allocation4 + $0xd4] sm:$0xf0]  ;;  %v5106_v46 = vld [vmem:[#allocation2 + $0x4] sm:$0xf0]  ;;  %v5105_v47 = vld [vmem:[#allocation2 + $0x4] sm:$0xf]  ;;  %v3612_v48 = vor.u32 %v5128_v41, %v3611_v40 }
  0x52   :  { %390 = vmatpush.bf16.msra.mxu1 %v3550_v19  ;;  %606 = vmatpush.bf16.msra.mxu2 %v3620_v35  ;;  %v3523_v50 = vld [vmem:[#allocation2 + $0x8] sm:$0xf0]  ;;  %v3676_v51 = vor.u32 %v5144_v43, %v3675_v42  ;;  %v3603_v52 = vld [vmem:[#allocation4 + $0x40] sm:$0xf]  ;;  %v5126_v53 = vld [vmem:[#allocation4 + $0x44] sm:$0xf0]  ;;  %v3522_v60 = vor.u32 %v5106_v46, %v3521_v45 }
  0x53   :  { %619 = vmatpush.bf16.msra.mxu3 %v3684_v39  ;;  %v5131_v54 = vld [vmem:[#allocation4 + $0x74] sm:$0xf]  ;;  %v3629_v55 = vld [vmem:[#allocation4 + $0x78] sm:$0xf0]  ;;  %v3667_v58 = vld [vmem:[#allocation4 + $0xc0] sm:$0xf]  ;;  %v3604_v62 = vor.u32 %v5126_v53, %v3603_v52  ;;  %v3526_v63 = vor.u32 %v5105_v47, %v3523_v50 }
  0x54   :  { %v5147_v56 = vld [vmem:[#allocation4 + $0xf4] sm:$0xf]  ;;  %v3693_v57 = vld [vmem:[#allocation4 + $0xf8] sm:$0xf0]  ;;  %v5142_v59 = vld [vmem:[#allocation4 + $0xc4] sm:$0xf0]  ;;  %v3632_v0 = vor.u32 %v5131_v54, %v3629_v55 }
  0x55   :  { %378 = vmatpush.bf16.msra.mxu0 %v3538_v28  ;;  %s6235_s6 = sld [smem:[#allocation29_spill]]  ;;  %v3595_v1 = vld [vmem:[#allocation4 + $0x30] sm:$0xf]  ;;  %v5124_v2 = vld [vmem:[#allocation4 + $0x34] sm:$0xf0]  ;;  %v3696_v3 = vor.u32 %v5147_v56, %v3693_v57  ;;  %v3668_v7 = vor.u32 %v5142_v59, %v3667_v58  ;;  %vm369_vm0 = vcmask 785408  }
  0x56   :  { %391 = vmatpush.bf16.msra.mxu1 %v3542_v32  ;;  %607 = vmatpush.bf16.msra.mxu2 %v3612_v48  ;;  %v5129_v4 = vld [vmem:[#allocation4 + $0x64] sm:$0xf]  ;;  %v3621_v5 = vld [vmem:[#allocation4 + $0x68] sm:$0xf0]  ;;  %v3659_v10 = vld [vmem:[#allocation4 + $0xb0] sm:$0xf]  ;;  %v3596_v12 = vor.u32 %v5124_v2, %v3595_v1 }
  0x57   :  { %620 = vmatpush.bf16.msra.mxu3 %v3676_v51  ;;  %v5145_v6 = vld [vmem:[#allocation4 + $0xe4] sm:$0xf]  ;;  %v3685_v9 = vld [vmem:[#allocation4 + $0xe8] sm:$0xf0]  ;;  %v5140_v11 = vld [vmem:[#allocation4 + $0xb4] sm:$0xf0]  ;;  %v3624_v13 = vor.u32 %v5129_v4, %v3621_v5 }
  0x58   :  { %v3587_v14 = vld [vmem:[#allocation4 + $0x20] sm:$0xf]  ;;  %v5122_v15 = vld [vmem:[#allocation4 + $0x24] sm:$0xf0]  ;;  %v3688_v16 = vor.u32 %v5145_v6, %v3685_v9  ;;  %v5127_v17 = vld [vmem:[#allocation4 + $0x54] sm:$0xf]  ;;  %v3660_v20 = vor.u32 %v5140_v11, %v3659_v10 }
  0x59   :  { %379 = vmatpush.bf16.msra.mxu0 %v3530_v44  ;;  %v3613_v18 = vld [vmem:[#allocation4 + $0x58] sm:$0xf0]  ;;  %v5143_v19 = vld [vmem:[#allocation4 + $0xd4] sm:$0xf]  ;;  %v3651_v22 = vld [vmem:[#allocation4 + $0xa0] sm:$0xf]  ;;  %v3588_v24 = vor.u32 %v5122_v15, %v3587_v14 }
  0x5a   :  { %392 = vmatpush.bf16.msra.mxu1 %v3534_v49  ;;  %608 = vmatpush.bf16.msra.mxu2 %v3604_v62  ;;  %v3677_v21 = vld [vmem:[#allocation4 + $0xd8] sm:$0xf0]  ;;  %v5138_v23 = vld [vmem:[#allocation4 + $0xa4] sm:$0xf0]  ;;  %v3616_v25 = vor.u32 %v5127_v17, %v3613_v18  ;;  %v5125_v27 = vld [vmem:[#allocation4 + $0x44] sm:$0xf] }
  0x5b   :  { %v289_v61 = vld [vmem:[%s6235_s6] sm:$0x3]  ;;  %621 = vmatpush.bf16.msra.mxu3 %v3668_v7  ;;  %v3680_v26 = vor.u32 %v5143_v19, %v3677_v21  ;;  %v3605_v28 = vld [vmem:[#allocation4 + $0x48] sm:$0xf0]  ;;  %v3652_v29 = vor.u32 %v5138_v23, %v3651_v22  ;;  %v5141_v30 = vld [vmem:[#allocation4 + $0xc4] sm:$0xf] }
  0x5c   :  { %v303_v8 = vpack.c.bf16 %v289_v61, %v289_v61  ;;  %v3669_v31 = vld [vmem:[#allocation4 + $0xc8] sm:$0xf0]  ;;  %v3608_v32 = vor.u32 %v5125_v27, %v3605_v28  ;;  %v5123_v34 = vld [vmem:[#allocation4 + $0x34] sm:$0xf]  ;;  %v3597_v35 = vld [vmem:[#allocation4 + $0x38] sm:$0xf0] }
  0x5d   :  { %380 = vmatpush.bf16.msra.mxu0 %v3522_v60  ;;  %v3672_v33 = vor.u32 %v5141_v30, %v3669_v31  ;;  %v5139_v36 = vld [vmem:[#allocation4 + $0xb4] sm:$0xf]  ;;  %v3661_v37 = vld [vmem:[#allocation4 + $0xb8] sm:$0xf0]  ;;  %v3600_v38 = vor.u32 %v5123_v34, %v3597_v35  ;;  %v5121_v40 = vld [vmem:[#allocation4 + $0x24] sm:$0xf] }
  0x5e   :  { %393 = vmatpush.bf16.msra.mxu1 %v3526_v63  ;;  %609 = vmatpush.bf16.msra.mxu2 %v3596_v12  ;;  %v3664_v39 = vor.u32 %v5139_v36, %v3661_v37  ;;  %v3589_v41 = vld [vmem:[#allocation4 + $0x28] sm:$0xf0]  ;;  %v5137_v42 = vld [vmem:[#allocation4 + $0xa4] sm:$0xf]  ;;  %v3579_v46 = vld [vmem:[#allocation4 + $0x10] sm:$0xf] }
  0x5f   :  { %622 = vmatpush.bf16.msra.mxu3 %v3660_v20  ;;  %v3653_v43 = vld [vmem:[#allocation4 + $0xa8] sm:$0xf0]  ;;  %v3592_v44 = vor.u32 %v5121_v40, %v3589_v41  ;;  %v5120_v47 = vld [vmem:[#allocation4 + $0x14] sm:$0xf0]  ;;  %v3643_v48 = vld [vmem:[#allocation4 + $0x90] sm:$0xf] }
  0x60   :  { %3567 = vmatmul.msk.bf16.vlgmr.msra.gmra.mxu0 %vm369_vm0, %v303_v8  ;;  %v3656_v45 = vor.u32 %v5137_v42, %v3653_v43  ;;  %v3580_v49 = vor.u32 %v5120_v47, %v3579_v46  ;;  %v5136_v50 = vld [vmem:[#allocation4 + $0x94] sm:$0xf0]  ;;  %v5119_v51 = vld [vmem:[#allocation4 + $0x14] sm:$0xf]  ;;  %v3581_v53 = vld [vmem:[#allocation4 + $0x18] sm:$0xf0] }
  0x61   :  { %631 = vmatpush.bf16.msrb.mxu0 %v3632_v0  ;;  %3568 = vmatmul.msk.bf16.vlgmr.msra.gmra.mxu1 %vm369_vm0, %v303_v8  ;;  %v3644_v52 = vor.u32 %v5136_v50, %v3643_v48  ;;  %v5135_v54 = vld [vmem:[#allocation4 + $0x94] sm:$0xf]  ;;  %v3645_v55 = vld [vmem:[#allocation4 + $0x98] sm:$0xf0]  ;;  %v3584_v56 = vor.u32 %v5119_v51, %v3581_v53  ;;  %v3571_v58 = vld [vmem:[#allocation4] sm:$0xf] }
  0x62   :  { %644 = vmatpush.bf16.msrb.mxu1 %v3696_v3  ;;  %610 = vmatpush.bf16.msra.mxu2 %v3588_v24  ;;  %v3648_v57 = vor.u32 %v5135_v54, %v3645_v55  ;;  %v5118_v59 = vld [vmem:[#allocation4 + $0x4] sm:$0xf0]  ;;  %v3635_v60 = vld [vmem:[#allocation4 + $0x80] sm:$0xf]  ;;  %v5117_v63 = vld [vmem:[#allocation4 + $0x4] sm:$0xf] }
  0x63   :  { %623 = vmatpush.bf16.msra.mxu3 %v3652_v29  ;;  %v3572_v61 = vor.u32 %v5118_v59, %v3571_v58  ;;  %v5134_v62 = vld [vmem:[#allocation4 + $0x84] sm:$0xf0]  ;;  %v3573_v0 = vld [vmem:[#allocation4 + $0x8] sm:$0xf0]  ;;  %v5133_v3 = vld [vmem:[#allocation4 + $0x84] sm:$0xf] }
  0x64   :  { %v3636_v1 = vor.u32 %v5134_v62, %v3635_v60  ;;  %v3576_v2 = vor.u32 %v5117_v63, %v3573_v0  ;;  %v3637_v4 = vld [vmem:[#allocation4 + $0x88] sm:$0xf0]  ;;  %v3819_v6 = vld [vmem:[#allocation6 + $0xf0] sm:$0xf]  ;;  %v5180_v7 = vld [vmem:[#allocation6 + $0xf4] sm:$0xf0] }
  0x65   :  { %632 = vmatpush.bf16.msrb.mxu0 %v3624_v13  ;;  %v3640_v5 = vor.u32 %v5133_v3, %v3637_v4  ;;  %v5179_v8 = vld [vmem:[#allocation6 + $0xf4] sm:$0xf]  ;;  %v3820_v9 = vor.u32 %v5180_v7, %v3819_v6  ;;  %v3821_v10 = vld [vmem:[#allocation6 + $0xf8] sm:$0xf0]  ;;  %v3811_v11 = vld [vmem:[#allocation6 + $0xe0] sm:$0xf] }
  0x66   :  { %645 = vmatpush.bf16.msrb.mxu1 %v3688_v16  ;;  %611 = vmatpush.bf16.msra.mxu2 %v3580_v49  ;;  %v5178_v12 = vld [vmem:[#allocation6 + $0xe4] sm:$0xf0]  ;;  %v3824_v13 = vor.u32 %v5179_v8, %v3821_v10  ;;  %v5177_v14 = vld [vmem:[#allocation6 + $0xe4] sm:$0xf]  ;;  %v3813_v15 = vld [vmem:[#allocation6 + $0xe8] sm:$0xf0] }
  0x67   :  { %624 = vmatpush.bf16.msra.mxu3 %v3644_v52  ;;  %v3755_v16 = vld [vmem:[#allocation6 + $0x70] sm:$0xf]  ;;  %v3812_v17 = vor.u32 %v5178_v12, %v3811_v11  ;;  %v5164_v18 = vld [vmem:[#allocation6 + $0x74] sm:$0xf0]  ;;  %v5163_v19 = vld [vmem:[#allocation6 + $0x74] sm:$0xf]  ;;  %v3816_v21 = vor.u32 %v5177_v14, %v3813_v15 }
  0x68   :  { %v3757_v20 = vld [vmem:[#allocation6 + $0x78] sm:$0xf0]  ;;  %v3756_v22 = vor.u32 %v5164_v18, %v3755_v16  ;;  %v3803_v24 = vld [vmem:[#allocation6 + $0xd0] sm:$0xf]  ;;  %v3747_v28 = vld [vmem:[#allocation6 + $0x60] sm:$0xf] }
  0x69   :  { %633 = vmatpush.bf16.msrb.mxu0 %v3616_v25  ;;  %v3760_v23 = vor.u32 %v5163_v19, %v3757_v20  ;;  %v5176_v25 = vld [vmem:[#allocation6 + $0xd4] sm:$0xf0]  ;;  %v3805_v27 = vld [vmem:[#allocation6 + $0xd8] sm:$0xf0]  ;;  %v5162_v29 = vld [vmem:[#allocation6 + $0x64] sm:$0xf0] }
  0x6a   :  { %646 = vmatpush.bf16.msrb.mxu1 %v3680_v26  ;;  %612 = vmatpush.bf16.msra.mxu2 %v3572_v61  ;;  %v5175_v26 = vld [vmem:[#allocation6 + $0xd4] sm:$0xf]  ;;  %v3748_v30 = vor.u32 %v5162_v29, %v3747_v28  ;;  %v5161_v31 = vld [vmem:[#allocation6 + $0x64] sm:$0xf]  ;;  %v3795_v35 = vld [vmem:[#allocation6 + $0xc0] sm:$0xf] }
  0x6b   :  { %625 = vmatpush.bf16.msra.mxu3 %v3636_v1  ;;  %v5174_v36 = vld [vmem:[#allocation6 + $0xc4] sm:$0xf0]  ;;  %v3808_v37 = vor.u32 %v5175_v26, %v3805_v27  ;;  %v5159_v40 = vld [vmem:[#allocation6 + $0x54] sm:$0xf]  ;;  %v5173_v41 = vld [vmem:[#allocation6 + $0xc4] sm:$0xf] }
  0x6c   :  { %v3797_v42 = vld [vmem:[#allocation6 + $0xc8] sm:$0xf0]  ;;  %v3741_v43 = vld [vmem:[#allocation6 + $0x58] sm:$0xf0]  ;;  %v3731_v46 = vld [vmem:[#allocation6 + $0x40] sm:$0xf]  ;;  %v3796_v47 = vor.u32 %v5174_v36, %v3795_v35 }
  0x6d   :  { %634 = vmatpush.bf16.msrb.mxu0 %v3608_v32  ;;  %v3749_v32 = vld [vmem:[#allocation6 + $0x68] sm:$0xf0]  ;;  %v5158_v48 = vld [vmem:[#allocation6 + $0x44] sm:$0xf0]  ;;  %v5157_v49 = vld [vmem:[#allocation6 + $0x44] sm:$0xf]  ;;  %v3800_v51 = vor.u32 %v5173_v41, %v3797_v42 }
  0x6e   :  { %647 = vmatpush.bf16.msrb.mxu1 %v3672_v33  ;;  %865 = vmatpush.bf16.msrb.mxu2 %v3756_v22  ;;  %v3804_v33 = vor.u32 %v5176_v25, %v3803_v24  ;;  %v3752_v34 = vor.u32 %v5161_v31, %v3749_v32  ;;  %v3733_v50 = vld [vmem:[#allocation6 + $0x48] sm:$0xf0]  ;;  %v3787_v52 = vld [vmem:[#allocation6 + $0xb0] sm:$0xf]  ;;  %v5172_v53 = vld [vmem:[#allocation6 + $0xb4] sm:$0xf0] }
  0x6f   :  { %878 = vmatpush.bf16.msrb.mxu3 %v3820_v9  ;;  %v5171_v54 = vld [vmem:[#allocation6 + $0xb4] sm:$0xf]  ;;  %v3789_v55 = vld [vmem:[#allocation6 + $0xb8] sm:$0xf0]  ;;  %v3788_v58 = vor.u32 %v5172_v53, %v3787_v52  ;;  %s6236_s23 = sld [smem:[#allocation31_spill]] }
  0x70   :  { %v3792_v59 = vor.u32 %v5171_v54, %v3789_v55  ;;  %v3779_v11 = vld [vmem:[#allocation6 + $0xa0] sm:$0xf]  ;;  %v5170_v12 = vld [vmem:[#allocation6 + $0xa4] sm:$0xf0]  ;;  %v3781_v15 = vld [vmem:[#allocation6 + $0xa8] sm:$0xf0] }
  0x71   :  { %635 = vmatpush.bf16.msrb.mxu0 %v3600_v38  ;;  %v3739_v38 = vld [vmem:[#allocation6 + $0x50] sm:$0xf]  ;;  %v3780_v14 = vor.u32 %v5170_v12, %v3779_v11  ;;  %v5156_v18 = vld [vmem:[#allocation6 + $0x34] sm:$0xf0]  ;;  %v5155_v19 = vld [vmem:[#allocation6 + $0x34] sm:$0xf] }
  0x72   :  { %648 = vmatpush.bf16.msrb.mxu1 %v3664_v39  ;;  %v5160_v39 = vld [vmem:[#allocation6 + $0x54] sm:$0xf0]  ;;  %866 = vmatpush.bf16.msrb.mxu2 %v3748_v30  ;;  %v5167_v25 = vld [vmem:[#allocation6 + $0x94] sm:$0xf]  ;;  %v3773_v27 = vld [vmem:[#allocation6 + $0x98] sm:$0xf0] }
  0x73   :  { %879 = vmatpush.bf16.msrb.mxu3 %v3812_v17  ;;  %v3723_v17 = vld [vmem:[#allocation6 + $0x30] sm:$0xf]  ;;  %v5168_v24 = vld [vmem:[#allocation6 + $0x94] sm:$0xf0]  ;;  %v3776_v28 = vor.u32 %v5167_v25, %v3773_v27  ;;  %v3715_v29 = vld [vmem:[#allocation6 + $0x20] sm:$0xf] }
  0x74   :  { %v3724_v20 = vor.u32 %v5156_v18, %v3723_v17  ;;  %v5154_v30 = vld [vmem:[#allocation6 + $0x24] sm:$0xf0]  ;;  %v5153_v31 = vld [vmem:[#allocation6 + $0x24] sm:$0xf]  ;;  %v3763_v35 = vld [vmem:[#allocation6 + $0x80] sm:$0xf] }
  0x75   :  { %636 = vmatpush.bf16.msrb.mxu0 %v3592_v44  ;;  %v3740_v44 = vor.u32 %v5160_v39, %v3739_v38  ;;  %v302_v60 = vld [vmem:[%s6236_s23] sm:$0x3]  ;;  %v3716_v32 = vor.u32 %v5154_v30, %v3715_v29  ;;  %v5166_v36 = vld [vmem:[#allocation6 + $0x84] sm:$0xf0]  ;;  %v3765_v39 = vld [vmem:[#allocation6 + $0x88] sm:$0xf0] }
  0x76   :  { %649 = vmatpush.bf16.msrb.mxu1 %v3656_v45  ;;  %v3744_v45 = vor.u32 %v5159_v40, %v3741_v43  ;;  %v305_v61 = vperm.slane %v302_v60, 0  ;;  %v306_v62 = vperm.slane %v302_v60, 1  ;;  %v3764_v38 = vor.u32 %v5166_v36, %v3763_v35  ;;  %v3707_v41 = vld [vmem:[#allocation6 + $0x10] sm:$0xf]  ;;  %v5152_v42 = vld [vmem:[#allocation6 + $0x14] sm:$0xf0] }
  0x77   :  { %880 = vmatpush.bf16.msrb.mxu3 %v3804_v33  ;;  %867 = vmatpush.bf16.msrb.mxu2 %v3740_v44  ;;  %v3717_v33 = vld [vmem:[#allocation6 + $0x28] sm:$0xf0]  ;;  %v5151_v43 = vld [vmem:[#allocation6 + $0x14] sm:$0xf]  ;;  %v3708_v44 = vor.u32 %v5152_v42, %v3707_v41  ;;  %v3947_v53 = vld [vmem:[#allocation7 + $0xf0] sm:$0xf] }
  0x78   :  { %v5212_v54 = vld [vmem:[#allocation7 + $0xf4] sm:$0xf0]  ;;  %v5211_v55 = vld [vmem:[#allocation7 + $0xf4] sm:$0xf]  ;;  %v3933_v12 = vld [vmem:[#allocation7 + $0xd8] sm:$0xf0] }
  0x79   :  { %637 = vmatpush.bf16.msrb.mxu0 %v3584_v56  ;;  %v3732_v56 = vor.u32 %v5158_v48, %v3731_v46  ;;  %v5150_v48 = vld [vmem:[#allocation6 + $0x4] sm:$0xf0]  ;;  %v5207_v11 = vld [vmem:[#allocation7 + $0xd4] sm:$0xf]  ;;  %v3877_v17 = vld [vmem:[#allocation7 + $0x68] sm:$0xf0] }
  0x7a   :  { %650 = vmatpush.bf16.msrb.mxu1 %v3648_v57  ;;  %v3736_v57 = vor.u32 %v5157_v49, %v3733_v50  ;;  %v5149_v49 = vld [vmem:[#allocation6 + $0x4] sm:$0xf]  ;;  %s6237_s5 = sld [smem:[#allocation33_spill]]  ;;  %v3925_v25 = vld [vmem:[#allocation7 + $0xc8] sm:$0xf0] }
  0x7b   :  { %881 = vmatpush.bf16.msrb.mxu3 %v3796_v47  ;;  %868 = vmatpush.bf16.msrb.mxu2 %v3732_v56  ;;  %v3699_v47 = vld [vmem:[#allocation6] sm:$0xf]  ;;  %v3948_v56 = vor.u32 %v5212_v54, %v3947_v53  ;;  %v3869_v54 = vld [vmem:[#allocation7 + $0x58] sm:$0xf0]  ;;  %s6238_s13 = sld [smem:[#allocation35_spill]] }
  0x7c   :  { %v3700_v50 = vor.u32 %v5150_v48, %v3699_v47  ;;  %s6239_s29 = sld [smem:[#allocation37_spill]] }
  0x7d   :  { %638 = vmatpush.bf16.msrb.mxu0 %v3576_v2  ;;  %s6240_s17 = sld [smem:[#allocation39_spill]] }
  0x7e   :  { %651 = vmatpush.bf16.msrb.mxu1 %v3640_v5  ;;  %s6241_s30 = sld [smem:[#allocation41_spill]] }
  0x7f   :  { %882 = vmatpush.bf16.msrb.mxu3 %v3788_v58  ;;  %869 = vmatpush.bf16.msrb.mxu2 %v3724_v20  ;;  %v3939_v58 = vld [vmem:[#allocation7 + $0xe0] sm:$0xf] }
  0x80   :  { %v437_v20 = vld [vmem:[%s6237_s5] sm:$0x3] }
  0x81   :  { %891 = vmatpush.bf16.msra.mxu0 %v3760_v23  ;;  %v3771_v23 = vld [vmem:[#allocation6 + $0x90] sm:$0xf] }
  0x82   :  { %904 = vmatpush.bf16.msra.mxu1 %v3824_v13  ;;  %v5169_v13 = vld [vmem:[#allocation6 + $0xa4] sm:$0xf]  ;;  %v3772_v26 = vor.u32 %v5168_v24, %v3771_v23  ;;  %v5206_v23 = vld [vmem:[#allocation7 + $0xc4] sm:$0xf0] }
  0x83   :  { %v3784_v16 = vor.u32 %v5169_v13, %v3781_v15  ;;  %883 = vmatpush.bf16.msrb.mxu3 %v3780_v14  ;;  %870 = vmatpush.bf16.msrb.mxu2 %v3716_v32  ;;  %v3875_v13 = vld [vmem:[#allocation7 + $0x60] sm:$0xf]  ;;  %v5194_v14 = vld [vmem:[#allocation7 + $0x64] sm:$0xf0]  ;;  %v5205_v24 = vld [vmem:[#allocation7 + $0xc4] sm:$0xf] }
  0x84   :  { %v3876_v15 = vor.u32 %v5194_v14, %v3875_v13  ;;  %v5188_v13 = vld [vmem:[#allocation7 + $0x34] sm:$0xf0]  ;;  %v5187_v14 = vld [vmem:[#allocation7 + $0x34] sm:$0xf] }
  0x85   :  { %892 = vmatpush.bf16.msra.mxu0 %v3752_v34  ;;  %v3720_v34 = vor.u32 %v5153_v31, %v3717_v33  ;;  %v441_v33 = vperm.slane %v437_v20, 0 }
  0x86   :  { %905 = vmatpush.bf16.msra.mxu1 %v3816_v21  ;;  %v3725_v21 = vld [vmem:[#allocation6 + $0x38] sm:$0xf0] }
  0x87   :  { %v3728_v22 = vor.u32 %v5155_v19, %v3725_v21  ;;  %884 = vmatpush.bf16.msrb.mxu3 %v3772_v26  ;;  %871 = vmatpush.bf16.msrb.mxu2 %v3708_v44  ;;  %v3936_v21 = vor.u32 %v5207_v11, %v3933_v12  ;;  %v442_v26 = vperm.slane %v437_v20, 1  ;;  %v3851_v12 = vld [vmem:[#allocation7 + $0x30] sm:$0xf]  ;;  %v5199_v20 = vld [vmem:[#allocation7 + $0x94] sm:$0xf] }
  0x89   :  { %893 = vmatpush.bf16.msra.mxu0 %v3744_v45  ;;  %v3709_v45 = vld [vmem:[#allocation6 + $0x18] sm:$0xf0] }
  0x8a   :  { %906 = vmatpush.bf16.msra.mxu1 %v3808_v37  ;;  %v5165_v37 = vld [vmem:[#allocation6 + $0x84] sm:$0xf]  ;;  %v3712_v46 = vor.u32 %v5151_v43, %v3709_v45 }
  0x8b   :  { %v3768_v40 = vor.u32 %v5165_v37, %v3765_v39  ;;  %885 = vmatpush.bf16.msrb.mxu3 %v3764_v38  ;;  %872 = vmatpush.bf16.msrb.mxu2 %v3700_v50  ;;  %v3867_v50 = vld [vmem:[#allocation7 + $0x50] sm:$0xf] }
  0x8d   :  { %894 = vmatpush.bf16.msra.mxu0 %v3736_v57  ;;  %v3949_v57 = vld [vmem:[#allocation7 + $0xf8] sm:$0xf0] }
  0x8e   :  { %907 = vmatpush.bf16.msra.mxu1 %v3800_v51  ;;  %v3701_v51 = vld [vmem:[#allocation6 + $0x8] sm:$0xf0]  ;;  %v3952_v60 = vor.u32 %v5211_v55, %v3949_v57  ;;  %v3915_v55 = vld [vmem:[#allocation7 + $0xb0] sm:$0xf] }
  0x8f   :  { %v3704_v52 = vor.u32 %v5149_v49, %v3701_v51  ;;  %v5192_v51 = vld [vmem:[#allocation7 + $0x54] sm:$0xf0] }
  0x90   :  { %v3868_v53 = vor.u32 %v5192_v51, %v3867_v50  ;;  %v4075_v50 = vld [vmem:[#allocation9 + $0xf0] sm:$0xf]  ;;  %v5244_v51 = vld [vmem:[#allocation9 + $0xf4] sm:$0xf0] }
  0x91   :  { %895 = vmatpush.bf16.msra.mxu0 %v3728_v22  ;;  %v3923_v22 = vld [vmem:[#allocation7 + $0xc0] sm:$0xf] }
  0x92   :  { %908 = vmatpush.bf16.msra.mxu1 %v3792_v59  ;;  %v5210_v59 = vld [vmem:[#allocation7 + $0xe4] sm:$0xf0]  ;;  %v3924_v27 = vor.u32 %v5206_v23, %v3923_v22  ;;  %v3901_v22 = vld [vmem:[#allocation7 + $0x98] sm:$0xf0] }
  0x93   :  { %v3904_v23 = vor.u32 %v5199_v20, %v3901_v22  ;;  %v4051_v20 = vld [vmem:[#allocation9 + $0xc0] sm:$0xf]  ;;  %v5237_v22 = vld [vmem:[#allocation9 + $0xc4] sm:$0xf] }
  0x95   :  { %896 = vmatpush.bf16.msra.mxu0 %v3720_v34 }
  0x96   :  { %909 = vmatpush.bf16.msra.mxu1 %v3784_v16  ;;  %v5193_v16 = vld [vmem:[#allocation7 + $0x64] sm:$0xf] }
  0x97   :  { %v3880_v19 = vor.u32 %v5193_v16, %v3877_v17  ;;  %v3853_v16 = vld [vmem:[#allocation7 + $0x38] sm:$0xf0] }
  0x98   :  { %v3856_v17 = vor.u32 %v5187_v14, %v3853_v16  ;;  %v4005_v14 = vld [vmem:[#allocation9 + $0x68] sm:$0xf0] }
  0x99   :  { %897 = vmatpush.bf16.msra.mxu0 %v3712_v46 }
  0x9a   :  { %910 = vmatpush.bf16.msra.mxu1 %v3776_v28  ;;  %v3928_v28 = vor.u32 %v5205_v24, %v3925_v25  ;;  %v3843_v24 = vld [vmem:[#allocation7 + $0x20] sm:$0xf]  ;;  %v5186_v25 = vld [vmem:[#allocation7 + $0x24] sm:$0xf0] }
  0x9d   :  { %898 = vmatpush.bf16.msra.mxu0 %v3704_v52  ;;  %v5191_v52 = vld [vmem:[#allocation7 + $0x54] sm:$0xf] }
  0x9e   :  { %911 = vmatpush.bf16.msra.mxu1 %v3768_v40  ;;  %v3872_v57 = vor.u32 %v5191_v52, %v3869_v54  ;;  %v5243_v52 = vld [vmem:[#allocation9 + $0xf4] sm:$0xf]  ;;  %v4077_v54 = vld [vmem:[#allocation9 + $0xf8] sm:$0xf0] }
  0xdd   :  { %v382_v63 = vpop.f32.mrf.mxu0 }
  0xde   :  { %v383_v0 = vadd.f32 %v382_v63, %v305_v61  ;;  %v395_v1 = vpop.f32.mrf.mxu1  ;;  %v5209_v61 = vld [vmem:[#allocation7 + $0xe4] sm:$0xf]  ;;  %v3883_v63 = vld [vmem:[#allocation7 + $0x70] sm:$0xf] }
  0xdf   :  { %v396_v2 = vadd.f32 %v395_v1, %v306_v62  ;;  %v3941_v62 = vld [vmem:[#allocation7 + $0xe8] sm:$0xf0]  ;;  %v5196_v1 = vld [vmem:[#allocation7 + $0x74] sm:$0xf0] }
  0xe0   :  { %vm399_vm1 = vcmp.ge.f32.partialorder %v383_v0, 0.0  ;;  %v401_v3 = vmul.f32 0.2, %v383_v0 }
  0xe1   :  { %vm400_vm2 = vcmp.ge.f32.partialorder %v396_v2, 0.0  ;;  %v402_v4 = vmul.f32 0.2, %v396_v2 }
  0xe2   :  { %v6083_v5 = vsel %vm399_vm1, %v383_v0, %v401_v3  ;;  %v3940_v0 = vor.u32 %v5210_v59, %v3939_v58  ;;  %v3885_v3 = vld [vmem:[#allocation7 + $0x78] sm:$0xf0]  ;;  %v5203_v59 = vld [vmem:[#allocation7 + $0xb4] sm:$0xf] }
  0xe3   :  { %v438_v6 = vpack.c.bf16 %v6083_v5, %v6083_v5  ;;  %v6087_v7 = vsel %vm400_vm2, %v396_v2, %v402_v4  ;;  %v5195_v2 = vld [vmem:[#allocation7 + $0x74] sm:$0xf]  ;;  %v3944_v4 = vor.u32 %v5209_v61, %v3941_v62  ;;  %v3859_v61 = vld [vmem:[#allocation7 + $0x40] sm:$0xf] }
  0xe4   :  { %v439_v8 = vpack.c.bf16 %v6087_v7, %v6087_v7 }
  0xe5   :  { %v384_v9 = vpop.f32.mrf.mxu0  ;;  %613 = vmatmul.bf16.vlgmr.msra.gmra.mxu2 %v438_v6  ;;  %639 = vmatmul.bf16.vlgmr.msrb.gmra.mxu0 %v438_v6  ;;  %v3884_v6 = vor.u32 %v5196_v1, %v3883_v63  ;;  %v5190_v63 = vld [vmem:[#allocation7 + $0x44] sm:$0xf0]  ;;  %v3861_v1 = vld [vmem:[#allocation7 + $0x48] sm:$0xf0] }
  0xe6   :  { %v397_v10 = vpop.f32.mrf.mxu1  ;;  %626 = vmatmul.bf16.vlgmr.msra.gmra.mxu3 %v439_v8  ;;  %652 = vmatmul.bf16.vlgmr.msrb.gmra.mxu1 %v439_v8  ;;  %v3888_v8 = vor.u32 %v5195_v2, %v3885_v3  ;;  %v3931_v9 = vld [vmem:[#allocation7 + $0xd0] sm:$0xf]  ;;  %v3860_v2 = vor.u32 %v5190_v63, %v3859_v61  ;;  %v5227_v63 = vld [vmem:[#allocation9 + $0x74] sm:$0xf] }
  0xe7   :  { %1138 = vmatpush.bf16.msra.mxu3 %v3948_v56  ;;  %1164 = vmatpush.bf16.msrb.mxu1 %v3952_v60  ;;  %v5208_v10 = vld [vmem:[#allocation7 + $0xd4] sm:$0xf0]  ;;  %v3917_v60 = vld [vmem:[#allocation7 + $0xb8] sm:$0xf0] }
  0xe8   :  { %1125 = vmatpush.bf16.msra.mxu2 %v3884_v6  ;;  %1151 = vmatpush.bf16.msrb.mxu0 %v3888_v8  ;;  %v3932_v18 = vor.u32 %v5208_v10, %v3931_v9  ;;  %v5204_v56 = vld [vmem:[#allocation7 + $0xb4] sm:$0xf0]  ;;  %v3920_v62 = vor.u32 %v5203_v59, %v3917_v60  ;;  %v5202_v6 = vld [vmem:[#allocation7 + $0xa4] sm:$0xf0]  ;;  %v5201_v9 = vld [vmem:[#allocation7 + $0xa4] sm:$0xf] }
  0xe9   :  { %v3916_v58 = vor.u32 %v5204_v56, %v3915_v55  ;;  %v3909_v10 = vld [vmem:[#allocation7 + $0xa8] sm:$0xf0]  ;;  %v4067_v55 = vld [vmem:[#allocation9 + $0xe0] sm:$0xf]  ;;  %v5242_v56 = vld [vmem:[#allocation9 + $0xe4] sm:$0xf0] }
  0xea   :  { %v3912_v11 = vor.u32 %v5201_v9, %v3909_v10  ;;  %v4069_v59 = vld [vmem:[#allocation9 + $0xe8] sm:$0xf0]  ;;  %v4011_v60 = vld [vmem:[#allocation9 + $0x70] sm:$0xf]  ;;  %v4068_v61 = vor.u32 %v5242_v56, %v4067_v55  ;;  %v4061_v9 = vld [vmem:[#allocation9 + $0xd8] sm:$0xf0] }
  0xeb   :  { %1139 = vmatpush.bf16.msra.mxu3 %v3940_v0  ;;  %1165 = vmatpush.bf16.msrb.mxu1 %v3944_v4  ;;  %v5189_v0 = vld [vmem:[#allocation7 + $0x44] sm:$0xf]  ;;  %v3907_v4 = vld [vmem:[#allocation7 + $0xa0] sm:$0xf]  ;;  %v5236_v55 = vld [vmem:[#allocation9 + $0xb4] sm:$0xf0] }
  0xec   :  { %1126 = vmatpush.bf16.msra.mxu2 %v3876_v15  ;;  %1152 = vmatpush.bf16.msrb.mxu0 %v3880_v19  ;;  %v3864_v3 = vor.u32 %v5189_v0, %v3861_v1  ;;  %v3908_v8 = vor.u32 %v5202_v6, %v3907_v4  ;;  %v3852_v15 = vor.u32 %v5188_v13, %v3851_v12  ;;  %v5200_v19 = vld [vmem:[#allocation7 + $0x94] sm:$0xf0]  ;;  %v4013_v0 = vld [vmem:[#allocation9 + $0x78] sm:$0xf0]  ;;  %v4059_v4 = vld [vmem:[#allocation9 + $0xd0] sm:$0xf] }
  0xed   :  { %v5240_v6 = vld [vmem:[#allocation9 + $0xd4] sm:$0xf0]  ;;  %v4003_v10 = vld [vmem:[#allocation9 + $0x60] sm:$0xf]  ;;  %v5225_v13 = vld [vmem:[#allocation9 + $0x64] sm:$0xf] }
  0xee   :  { %v4008_v16 = vor.u32 %v5225_v13, %v4005_v14  ;;  %v5235_v56 = vld [vmem:[#allocation9 + $0xb4] sm:$0xf]  ;;  %v3981_v13 = vld [vmem:[#allocation9 + $0x38] sm:$0xf0] }
  0xef   :  { %1140 = vmatpush.bf16.msra.mxu3 %v3932_v18  ;;  %1166 = vmatpush.bf16.msrb.mxu1 %v3936_v21  ;;  %v3899_v18 = vld [vmem:[#allocation7 + $0x90] sm:$0xf] }
  0xf0   :  { %1127 = vmatpush.bf16.msra.mxu2 %v3868_v53  ;;  %1153 = vmatpush.bf16.msrb.mxu0 %v3872_v57  ;;  %v3900_v21 = vor.u32 %v5200_v19, %v3899_v18  ;;  %v4076_v53 = vor.u32 %v5244_v51, %v4075_v50  ;;  %v4080_v57 = vor.u32 %v5243_v52, %v4077_v54  ;;  %v697_v18 = vld [vmem:[%s6238_s13] sm:$0x3]  ;;  %v5223_v50 = vld [vmem:[#allocation9 + $0x54] sm:$0xf]  ;;  %v3997_v52 = vld [vmem:[#allocation9 + $0x58] sm:$0xf0] }
  0xf1   :  { %v4043_v54 = vld [vmem:[#allocation9 + $0xb0] sm:$0xf] }
  0xf3   :  { %1141 = vmatpush.bf16.msra.mxu3 %v3924_v27  ;;  %1167 = vmatpush.bf16.msrb.mxu1 %v3928_v28  ;;  %v3844_v27 = vor.u32 %v5186_v25, %v3843_v24  ;;  %v3845_v28 = vld [vmem:[#allocation7 + $0x28] sm:$0xf0]  ;;  %v702_v24 = vperm.slane %v697_v18, 1 }
  0xf4   :  { %1128 = vmatpush.bf16.msra.mxu2 %v3860_v2  ;;  %1154 = vmatpush.bf16.msrb.mxu0 %v3864_v3  ;;  %v4016_v3 = vor.u32 %v5227_v63, %v4013_v0  ;;  %v3989_v63 = vld [vmem:[#allocation9 + $0x48] sm:$0xf0] }
  0xf7   :  { %1142 = vmatpush.bf16.msra.mxu3 %v3916_v58  ;;  %1168 = vmatpush.bf16.msrb.mxu1 %v3920_v62  ;;  %v5241_v58 = vld [vmem:[#allocation9 + $0xe4] sm:$0xf]  ;;  %v5228_v62 = vld [vmem:[#allocation9 + $0x74] sm:$0xf0] }
  0xf8   :  { %1129 = vmatpush.bf16.msra.mxu2 %v3852_v15  ;;  %1155 = vmatpush.bf16.msrb.mxu0 %v3856_v17  ;;  %v4072_v1 = vor.u32 %v5241_v58, %v4069_v59  ;;  %v4012_v2 = vor.u32 %v5228_v62, %v4011_v60  ;;  %v4060_v15 = vor.u32 %v5240_v6, %v4059_v4  ;;  %v3987_v58 = vld [vmem:[#allocation9 + $0x40] sm:$0xf]  ;;  %v5222_v59 = vld [vmem:[#allocation9 + $0x44] sm:$0xf0]  ;;  %v5221_v62 = vld [vmem:[#allocation9 + $0x44] sm:$0xf] }
  0xf9   :  { %v3992_v0 = vor.u32 %v5221_v62, %v3989_v63  ;;  %v4037_v6 = vld [vmem:[#allocation9 + $0xa8] sm:$0xf0]  ;;  %v4187_v63 = vld [vmem:[#allocation10 + $0xd0] sm:$0xf] }
  0xfb   :  { %1143 = vmatpush.bf16.msra.mxu3 %v3908_v8  ;;  %1169 = vmatpush.bf16.msrb.mxu1 %v3912_v11  ;;  %v5239_v8 = vld [vmem:[#allocation9 + $0xd4] sm:$0xf]  ;;  %v5226_v11 = vld [vmem:[#allocation9 + $0x64] sm:$0xf0] }
  0xfc   :  { %1130 = vmatpush.bf16.msra.mxu2 %v3844_v27  ;;  %v4004_v12 = vor.u32 %v5226_v11, %v4003_v10  ;;  %v4064_v19 = vor.u32 %v5239_v8, %v4061_v9  ;;  %v3979_v9 = vld [vmem:[#allocation9 + $0x30] sm:$0xf]  ;;  %v5220_v10 = vld [vmem:[#allocation9 + $0x34] sm:$0xf0] }
  0xfd   :  { %v3980_v11 = vor.u32 %v5220_v10, %v3979_v9  ;;  %v4133_v9 = vld [vmem:[#allocation10 + $0x68] sm:$0xf0]  ;;  %v957_v10 = vld [vmem:[%s6239_s29] sm:$0x3] }
  0xff   :  { %1144 = vmatpush.bf16.msra.mxu3 %v3900_v21  ;;  %1170 = vmatpush.bf16.msrb.mxu1 %v3904_v23  ;;  %v5238_v21 = vld [vmem:[#allocation9 + $0xc4] sm:$0xf0]  ;;  %v4053_v23 = vld [vmem:[#allocation9 + $0xc8] sm:$0xf0] }
 0x100   :  { %v4052_v25 = vor.u32 %v5238_v21, %v4051_v20  ;;  %v3971_v21 = vld [vmem:[#allocation9 + $0x20] sm:$0xf] }
 0x162   :  { %v640_v29 = vpop.f32.mrf.mxu0 }
 0x163   :  { %v641_v30 = vadd.f32 %v640_v29, %v442_v26  ;;  %v653_v31 = vpop.f32.mrf.mxu1  ;;  %v5185_v26 = vld [vmem:[#allocation7 + $0x24] sm:$0xf] }
 0x164   :  { %v3848_v29 = vor.u32 %v5185_v26, %v3845_v28  ;;  %v4056_v26 = vor.u32 %v5237_v22, %v4053_v23  ;;  %v5218_v22 = vld [vmem:[#allocation9 + $0x24] sm:$0xf0]  ;;  %v5217_v23 = vld [vmem:[#allocation9 + $0x24] sm:$0xf] }
 0x165   :  { %v654_v32 = vadd.f32 %v653_v31, %v641_v30  ;;  %v3891_v30 = vld [vmem:[#allocation7 + $0x80] sm:$0xf]  ;;  %v5198_v31 = vld [vmem:[#allocation7 + $0x84] sm:$0xf0] }
 0x166   :  { %1156 = vmatpush.bf16.msrb.mxu0 %v3848_v29 }
 0x167   :  { %v658_v34 = vadd.f32 %v654_v32, %v6087_v7  ;;  %v5197_v32 = vld [vmem:[#allocation7 + $0x84] sm:$0xf] }
 0x168   :  { %v614_v35 = vpop.f32.mrf.mxu2 }
 0x169   :  { %vm660_vm3 = vcmp.ge.f32.partialorder %v658_v34, 0.0  ;;  %v662_v36 = vmul.f32 0.2, %v658_v34  ;;  %v615_v37 = vadd.f32 %v614_v35, %v441_v33  ;;  %v627_v38 = vpop.f32.mrf.mxu3  ;;  %v3892_v33 = vor.u32 %v5198_v31, %v3891_v30 }
 0x16a   :  { %v642_v39 = vpop.f32.mrf.mxu0 }
 0x16b   :  { %v628_v40 = vadd.f32 %v627_v38, %v615_v37  ;;  %v655_v41 = vpop.f32.mrf.mxu1  ;;  %v6095_v42 = vsel %vm660_vm3, %v658_v34, %v662_v36  ;;  %v3893_v34 = vld [vmem:[#allocation7 + $0x88] sm:$0xf0]  ;;  %v3835_v36 = vld [vmem:[#allocation7 + $0x10] sm:$0xf]  ;;  %v5184_v37 = vld [vmem:[#allocation7 + $0x14] sm:$0xf0]  ;;  %1145 = vmatpush.bf16.msra.mxu3 %v3892_v33 }
 0x16c   :  { %v699_v43 = vpack.c.bf16 %v6095_v42, %v6095_v42  ;;  %v3896_v35 = vor.u32 %v5197_v32, %v3893_v34  ;;  %v5183_v38 = vld [vmem:[#allocation7 + $0x14] sm:$0xf]  ;;  %v3836_v39 = vor.u32 %v5184_v37, %v3835_v36  ;;  %v701_v32 = vperm.slane %v697_v18, 0 }
 0x16d   :  { %v657_v44 = vadd.f32 %v628_v40, %v6083_v5  ;;  %v3837_v40 = vld [vmem:[#allocation7 + $0x18] sm:$0xf0]  ;;  %vm3504_vm3 = vcmask 1041408  }
 0x16e   :  { %886 = vmatmul.bf16.vlgmr.msrb.gmra.mxu3 %v699_v43  ;;  %912 = vmatmul.bf16.vlgmr.msra.gmra.mxu1 %v699_v43  ;;  %v3840_v41 = vor.u32 %v5183_v38, %v3837_v40  ;;  %v3827_v43 = vld [vmem:[#allocation7] sm:$0xf] }
 0x16f   :  { %vm659_vm4 = vcmp.ge.f32.partialorder %v657_v44, 0.0  ;;  %v661_v45 = vmul.f32 0.2, %v657_v44  ;;  %1171 = vmatpush.bf16.msrb.mxu1 %v3896_v35  ;;  %1131 = vmatpush.bf16.msra.mxu2 %v3836_v39 }
 0x170   :  { %v616_v46 = vpop.f32.mrf.mxu2  ;;  %1157 = vmatpush.bf16.msrb.mxu0 %v3840_v41  ;;  %1394 = vmatpush.bf16.msrb.mxu3 %v4076_v53  ;;  %v4000_v53 = vor.u32 %v5223_v50, %v3997_v52  ;;  %v4205_v50 = vld [vmem:[#allocation10 + $0xf8] sm:$0xf0]  ;;  %v5274_v52 = vld [vmem:[#allocation10 + $0xe4] sm:$0xf0] }
 0x171   :  { %v629_v47 = vpop.f32.mrf.mxu3  ;;  %v6100_v48 = vsel %vm659_vm4, %v657_v44, %v661_v45  ;;  %v5182_v44 = vld [vmem:[#allocation7 + $0x4] sm:$0xf0]  ;;  %v5181_v45 = vld [vmem:[#allocation7 + $0x4] sm:$0xf] }
 0x172   :  { %v698_v49 = vpack.c.bf16 %v6100_v48, %v6100_v48  ;;  %v3828_v46 = vor.u32 %v5182_v44, %v3827_v43  ;;  %v3829_v47 = vld [vmem:[#allocation7 + $0x8] sm:$0xf0] }
 0x173   :  { %1420 = vmatpush.bf16.msra.mxu1 %v4080_v57  ;;  %v4045_v57 = vld [vmem:[#allocation9 + $0xb8] sm:$0xf0] }
 0x174   :  { %873 = vmatmul.bf16.vlgmr.msrb.gmra.mxu2 %v698_v49  ;;  %899 = vmatmul.bf16.vlgmr.msra.gmra.mxu0 %v698_v49  ;;  %v3832_v49 = vor.u32 %v5181_v45, %v3829_v47  ;;  %v4048_v60 = vor.u32 %v5235_v56, %v4045_v57  ;;  %v4139_v56 = vld [vmem:[#allocation10 + $0x70] sm:$0xf]  ;;  %v5260_v57 = vld [vmem:[#allocation10 + $0x74] sm:$0xf0] }
 0x175   :  { %1132 = vmatpush.bf16.msra.mxu2 %v3828_v46  ;;  %1395 = vmatpush.bf16.msrb.mxu3 %v4068_v61  ;;  %v3988_v61 = vor.u32 %v5222_v59, %v3987_v58  ;;  %v5259_v58 = vld [vmem:[#allocation10 + $0x74] sm:$0xf]  ;;  %v4141_v59 = vld [vmem:[#allocation10 + $0x78] sm:$0xf0] }
 0x176   :  { %1158 = vmatpush.bf16.msrb.mxu0 %v3832_v49  ;;  %v5224_v49 = vld [vmem:[#allocation9 + $0x54] sm:$0xf0]  ;;  %v4144_v62 = vor.u32 %v5259_v58, %v4141_v59  ;;  %v5265_v58 = vld [vmem:[#allocation10 + $0xa4] sm:$0xf]  ;;  %v4165_v59 = vld [vmem:[#allocation10 + $0xa8] sm:$0xf0] }
 0x177   :  { %1421 = vmatpush.bf16.msra.mxu1 %v4072_v1  ;;  %v4035_v1 = vld [vmem:[#allocation9 + $0xa0] sm:$0xf] }
 0x179   :  { %1381 = vmatpush.bf16.msrb.mxu2 %v4012_v2  ;;  %1396 = vmatpush.bf16.msrb.mxu3 %v4060_v15  ;;  %v5234_v2 = vld [vmem:[#allocation9 + $0xa4] sm:$0xf0]  ;;  %v4027_v15 = vld [vmem:[#allocation9 + $0x90] sm:$0xf] }
 0x17a   :  { %1407 = vmatpush.bf16.msra.mxu0 %v4016_v3  ;;  %v5233_v3 = vld [vmem:[#allocation9 + $0xa4] sm:$0xf]  ;;  %v4036_v4 = vor.u32 %v5234_v2, %v4035_v1  ;;  %v5271_v1 = vld [vmem:[#allocation10 + $0xd4] sm:$0xf]  ;;  %v4189_v2 = vld [vmem:[#allocation10 + $0xd8] sm:$0xf0] }
 0x17b   :  { %1422 = vmatpush.bf16.msra.mxu1 %v4064_v19  ;;  %v4040_v8 = vor.u32 %v5233_v3, %v4037_v6  ;;  %v4029_v19 = vld [vmem:[#allocation9 + $0x98] sm:$0xf0]  ;;  %v4131_v3 = vld [vmem:[#allocation10 + $0x60] sm:$0xf] }
 0x17d   :  { %1382 = vmatpush.bf16.msrb.mxu2 %v4004_v12  ;;  %1397 = vmatpush.bf16.msrb.mxu3 %v4052_v25  ;;  %v5219_v12 = vld [vmem:[#allocation9 + $0x34] sm:$0xf]  ;;  %v3973_v25 = vld [vmem:[#allocation9 + $0x28] sm:$0xf0] }
 0x17e   :  { %1408 = vmatpush.bf16.msra.mxu0 %v4008_v16  ;;  %v3984_v14 = vor.u32 %v5219_v12, %v3981_v13  ;;  %v5232_v16 = vld [vmem:[#allocation9 + $0x94] sm:$0xf0]  ;;  %v4179_v13 = vld [vmem:[#allocation10 + $0xc0] sm:$0xf] }
 0x17f   :  { %1423 = vmatpush.bf16.msra.mxu1 %v4056_v26  ;;  %v4028_v18 = vor.u32 %v5232_v16, %v4027_v15  ;;  %v3976_v26 = vor.u32 %v5217_v23, %v3973_v25  ;;  %v4192_v15 = vor.u32 %v5271_v1, %v4189_v2  ;;  %v4123_v16 = vld [vmem:[#allocation10 + $0x50] sm:$0xf]  ;;  %v5251_v1 = vld [vmem:[#allocation10 + $0x34] sm:$0xf]  ;;  %v4109_v2 = vld [vmem:[#allocation10 + $0x38] sm:$0xf0] }
 0x182   :  { %1409 = vmatpush.bf16.msra.mxu0 %v4000_v53 }
 0x183   :  { %1424 = vmatpush.bf16.msra.mxu1 %v4048_v60 }
 0x186   :  { %1410 = vmatpush.bf16.msra.mxu0 %v3992_v0  ;;  %v5272_v0 = vld [vmem:[#allocation10 + $0xd4] sm:$0xf0] }
 0x187   :  { %1425 = vmatpush.bf16.msra.mxu1 %v4040_v8  ;;  %v5257_v8 = vld [vmem:[#allocation10 + $0x64] sm:$0xf] }
 0x188   :  { %v4136_v12 = vor.u32 %v5257_v8, %v4133_v9  ;;  %v5263_v8 = vld [vmem:[#allocation10 + $0x94] sm:$0xf] }
 0x18a   :  { %1411 = vmatpush.bf16.msra.mxu0 %v3984_v14  ;;  %v5270_v14 = vld [vmem:[#allocation10 + $0xc4] sm:$0xf0] }
 0x18b   :  { %v4180_v25 = vor.u32 %v5270_v14, %v4179_v13  ;;  %v5250_v13 = vld [vmem:[#allocation10 + $0x24] sm:$0xf0]  ;;  %v5249_v14 = vld [vmem:[#allocation10 + $0x24] sm:$0xf] }
 0x18e   :  { %1412 = vmatpush.bf16.msra.mxu0 %v3976_v26  ;;  %v962_v26 = vperm.slane %v957_v10, 1 }
 0x1eb   :  { %v913_v17 = vpop.f32.mrf.mxu1 }
 0x1f1   :  { %v887_v27 = vpop.f32.mrf.mxu3  ;;  %v900_v28 = vpop.f32.mrf.mxu0 }
 0x1f2   :  { %v901_v29 = vadd.f32 %v900_v28, %v702_v24  ;;  %v3972_v24 = vor.u32 %v5218_v22, %v3971_v21  ;;  %v5230_v28 = vld [vmem:[#allocation9 + $0x84] sm:$0xf0]  ;;  %v4181_v21 = vld [vmem:[#allocation10 + $0xc8] sm:$0xf0]  ;;  %v4125_v22 = vld [vmem:[#allocation10 + $0x58] sm:$0xf0] }
 0x1f3   :  { %v915_v30 = vpop.f32.mrf.mxu1 }
 0x1f4   :  { %v914_v31 = vadd.f32 %v913_v17, %v901_v29  ;;  %v5231_v17 = vld [vmem:[#allocation9 + $0x94] sm:$0xf]  ;;  %v5229_v30 = vld [vmem:[#allocation9 + $0x84] sm:$0xf] }
 0x1f5   :  { %v4032_v20 = vor.u32 %v5231_v17, %v4029_v19  ;;  %v5256_v17 = vld [vmem:[#allocation10 + $0x54] sm:$0xf0] }
 0x1f6   :  { %v918_v33 = vadd.f32 %v914_v31, %v6095_v42  ;;  %v3995_v42 = vld [vmem:[#allocation9 + $0x50] sm:$0xf]  ;;  %v4021_v31 = vld [vmem:[#allocation9 + $0x88] sm:$0xf0]  ;;  %v4124_v23 = vor.u32 %v5256_v17, %v4123_v16 }
 0x1f7   :  { %v874_v34 = vpop.f32.mrf.mxu2  ;;  %v3996_v51 = vor.u32 %v5224_v49, %v3995_v42  ;;  %1426 = vmatpush.bf16.msra.mxu1 %v4032_v20  ;;  %v5275_v42 = vld [vmem:[#allocation10 + $0xf4] sm:$0xf]  ;;  %v5269_v20 = vld [vmem:[#allocation10 + $0xc4] sm:$0xf]  ;;  %v4101_v16 = vld [vmem:[#allocation10 + $0x28] sm:$0xf0] }
 0x1f8   :  { %vm920_vm5 = vcmp.ge.f32.partialorder %v918_v33, 0.0  ;;  %v922_v35 = vmul.f32 0.2, %v918_v33  ;;  %v875_v36 = vadd.f32 %v874_v34, %v701_v32  ;;  %v4024_v32 = vor.u32 %v5229_v30, %v4021_v31  ;;  %v5216_v34 = vld [vmem:[#allocation9 + $0x14] sm:$0xf0] }
 0x1f9   :  { %v889_v37 = vpop.f32.mrf.mxu3  ;;  %v902_v38 = vpop.f32.mrf.mxu0  ;;  %1383 = vmatpush.bf16.msrb.mxu2 %v3996_v51  ;;  %v4195_v51 = vld [vmem:[#allocation10 + $0xe0] sm:$0xf]  ;;  %v4208_v53 = vor.u32 %v5275_v42, %v4205_v50  ;;  %v5268_v42 = vld [vmem:[#allocation10 + $0xb4] sm:$0xf0]  ;;  %v4173_v50 = vld [vmem:[#allocation10 + $0xb8] sm:$0xf0]  ;;  %v4104_v17 = vor.u32 %v5249_v14, %v4101_v16 }
 0x1fa   :  { %v888_v39 = vadd.f32 %v887_v27, %v875_v36  ;;  %v924_v40 = vsel %vm920_vm5, %v918_v33, %v922_v35  ;;  %v4019_v27 = vld [vmem:[#allocation9 + $0x80] sm:$0xf]  ;;  %v3963_v33 = vld [vmem:[#allocation9 + $0x10] sm:$0xf]  ;;  %v5215_v35 = vld [vmem:[#allocation9 + $0x14] sm:$0xf] }
 0x1fb   :  { %v959_v41 = vpack.c.bf16 %v924_v40, %v924_v40  ;;  %v4020_v29 = vor.u32 %v5230_v28, %v4019_v27  ;;  %v3964_v36 = vor.u32 %v5216_v34, %v3963_v33  ;;  %v3965_v37 = vld [vmem:[#allocation9 + $0x18] sm:$0xf0]  ;;  %1427 = vmatpush.bf16.msra.mxu1 %v4024_v32  ;;  %v5214_v40 = vld [vmem:[#allocation9 + $0x4] sm:$0xf0]  ;;  %v4184_v27 = vor.u32 %v5269_v20, %v4181_v21  ;;  %v5261_v20 = vld [vmem:[#allocation10 + $0x84] sm:$0xf] }
 0x1fc   :  { %v917_v43 = vadd.f32 %v888_v39, %v6100_v48  ;;  %v4044_v48 = vor.u32 %v5236_v55, %v4043_v54  ;;  %v3968_v38 = vor.u32 %v5215_v35, %v3965_v37  ;;  %v3955_v39 = vld [vmem:[#allocation9] sm:$0xf]  ;;  %v5273_v54 = vld [vmem:[#allocation10 + $0xe4] sm:$0xf]  ;;  %v4197_v55 = vld [vmem:[#allocation10 + $0xe8] sm:$0xf0] }
 0x1fd   :  { %1146 = vmatmul.bf16.vlgmr.msra.gmra.mxu3 %v959_v41  ;;  %1172 = vmatmul.bf16.vlgmr.msrb.gmra.mxu1 %v959_v41  ;;  %v5213_v41 = vld [vmem:[#allocation9 + $0x4] sm:$0xf]  ;;  %v4200_v60 = vor.u32 %v5273_v54, %v4197_v55  ;;  %v961_v33 = vperm.slane %v957_v10, 0  ;;  %v4157_v10 = vld [vmem:[#allocation10 + $0x98] sm:$0xf0] }
 0x1fe   :  { %vm919_vm6 = vcmp.ge.f32.partialorder %v917_v43, 0.0  ;;  %v921_v44 = vmul.f32 0.2, %v917_v43  ;;  %1398 = vmatpush.bf16.msrb.mxu3 %v4044_v48  ;;  %1384 = vmatpush.bf16.msrb.mxu2 %v3988_v61  ;;  %v4196_v48 = vor.u32 %v5274_v52, %v4195_v51  ;;  %v4140_v61 = vor.u32 %v5260_v57, %v4139_v56  ;;  %v4115_v51 = vld [vmem:[#allocation10 + $0x40] sm:$0xf] }
 0x1ff   :  { %v876_v45 = vpop.f32.mrf.mxu2  ;;  %1413 = vmatpush.bf16.msra.mxu0 %v3968_v38  ;;  %1678 = vmatpush.bf16.msrb.mxu1 %v4208_v53  ;;  %v5254_v52 = vld [vmem:[#allocation10 + $0x44] sm:$0xf0]  ;;  %v5253_v55 = vld [vmem:[#allocation10 + $0x44] sm:$0xf]  ;;  %v4117_v56 = vld [vmem:[#allocation10 + $0x48] sm:$0xf0] }
 0x200   :  { %v923_v46 = vsel %vm919_vm6, %v917_v43, %v921_v44  ;;  %v3956_v43 = vor.u32 %v5214_v40, %v3955_v39  ;;  %v3957_v44 = vld [vmem:[#allocation9 + $0x8] sm:$0xf0]  ;;  %v4116_v54 = vor.u32 %v5254_v52, %v4115_v51  ;;  %v5266_v57 = vld [vmem:[#allocation10 + $0xa4] sm:$0xf0] }
 0x201   :  { %v958_v47 = vpack.c.bf16 %v923_v46, %v923_v46  ;;  %v3960_v45 = vor.u32 %v5213_v41, %v3957_v44  ;;  %v4203_v46 = vld [vmem:[#allocation10 + $0xf0] sm:$0xf] }
 0x202   :  { %1399 = vmatpush.bf16.msrb.mxu3 %v4036_v4  ;;  %1385 = vmatpush.bf16.msrb.mxu2 %v3980_v11  ;;  %v5258_v4 = vld [vmem:[#allocation10 + $0x64] sm:$0xf0]  ;;  %v4188_v11 = vor.u32 %v5272_v0, %v4187_v63  ;;  %v5252_v63 = vld [vmem:[#allocation10 + $0x34] sm:$0xf0] }
 0x203   :  { %1133 = vmatmul.bf16.vlgmr.msra.gmra.mxu2 %v958_v47  ;;  %1159 = vmatmul.bf16.vlgmr.msrb.gmra.mxu0 %v958_v47  ;;  %v5276_v47 = vld [vmem:[#allocation10 + $0xf4] sm:$0xf0]  ;;  %v4132_v6 = vor.u32 %v5258_v4, %v4131_v3  ;;  %v4112_v3 = vor.u32 %v5251_v1, %v4109_v2  ;;  %v4155_v4 = vld [vmem:[#allocation10 + $0x90] sm:$0xf]  ;;  %v5302_v1 = vld [vmem:[#allocation12 + $0xc4] sm:$0xf0] }
 0x204   :  { %1414 = vmatpush.bf16.msra.mxu0 %v3960_v45  ;;  %v4204_v49 = vor.u32 %v5276_v47, %v4203_v46  ;;  %1679 = vmatpush.bf16.msrb.mxu1 %v4200_v60  ;;  %v4171_v47 = vld [vmem:[#allocation10 + $0xb0] sm:$0xf]  ;;  %v5301_v2 = vld [vmem:[#allocation12 + $0xc4] sm:$0xf] }
 0x206   :  { %1400 = vmatpush.bf16.msrb.mxu3 %v4028_v18  ;;  %1386 = vmatpush.bf16.msrb.mxu2 %v3972_v24  ;;  %v5255_v18 = vld [vmem:[#allocation10 + $0x54] sm:$0xf] }
 0x207   :  { %v4128_v24 = vor.u32 %v5255_v18, %v4125_v22  ;;  %v4147_v18 = vld [vmem:[#allocation10 + $0x80] sm:$0xf]  ;;  %v4149_v22 = vld [vmem:[#allocation10 + $0x88] sm:$0xf0] }
 0x208   :  { %1665 = vmatpush.bf16.msrb.mxu0 %v4144_v62  ;;  %1680 = vmatpush.bf16.msrb.mxu1 %v4192_v15  ;;  %v4107_v62 = vld [vmem:[#allocation10 + $0x30] sm:$0xf] }
 0x209   :  { %v4108_v0 = vor.u32 %v5252_v63, %v4107_v62 }
 0x20a   :  { %1401 = vmatpush.bf16.msrb.mxu3 %v4020_v29  ;;  %1387 = vmatpush.bf16.msrb.mxu2 %v3964_v36 }
 0x20c   :  { %1666 = vmatpush.bf16.msrb.mxu0 %v4136_v12  ;;  %1681 = vmatpush.bf16.msrb.mxu1 %v4184_v27  ;;  %v4099_v12 = vld [vmem:[#allocation10 + $0x20] sm:$0xf] }
 0x20d   :  { %v4100_v15 = vor.u32 %v5250_v13, %v4099_v12 }
 0x20e   :  { %1388 = vmatpush.bf16.msrb.mxu2 %v3956_v43  ;;  %1652 = vmatpush.bf16.msra.mxu3 %v4204_v49  ;;  %v5267_v49 = vld [vmem:[#allocation10 + $0xb4] sm:$0xf] }
 0x20f   :  { %v4176_v53 = vor.u32 %v5267_v49, %v4173_v50  ;;  %v5292_v49 = vld [vmem:[#allocation12 + $0x74] sm:$0xf0]  ;;  %v4269_v50 = vld [vmem:[#allocation12 + $0x78] sm:$0xf0] }
 0x210   :  { %1667 = vmatpush.bf16.msrb.mxu0 %v4128_v24  ;;  %v4091_v24 = vld [vmem:[#allocation10 + $0x10] sm:$0xf] }
 0x211   :  { %1682 = vmatpush.bf16.msrb.mxu1 %v4176_v53 }
 0x212   :  { %1639 = vmatpush.bf16.msra.mxu2 %v4140_v61  ;;  %1653 = vmatpush.bf16.msra.mxu3 %v4196_v48  ;;  %v4163_v48 = vld [vmem:[#allocation10 + $0xa0] sm:$0xf]  ;;  %v4168_v61 = vor.u32 %v5265_v58, %v4165_v59  ;;  %v5289_v59 = vld [vmem:[#allocation12 + $0x64] sm:$0xf] }
 0x213   :  { %v4164_v60 = vor.u32 %v5266_v57, %v4163_v48  ;;  %v4317_v48 = vld [vmem:[#allocation12 + $0xd8] sm:$0xf0]  ;;  %v5290_v57 = vld [vmem:[#allocation12 + $0x64] sm:$0xf0] }
 0x215   :  { %1683 = vmatpush.bf16.msrb.mxu1 %v4168_v61 }
 0x216   :  { %1640 = vmatpush.bf16.msra.mxu2 %v4132_v6  ;;  %1654 = vmatpush.bf16.msra.mxu3 %v4188_v11  ;;  %v5264_v6 = vld [vmem:[#allocation10 + $0x94] sm:$0xf0]  ;;  %v4160_v11 = vor.u32 %v5263_v8, %v4157_v10 }
 0x217   :  { %v4156_v9 = vor.u32 %v5264_v6, %v4155_v4  ;;  %v1213_v6 = vld [vmem:[%s6240_s17] sm:$0x3] }
 0x218   :  { %v1218_v10 = vperm.slane %v1213_v6, 1  ;;  %v1217_v16 = vperm.slane %v1213_v6, 0  ;;  %v4275_v6 = vld [vmem:[#allocation12 + $0x80] sm:$0xf] }
 0x219   :  { %1684 = vmatpush.bf16.msrb.mxu1 %v4160_v11 }
 0x21a   :  { %1641 = vmatpush.bf16.msra.mxu2 %v4124_v23  ;;  %1655 = vmatpush.bf16.msra.mxu3 %v4180_v25  ;;  %v4152_v23 = vor.u32 %v5261_v20, %v4149_v22  ;;  %v5248_v25 = vld [vmem:[#allocation10 + $0x14] sm:$0xf0] }
 0x21b   :  { %v4092_v27 = vor.u32 %v5248_v25, %v4091_v24 }
 0x21d   :  { %1685 = vmatpush.bf16.msrb.mxu1 %v4152_v23 }
 0x21e   :  { %1642 = vmatpush.bf16.msra.mxu2 %v4116_v54  ;;  %v4315_v54 = vld [vmem:[#allocation12 + $0xd0] sm:$0xf] }
 0x222   :  { %1643 = vmatpush.bf16.msra.mxu2 %v4108_v0  ;;  %v4307_v0 = vld [vmem:[#allocation12 + $0xc0] sm:$0xf] }
 0x223   :  { %v4308_v8 = vor.u32 %v5302_v1, %v4307_v0  ;;  %v5282_v0 = vld [vmem:[#allocation12 + $0x24] sm:$0xf0]  ;;  %v5281_v1 = vld [vmem:[#allocation12 + $0x24] sm:$0xf] }
 0x226   :  { %1644 = vmatpush.bf16.msra.mxu2 %v4100_v15 }
 0x22a   :  { %1645 = vmatpush.bf16.msra.mxu2 %v4092_v27 }
 0x27a   :  { %v1173_v19 = vpop.f32.mrf.mxu1 }
 0x280   :  { %v1147_v28 = vpop.f32.mrf.mxu3  ;;  %v1160_v29 = vpop.f32.mrf.mxu0 }
 0x281   :  { %v1161_v30 = vadd.f32 %v1160_v29, %v962_v26  ;;  %v5247_v26 = vld [vmem:[#allocation10 + $0x14] sm:$0xf] }
 0x282   :  { %v1175_v31 = vpop.f32.mrf.mxu1 }
 0x283   :  { %v1174_v32 = vadd.f32 %v1173_v19, %v1161_v30  ;;  %v5262_v19 = vld [vmem:[#allocation10 + $0x84] sm:$0xf0]  ;;  %v4083_v30 = vld [vmem:[#allocation10] sm:$0xf] }
 0x284   :  { %v4148_v21 = vor.u32 %v5262_v19, %v4147_v18  ;;  %v5246_v31 = vld [vmem:[#allocation10 + $0x4] sm:$0xf0] }
 0x285   :  { %v1178_v34 = vadd.f32 %v1174_v32, %v6087_v7  ;;  %v4172_v7 = vor.u32 %v5268_v42, %v4171_v47  ;;  %v5245_v32 = vld [vmem:[#allocation10 + $0x4] sm:$0xf]  ;;  %v4267_v47 = vld [vmem:[#allocation12 + $0x70] sm:$0xf] }
 0x286   :  { %v1134_v35 = vpop.f32.mrf.mxu2  ;;  %v4268_v52 = vor.u32 %v5292_v49, %v4267_v47  ;;  %v5298_v49 = vld [vmem:[#allocation12 + $0xa4] sm:$0xf0] }
 0x287   :  { %v1180_v36 = vmax.f32 %v1178_v34, 0.0  ;;  %v1135_v37 = vadd.f32 %v1134_v35, %v961_v33  ;;  %1656 = vmatpush.bf16.msra.mxu3 %v4172_v7  ;;  %v4084_v33 = vor.u32 %v5246_v31, %v4083_v30  ;;  %v4085_v34 = vld [vmem:[#allocation10 + $0x8] sm:$0xf0]  ;;  %v5291_v7 = vld [vmem:[#allocation12 + $0x74] sm:$0xf] }
 0x288   :  { %v1149_v38 = vpop.f32.mrf.mxu3  ;;  %v1162_v39 = vpop.f32.mrf.mxu0  ;;  %v4088_v35 = vor.u32 %v5245_v32, %v4085_v34  ;;  %v4272_v53 = vor.u32 %v5291_v7, %v4269_v50  ;;  %v5288_v30 = vld [vmem:[#allocation12 + $0x54] sm:$0xf0]  ;;  %v5287_v31 = vld [vmem:[#allocation12 + $0x54] sm:$0xf]  ;;  %v4299_v34 = vld [vmem:[#allocation12 + $0xb0] sm:$0xf] }
 0x289   :  { %v1215_v40 = vpack.c.bf16 %v1180_v36, %v1180_v36  ;;  %v1148_v41 = vadd.f32 %v1147_v28, %v1135_v37  ;;  %v4093_v28 = vld [vmem:[#allocation10 + $0x18] sm:$0xf0]  ;;  %1646 = vmatpush.bf16.msra.mxu2 %v4084_v33  ;;  %v4331_v36 = vld [vmem:[#allocation12 + $0xf0] sm:$0xf]  ;;  %v5308_v37 = vld [vmem:[#allocation12 + $0xf4] sm:$0xf0] }
 0x28a   :  { %v4096_v29 = vor.u32 %v5247_v26, %v4093_v28  ;;  %v5307_v38 = vld [vmem:[#allocation12 + $0xf4] sm:$0xf]  ;;  %v4332_v39 = vor.u32 %v5308_v37, %v4331_v36  ;;  %v4253_v33 = vld [vmem:[#allocation12 + $0x58] sm:$0xf0]  ;;  %v5297_v50 = vld [vmem:[#allocation12 + $0xa4] sm:$0xf] }
 0x28b   :  { %v1177_v43 = vadd.f32 %v1148_v41, %v6083_v5  ;;  %1402 = vmatmul.bf16.vlgmr.msrb.gmra.mxu3 %v1215_v40  ;;  %1428 = vmatmul.bf16.vlgmr.msra.gmra.mxu1 %v1215_v40  ;;  %v4120_v5 = vor.u32 %v5253_v55, %v4117_v56  ;;  %v4333_v40 = vld [vmem:[#allocation12 + $0xf8] sm:$0xf0]  ;;  %v4323_v41 = vld [vmem:[#allocation12 + $0xe0] sm:$0xf]  ;;  %v5304_v55 = vld [vmem:[#allocation12 + $0xd4] sm:$0xf0]  ;;  %v4256_v36 = vor.u32 %v5287_v31, %v4253_v33 }
 0x28c   :  { %1657 = vmatpush.bf16.msra.mxu3 %v4164_v60  ;;  %v5303_v56 = vld [vmem:[#allocation12 + $0xd4] sm:$0xf]  ;;  %v4261_v60 = vld [vmem:[#allocation12 + $0x68] sm:$0xf0]  ;;  %v4316_v61 = vor.u32 %v5304_v55, %v4315_v54  ;;  %v5284_v54 = vld [vmem:[#allocation12 + $0x34] sm:$0xf0] }
 0x28d   :  { %v1179_v44 = vmax.f32 %v1177_v43, 0.0  ;;  %1668 = vmatpush.bf16.msrb.mxu0 %v4120_v5  ;;  %v5306_v43 = vld [vmem:[#allocation12 + $0xe4] sm:$0xf0]  ;;  %v4259_v5 = vld [vmem:[#allocation12 + $0x60] sm:$0xf]  ;;  %v4264_v62 = vor.u32 %v5289_v59, %v4261_v60  ;;  %v4320_v63 = vor.u32 %v5303_v56, %v4317_v48 }
 0x28e   :  { %v1136_v45 = vpop.f32.mrf.mxu2  ;;  %v4324_v42 = vor.u32 %v5306_v43, %v4323_v41  ;;  %v4260_v58 = vor.u32 %v5290_v57, %v4259_v5  ;;  %v5286_v43 = vld [vmem:[#allocation12 + $0x44] sm:$0xf0]  ;;  %v5283_v55 = vld [vmem:[#allocation12 + $0x34] sm:$0xf]  ;;  %v4237_v48 = vld [vmem:[#allocation12 + $0x38] sm:$0xf0] }
 0x28f   :  { %v1214_v46 = vpack.c.bf16 %v1179_v44, %v1179_v44  ;;  %v4336_v44 = vor.u32 %v5307_v38, %v4333_v40  ;;  %v5305_v45 = vld [vmem:[#allocation12 + $0xe4] sm:$0xf]  ;;  %v5299_v38 = vld [vmem:[#allocation12 + $0xb4] sm:$0xf]  ;;  %v4243_v40 = vld [vmem:[#allocation12 + $0x40] sm:$0xf]  ;;  %v4240_v5 = vor.u32 %v5283_v55, %v4237_v48 }
 0x290   :  { %1658 = vmatpush.bf16.msra.mxu3 %v4156_v9  ;;  %v4283_v57 = vld [vmem:[#allocation12 + $0x90] sm:$0xf]  ;;  %v5295_v59 = vld [vmem:[#allocation12 + $0x94] sm:$0xf]  ;;  %v4461_v31 = vld [vmem:[#allocation13 + $0xf8] sm:$0xf0] }
 0x291   :  { %1389 = vmatmul.bf16.vlgmr.msrb.gmra.mxu2 %v1214_v46  ;;  %1415 = vmatmul.bf16.vlgmr.msra.gmra.mxu0 %v1214_v46  ;;  %v4325_v46 = vld [vmem:[#allocation12 + $0xe8] sm:$0xf0]  ;;  %v5338_v33 = vld [vmem:[#allocation13 + $0xe4] sm:$0xf0]  ;;  %v1471_v48 = vld [vmem:[%s6200_s12] sm:$0x3] }
 0x292   :  { %1669 = vmatpush.bf16.msrb.mxu0 %v4112_v3  ;;  %1938 = vmatpush.bf16.msra.mxu1 %v4336_v44  ;;  %v4328_v51 = vor.u32 %v5305_v45, %v4325_v46  ;;  %v4309_v3 = vld [vmem:[#allocation12 + $0xc8] sm:$0xf0]  ;;  %v5285_v44 = vld [vmem:[#allocation12 + $0x44] sm:$0xf]  ;;  %v4244_v46 = vor.u32 %v5286_v43, %v4243_v40  ;;  %v5323_v40 = vld [vmem:[#allocation13 + $0x74] sm:$0xf] }
 0x293   :  { %1899 = vmatpush.bf16.msrb.mxu2 %v4268_v52  ;;  %v4312_v9 = vor.u32 %v5301_v2, %v4309_v3  ;;  %v4245_v45 = vld [vmem:[#allocation12 + $0x48] sm:$0xf0] }
 0x294   :  { %1659 = vmatpush.bf16.msra.mxu3 %v4148_v21  ;;  %v4248_v47 = vor.u32 %v5285_v44, %v4245_v45  ;;  %v4229_v3 = vld [vmem:[#allocation12 + $0x28] sm:$0xf0] }
 0x296   :  { %1670 = vmatpush.bf16.msrb.mxu0 %v4104_v17  ;;  %1939 = vmatpush.bf16.msra.mxu1 %v4328_v51  ;;  %v4293_v51 = vld [vmem:[#allocation12 + $0xa8] sm:$0xf0] }
 0x297   :  { %1900 = vmatpush.bf16.msrb.mxu2 %v4260_v58  ;;  %v4296_v52 = vor.u32 %v5297_v50, %v4293_v51  ;;  %v5296_v58 = vld [vmem:[#allocation12 + $0x94] sm:$0xf0]  ;;  %v5322_v50 = vld [vmem:[#allocation13 + $0x64] sm:$0xf0] }
 0x298   :  { %1912 = vmatpush.bf16.msrb.mxu3 %v4332_v39  ;;  %v4301_v39 = vld [vmem:[#allocation12 + $0xb8] sm:$0xf0]  ;;  %v4284_v60 = vor.u32 %v5296_v58, %v4283_v57  ;;  %v4435_v57 = vld [vmem:[#allocation13 + $0xc0] sm:$0xf]  ;;  %v5334_v58 = vld [vmem:[#allocation13 + $0xc4] sm:$0xf0] }
 0x299   :  { %v4304_v41 = vor.u32 %v5299_v38, %v4301_v39  ;;  %v5324_v39 = vld [vmem:[#allocation13 + $0x74] sm:$0xf0] }
 0x29a   :  { %1671 = vmatpush.bf16.msrb.mxu0 %v4096_v29  ;;  %1940 = vmatpush.bf16.msra.mxu1 %v4320_v63  ;;  %v4251_v29 = vld [vmem:[#allocation12 + $0x50] sm:$0xf]  ;;  %v4227_v63 = vld [vmem:[#allocation12 + $0x20] sm:$0xf] }
 0x29b   :  { %v4252_v32 = vor.u32 %v5288_v30, %v4251_v29  ;;  %v4228_v2 = vor.u32 %v5282_v0, %v4227_v63  ;;  %v5339_v29 = vld [vmem:[#allocation13 + $0xf4] sm:$0xf] }
 0x29c   :  { %1913 = vmatpush.bf16.msrb.mxu3 %v4324_v42  ;;  %v4291_v42 = vld [vmem:[#allocation12 + $0xa0] sm:$0xf] }
 0x29d   :  { %1901 = vmatpush.bf16.msrb.mxu2 %v4252_v32  ;;  %v4292_v7 = vor.u32 %v5298_v49, %v4291_v42  ;;  %v4451_v32 = vld [vmem:[#allocation13 + $0xe0] sm:$0xf]  ;;  %v5335_v42 = vld [vmem:[#allocation13 + $0xd4] sm:$0xf]  ;;  %v4445_v49 = vld [vmem:[#allocation13 + $0xd8] sm:$0xf0] }
 0x29e   :  { %1672 = vmatpush.bf16.msrb.mxu0 %v4088_v35  ;;  %1941 = vmatpush.bf16.msra.mxu1 %v4312_v9  ;;  %v5300_v35 = vld [vmem:[#allocation12 + $0xb4] sm:$0xf0]  ;;  %v5293_v9 = vld [vmem:[#allocation12 + $0x84] sm:$0xf]  ;;  %v4452_v38 = vor.u32 %v5338_v33, %v4451_v32  ;;  %v5331_v33 = vld [vmem:[#allocation13 + $0xb4] sm:$0xf] }
 0x29f   :  { %v4300_v37 = vor.u32 %v5300_v35, %v4299_v34  ;;  %v4464_v34 = vor.u32 %v5339_v29, %v4461_v31  ;;  %v5337_v35 = vld [vmem:[#allocation13 + $0xe4] sm:$0xf]  ;;  %v4427_v29 = vld [vmem:[#allocation13 + $0xb0] sm:$0xf] }
 0x2a0   :  { %1914 = vmatpush.bf16.msrb.mxu3 %v4316_v61  ;;  %v4285_v61 = vld [vmem:[#allocation12 + $0x98] sm:$0xf0] }
 0x2a1   :  { %1902 = vmatpush.bf16.msrb.mxu2 %v4244_v46  ;;  %v4443_v46 = vld [vmem:[#allocation13 + $0xd0] sm:$0xf] }
 0x2a2   :  { %1925 = vmatpush.bf16.msra.mxu0 %v4272_v53  ;;  %1942 = vmatpush.bf16.msra.mxu1 %v4304_v41  ;;  %v4235_v53 = vld [vmem:[#allocation12 + $0x30] sm:$0xf]  ;;  %v4397_v41 = vld [vmem:[#allocation13 + $0x78] sm:$0xf0] }
 0x2a3   :  { %v4236_v56 = vor.u32 %v5284_v54, %v4235_v53  ;;  %v4400_v45 = vor.u32 %v5323_v40, %v4397_v41  ;;  %v4389_v53 = vld [vmem:[#allocation13 + $0x68] sm:$0xf0] }
 0x2a4   :  { %1915 = vmatpush.bf16.msrb.mxu3 %v4308_v8  ;;  %v5294_v8 = vld [vmem:[#allocation12 + $0x84] sm:$0xf0] }
 0x2a5   :  { %1903 = vmatpush.bf16.msrb.mxu2 %v4236_v56 }
 0x2a6   :  { %1926 = vmatpush.bf16.msra.mxu0 %v4264_v62  ;;  %1943 = vmatpush.bf16.msra.mxu1 %v4296_v52  ;;  %v4288_v62 = vor.u32 %v5295_v59, %v4285_v61  ;;  %v5321_v52 = vld [vmem:[#allocation13 + $0x64] sm:$0xf]  ;;  %v1476_v61 = vperm.slane %v1471_v48, 1 }
 0x2a7   :  { %v4392_v55 = vor.u32 %v5321_v52, %v4389_v53  ;;  %v5333_v59 = vld [vmem:[#allocation13 + $0xc4] sm:$0xf]  ;;  %v4365_v52 = vld [vmem:[#allocation13 + $0x38] sm:$0xf0] }
 0x2a8   :  { %1916 = vmatpush.bf16.msrb.mxu3 %v4300_v37  ;;  %v4395_v37 = vld [vmem:[#allocation13 + $0x70] sm:$0xf] }
 0x2a9   :  { %1904 = vmatpush.bf16.msrb.mxu2 %v4228_v2  ;;  %v4396_v44 = vor.u32 %v5324_v39, %v4395_v37  ;;  %v5318_v37 = vld [vmem:[#allocation13 + $0x44] sm:$0xf0]  ;;  %v4373_v39 = vld [vmem:[#allocation13 + $0x48] sm:$0xf0] }
 0x2aa   :  { %1927 = vmatpush.bf16.msra.mxu0 %v4256_v36  ;;  %1944 = vmatpush.bf16.msra.mxu1 %v4288_v62  ;;  %v4453_v36 = vld [vmem:[#allocation13 + $0xe8] sm:$0xf0]  ;;  %v4436_v62 = vor.u32 %v5334_v58, %v4435_v57  ;;  %v4355_v58 = vld [vmem:[#allocation13 + $0x20] sm:$0xf] }
 0x2ab   :  { %v4456_v43 = vor.u32 %v5337_v35, %v4453_v36  ;;  %v4371_v35 = vld [vmem:[#allocation13 + $0x40] sm:$0xf] }
 0x2ac   :  { %1917 = vmatpush.bf16.msrb.mxu3 %v4292_v7  ;;  %v4387_v7 = vld [vmem:[#allocation13 + $0x60] sm:$0xf]  ;;  %v4372_v40 = vor.u32 %v5318_v37, %v4371_v35  ;;  %v5355_v37 = vld [vmem:[#allocation15 + $0x74] sm:$0xf] }
 0x2ad   :  { %v4388_v51 = vor.u32 %v5322_v50, %v4387_v7  ;;  %v5316_v7 = vld [vmem:[#allocation13 + $0x34] sm:$0xf0]  ;;  %v5315_v50 = vld [vmem:[#allocation13 + $0x34] sm:$0xf] }
 0x2ae   :  { %1928 = vmatpush.bf16.msra.mxu0 %v4248_v47  ;;  %v5336_v47 = vld [vmem:[#allocation13 + $0xd4] sm:$0xf0]  ;;  %v4368_v53 = vor.u32 %v5315_v50, %v4365_v52  ;;  %v4517_v50 = vld [vmem:[#allocation15 + $0x68] sm:$0xf0] }
 0x2af   :  { %v4444_v54 = vor.u32 %v5336_v47, %v4443_v46  ;;  %v5329_v46 = vld [vmem:[#allocation13 + $0xa4] sm:$0xf]  ;;  %v4421_v47 = vld [vmem:[#allocation13 + $0xa8] sm:$0xf0] }
 0x2b0   :  { %1918 = vmatpush.bf16.msrb.mxu3 %v4284_v60  ;;  %v4437_v60 = vld [vmem:[#allocation13 + $0xc8] sm:$0xf0] }
 0x2b1   :  { %v4440_v63 = vor.u32 %v5333_v59, %v4437_v60  ;;  %v5314_v59 = vld [vmem:[#allocation13 + $0x24] sm:$0xf0]  ;;  %v5313_v60 = vld [vmem:[#allocation13 + $0x24] sm:$0xf] }
 0x2b2   :  { %1929 = vmatpush.bf16.msra.mxu0 %v4240_v5  ;;  %v4448_v5 = vor.u32 %v5335_v42, %v4445_v49  ;;  %v4424_v42 = vor.u32 %v5329_v46, %v4421_v47  ;;  %v4363_v49 = vld [vmem:[#allocation13 + $0x30] sm:$0xf]  ;;  %v4573_v46 = vld [vmem:[#allocation15 + $0xd8] sm:$0xf0]  ;;  %v4515_v47 = vld [vmem:[#allocation15 + $0x60] sm:$0xf] }
 0x308   :  { %v1429_v4 = vpop.f32.mrf.mxu1 }
 0x30e   :  { %v1403_v11 = vpop.f32.mrf.mxu3  ;;  %v1416_v12 = vpop.f32.mrf.mxu0 }
 0x30f   :  { %v1417_v13 = vadd.f32 %v1416_v12, %v1218_v10  ;;  %v4276_v10 = vor.u32 %v5294_v8, %v4275_v6  ;;  %v1475_v6 = vperm.slane %v1471_v48, 0 }
 0x310   :  { %v1431_v14 = vpop.f32.mrf.mxu1 }
 0x311   :  { %v1430_v15 = vadd.f32 %v1429_v4, %v1417_v13  ;;  %v4232_v4 = vor.u32 %v5281_v1, %v4229_v3  ;;  %v4219_v13 = vld [vmem:[#allocation12 + $0x10] sm:$0xf]  ;;  %v5280_v14 = vld [vmem:[#allocation12 + $0x14] sm:$0xf0]  ;;  %1919 = vmatpush.bf16.msrb.mxu3 %v4276_v10 }
 0x313   :  { %vm1434_vm7 = vcmp.ge.f32.partialorder %v1430_v15, 0.0  ;;  %v1436_v17 = vmul.f32 0.2, %v1430_v15  ;;  %1930 = vmatpush.bf16.msra.mxu0 %v4232_v4 }
 0x314   :  { %v1390_v18 = vpop.f32.mrf.mxu2 }
 0x315   :  { %v6117_v19 = vsel %vm1434_vm7, %v1430_v15, %v1436_v17  ;;  %v1391_v20 = vadd.f32 %v1390_v18, %v1217_v16  ;;  %v5279_v15 = vld [vmem:[#allocation12 + $0x14] sm:$0xf]  ;;  %v4220_v16 = vor.u32 %v5280_v14, %v4219_v13  ;;  %v4221_v17 = vld [vmem:[#allocation12 + $0x18] sm:$0xf0] }
 0x316   :  { %v1405_v21 = vpop.f32.mrf.mxu3  ;;  %v1418_v22 = vpop.f32.mrf.mxu0  ;;  %v1473_v23 = vpack.c.bf16 %v6117_v19, %v6117_v19  ;;  %v4224_v18 = vor.u32 %v5279_v15, %v4221_v17 }
 0x317   :  { %v1404_v24 = vadd.f32 %v1403_v11, %v1391_v20  ;;  %v4277_v11 = vld [vmem:[#allocation12 + $0x88] sm:$0xf0]  ;;  %1905 = vmatpush.bf16.msrb.mxu2 %v4220_v16  ;;  %v4211_v20 = vld [vmem:[#allocation12] sm:$0xf]  ;;  %v5278_v21 = vld [vmem:[#allocation12 + $0x4] sm:$0xf0] }
 0x318   :  { %1660 = vmatmul.bf16.vlgmr.msra.gmra.mxu3 %v1473_v23  ;;  %1686 = vmatmul.bf16.vlgmr.msrb.gmra.mxu1 %v1473_v23  ;;  %v4280_v12 = vor.u32 %v5293_v9, %v4277_v11  ;;  %v5277_v22 = vld [vmem:[#allocation12 + $0x4] sm:$0xf]  ;;  %v4212_v23 = vor.u32 %v5278_v21, %v4211_v20 }
 0x319   :  { %vm1433_vm8 = vcmp.ge.f32.partialorder %v1404_v24, 0.0  ;;  %v1435_v25 = vmul.f32 0.2, %v1404_v24  ;;  %1931 = vmatpush.bf16.msra.mxu0 %v4224_v18 }
 0x31a   :  { %1945 = vmatpush.bf16.msra.mxu1 %v4280_v12 }
 0x31b   :  { %v6121_v26 = vsel %vm1433_vm8, %v1404_v24, %v1435_v25  ;;  %v4213_v24 = vld [vmem:[#allocation12 + $0x8] sm:$0xf0]  ;;  %1906 = vmatpush.bf16.msrb.mxu2 %v4212_v23  ;;  %v4379_v23 = vld [vmem:[#allocation13 + $0x50] sm:$0xf] }
 0x31c   :  { %v1392_v27 = vpop.f32.mrf.mxu2  ;;  %v1472_v28 = vpack.c.bf16 %v6121_v26, %v6121_v26  ;;  %v4216_v25 = vor.u32 %v5277_v22, %v4213_v24  ;;  %v5320_v24 = vld [vmem:[#allocation13 + $0x54] sm:$0xf0] }
 0x31d   :  { %v4459_v27 = vld [vmem:[#allocation13 + $0xf0] sm:$0xf] }
 0x31e   :  { %1647 = vmatmul.bf16.vlgmr.msra.gmra.mxu2 %v1472_v28  ;;  %1673 = vmatmul.bf16.vlgmr.msrb.gmra.mxu0 %v1472_v28  ;;  %v5340_v28 = vld [vmem:[#allocation13 + $0xf4] sm:$0xf0] }
 0x31f   :  { %1932 = vmatpush.bf16.msra.mxu0 %v4216_v25  ;;  %v4460_v30 = vor.u32 %v5340_v28, %v4459_v27  ;;  %2198 = vmatpush.bf16.msrb.mxu1 %v4464_v34  ;;  %v5319_v25 = vld [vmem:[#allocation13 + $0x54] sm:$0xf]  ;;  %v4380_v27 = vor.u32 %v5320_v24, %v4379_v23  ;;  %v4381_v28 = vld [vmem:[#allocation13 + $0x58] sm:$0xf0]  ;;  %v4587_v23 = vld [vmem:[#allocation15 + $0xf0] sm:$0xf] }
 0x320   :  { %2159 = vmatpush.bf16.msra.mxu2 %v4396_v44  ;;  %v4384_v31 = vor.u32 %v5319_v25, %v4381_v28  ;;  %v4429_v34 = vld [vmem:[#allocation13 + $0xb8] sm:$0xf0]  ;;  %v5330_v44 = vld [vmem:[#allocation13 + $0xa4] sm:$0xf0]  ;;  %v5372_v24 = vld [vmem:[#allocation15 + $0xf4] sm:$0xf0] }
 0x321   :  { %2172 = vmatpush.bf16.msra.mxu3 %v4460_v30  ;;  %v5332_v30 = vld [vmem:[#allocation13 + $0xb4] sm:$0xf0]  ;;  %v4432_v36 = vor.u32 %v5331_v33, %v4429_v34  ;;  %v5371_v25 = vld [vmem:[#allocation15 + $0xf4] sm:$0xf]  ;;  %v4589_v28 = vld [vmem:[#allocation15 + $0xf8] sm:$0xf0] }
 0x322   :  { %v4428_v32 = vor.u32 %v5332_v30, %v4427_v29  ;;  %v4579_v29 = vld [vmem:[#allocation15 + $0xe0] sm:$0xf]  ;;  %v5370_v30 = vld [vmem:[#allocation15 + $0xe4] sm:$0xf0]  ;;  %v4581_v33 = vld [vmem:[#allocation15 + $0xe8] sm:$0xf0] }
 0x323   :  { %2185 = vmatpush.bf16.msrb.mxu0 %v4400_v45  ;;  %2199 = vmatpush.bf16.msrb.mxu1 %v4456_v43  ;;  %v4419_v43 = vld [vmem:[#allocation13 + $0xa0] sm:$0xf]  ;;  %v4523_v34 = vld [vmem:[#allocation15 + $0x70] sm:$0xf]  ;;  %v4580_v35 = vor.u32 %v5370_v30, %v4579_v29  ;;  %v5364_v29 = vld [vmem:[#allocation15 + $0xb4] sm:$0xf0] }
 0x324   :  { %2160 = vmatpush.bf16.msra.mxu2 %v4388_v51  ;;  %v4420_v45 = vor.u32 %v5330_v44, %v4419_v43  ;;  %v4364_v51 = vor.u32 %v5316_v7, %v4363_v49  ;;  %v4571_v43 = vld [vmem:[#allocation15 + $0xd0] sm:$0xf]  ;;  %v5368_v44 = vld [vmem:[#allocation15 + $0xd4] sm:$0xf0]  ;;  %v5353_v7 = vld [vmem:[#allocation15 + $0x64] sm:$0xf] }
 0x325   :  { %2173 = vmatpush.bf16.msra.mxu3 %v4452_v38  ;;  %v5317_v38 = vld [vmem:[#allocation13 + $0x44] sm:$0xf]  ;;  %v4520_v52 = vor.u32 %v5353_v7, %v4517_v50  ;;  %v5363_v30 = vld [vmem:[#allocation15 + $0xb4] sm:$0xf]  ;;  %v4493_v7 = vld [vmem:[#allocation15 + $0x38] sm:$0xf0] }
 0x326   :  { %v4376_v41 = vor.u32 %v5317_v38, %v4373_v39  ;;  %v4525_v38 = vld [vmem:[#allocation15 + $0x78] sm:$0xf0] }
 0x327   :  { %2186 = vmatpush.bf16.msrb.mxu0 %v4392_v55  ;;  %2200 = vmatpush.bf16.msrb.mxu1 %v4448_v5  ;;  %v5328_v55 = vld [vmem:[#allocation13 + $0x94] sm:$0xf0]  ;;  %v4413_v5 = vld [vmem:[#allocation13 + $0x98] sm:$0xf0] }
 0x328   :  { %2161 = vmatpush.bf16.msra.mxu2 %v4380_v27  ;;  %v4588_v27 = vor.u32 %v5372_v24, %v4587_v23  ;;  %v5351_v23 = vld [vmem:[#allocation15 + $0x54] sm:$0xf] }
 0x329   :  { %2174 = vmatpush.bf16.msra.mxu3 %v4444_v54  ;;  %v4411_v54 = vld [vmem:[#allocation13 + $0x90] sm:$0xf] }
 0x32a   :  { %v4412_v48 = vor.u32 %v5328_v55, %v4411_v54  ;;  %v1731_v54 = vld [vmem:[%s6202_s14] sm:$0x3] }
 0x32b   :  { %2201 = vmatpush.bf16.msrb.mxu1 %v4440_v63  ;;  %2187 = vmatpush.bf16.msrb.mxu0 %v4384_v31  ;;  %v4592_v31 = vor.u32 %v5371_v25, %v4589_v28  ;;  %v4509_v25 = vld [vmem:[#allocation15 + $0x58] sm:$0xf0]  ;;  %v4555_v28 = vld [vmem:[#allocation15 + $0xb0] sm:$0xf] }
 0x32c   :  { %2162 = vmatpush.bf16.msra.mxu2 %v4372_v40 }
 0x32d   :  { %2175 = vmatpush.bf16.msra.mxu3 %v4436_v62  ;;  %v4357_v62 = vld [vmem:[#allocation13 + $0x28] sm:$0xf0] }
 0x32e   :  { %v4360_v63 = vor.u32 %v5313_v60, %v4357_v62 }
 0x32f   :  { %2202 = vmatpush.bf16.msrb.mxu1 %v4432_v36  ;;  %2188 = vmatpush.bf16.msrb.mxu0 %v4376_v41  ;;  %v5356_v36 = vld [vmem:[#allocation15 + $0x74] sm:$0xf0]  ;;  %v4528_v41 = vor.u32 %v5355_v37, %v4525_v38  ;;  %v4501_v37 = vld [vmem:[#allocation15 + $0x48] sm:$0xf0] }
 0x330   :  { %2163 = vmatpush.bf16.msra.mxu2 %v4364_v51  ;;  %v4524_v40 = vor.u32 %v5356_v36, %v4523_v34  ;;  %v4572_v51 = vor.u32 %v5368_v44, %v4571_v43  ;;  %v5349_v36 = vld [vmem:[#allocation15 + $0x44] sm:$0xf]  ;;  %v4549_v44 = vld [vmem:[#allocation15 + $0xa8] sm:$0xf0] }
 0x331   :  { %2176 = vmatpush.bf16.msra.mxu3 %v4428_v32  ;;  %v5369_v32 = vld [vmem:[#allocation15 + $0xe4] sm:$0xf]  ;;  %v4504_v38 = vor.u32 %v5349_v36, %v4501_v37  ;;  %v4699_v37 = vld [vmem:[#allocation16 + $0xd0] sm:$0xf] }
 0x332   :  { %v4584_v39 = vor.u32 %v5369_v32, %v4581_v33  ;;  %v4499_v32 = vld [vmem:[#allocation15 + $0x40] sm:$0xf]  ;;  %v5350_v33 = vld [vmem:[#allocation15 + $0x44] sm:$0xf0] }
 0x333   :  { %2203 = vmatpush.bf16.msrb.mxu1 %v4424_v42  ;;  %2189 = vmatpush.bf16.msrb.mxu0 %v4368_v53  ;;  %v5354_v42 = vld [vmem:[#allocation15 + $0x64] sm:$0xf0] }
 0x334   :  { %v4516_v49 = vor.u32 %v5354_v42, %v4515_v47  ;;  %v5348_v47 = vld [vmem:[#allocation15 + $0x34] sm:$0xf0] }
 0x335   :  { %2177 = vmatpush.bf16.msra.mxu3 %v4420_v45  ;;  %v5367_v45 = vld [vmem:[#allocation15 + $0xd4] sm:$0xf] }
 0x336   :  { %v4576_v55 = vor.u32 %v5367_v45, %v4573_v46  ;;  %v4491_v46 = vld [vmem:[#allocation15 + $0x30] sm:$0xf] }
 0x337   :  { %2190 = vmatpush.bf16.msrb.mxu0 %v4360_v63  ;;  %v4492_v42 = vor.u32 %v5348_v47, %v4491_v46  ;;  %v4645_v46 = vld [vmem:[#allocation16 + $0x68] sm:$0xf0]  ;;  %v1991_v47 = vld [vmem:[%s6204_s16] sm:$0x3] }
 0x339   :  { %2178 = vmatpush.bf16.msra.mxu3 %v4412_v48  ;;  %v5366_v48 = vld [vmem:[#allocation15 + $0xc4] sm:$0xf0] }
 0x395   :  { %v1687_v56 = vpop.f32.mrf.mxu1 }
 0x39b   :  { %v1661_v0 = vpop.f32.mrf.mxu3  ;;  %v1674_v1 = vpop.f32.mrf.mxu0 }
 0x39c   :  { %v1675_v2 = vadd.f32 %v1674_v1, %v1476_v61  ;;  %v4356_v61 = vor.u32 %v5314_v59, %v4355_v58  ;;  %v5326_v1 = vld [vmem:[#allocation13 + $0x84] sm:$0xf0]  ;;  %v1736_v58 = vperm.slane %v1731_v54, 1 }
 0x39d   :  { %v1689_v3 = vpop.f32.mrf.mxu1 }
 0x39e   :  { %v1688_v4 = vadd.f32 %v1687_v56, %v1675_v2  ;;  %v5327_v56 = vld [vmem:[#allocation13 + $0x94] sm:$0xf]  ;;  %v5325_v2 = vld [vmem:[#allocation13 + $0x84] sm:$0xf]  ;;  %2164 = vmatpush.bf16.msra.mxu2 %v4356_v61 }
 0x39f   :  { %v4416_v57 = vor.u32 %v5327_v56, %v4413_v5  ;;  %v4563_v56 = vld [vmem:[#allocation15 + $0xc0] sm:$0xf]  ;;  %v5365_v5 = vld [vmem:[#allocation15 + $0xc4] sm:$0xf] }
 0x3a0   :  { %v1692_v8 = vadd.f32 %v1688_v4, %v6117_v19  ;;  %v4405_v4 = vld [vmem:[#allocation13 + $0x88] sm:$0xf0]  ;;  %v4564_v59 = vor.u32 %v5366_v48, %v4563_v56  ;;  %v4483_v48 = vld [vmem:[#allocation15 + $0x20] sm:$0xf] }
 0x3a1   :  { %v1648_v9 = vpop.f32.mrf.mxu2  ;;  %2204 = vmatpush.bf16.msrb.mxu1 %v4416_v57  ;;  %v4565_v57 = vld [vmem:[#allocation15 + $0xc8] sm:$0xf0] }
 0x3a2   :  { %vm1694_vm9 = vcmp.ge.f32.partialorder %v1692_v8, 0.0  ;;  %v1696_v10 = vmul.f32 0.2, %v1692_v8  ;;  %v1649_v11 = vadd.f32 %v1648_v9, %v1475_v6  ;;  %v4408_v6 = vor.u32 %v5325_v2, %v4405_v4  ;;  %v5312_v9 = vld [vmem:[#allocation13 + $0x14] sm:$0xf0] }
 0x3a3   :  { %v1663_v12 = vpop.f32.mrf.mxu3  ;;  %v1676_v13 = vpop.f32.mrf.mxu0  ;;  %v4568_v60 = vor.u32 %v5365_v5, %v4565_v57  ;;  %v1735_v2 = vperm.slane %v1731_v54, 0  ;;  %v5346_v5 = vld [vmem:[#allocation15 + $0x24] sm:$0xf0]  ;;  %v5345_v57 = vld [vmem:[#allocation15 + $0x24] sm:$0xf] }
 0x3a4   :  { %v1662_v14 = vadd.f32 %v1661_v0, %v1649_v11  ;;  %v6129_v15 = vsel %vm1694_vm9, %v1692_v8, %v1696_v10  ;;  %v4403_v0 = vld [vmem:[#allocation13 + $0x80] sm:$0xf]  ;;  %v4347_v8 = vld [vmem:[#allocation13 + $0x10] sm:$0xf]  ;;  %v5311_v10 = vld [vmem:[#allocation13 + $0x14] sm:$0xf] }
 0x3a5   :  { %v1733_v16 = vpack.c.bf16 %v6129_v15, %v6129_v15  ;;  %v4404_v3 = vor.u32 %v5326_v1, %v4403_v0  ;;  %v4348_v11 = vor.u32 %v5312_v9, %v4347_v8  ;;  %v4349_v12 = vld [vmem:[#allocation13 + $0x18] sm:$0xf0]  ;;  %2205 = vmatpush.bf16.msrb.mxu1 %v4408_v6 }
 0x3a6   :  { %v1691_v17 = vadd.f32 %v1662_v14, %v6121_v26  ;;  %v4352_v13 = vor.u32 %v5311_v10, %v4349_v12  ;;  %v4339_v14 = vld [vmem:[#allocation13] sm:$0xf] }
 0x3a7   :  { %1920 = vmatmul.bf16.vlgmr.msrb.gmra.mxu3 %v1733_v16  ;;  %1946 = vmatmul.bf16.vlgmr.msra.gmra.mxu1 %v1733_v16  ;;  %v5310_v16 = vld [vmem:[#allocation13 + $0x4] sm:$0xf0] }
 0x3a8   :  { %vm1693_vm10 = vcmp.ge.f32.partialorder %v1691_v17, 0.0  ;;  %v1695_v18 = vmul.f32 0.2, %v1691_v17  ;;  %2179 = vmatpush.bf16.msra.mxu3 %v4404_v3  ;;  %2165 = vmatpush.bf16.msra.mxu2 %v4348_v11 }
 0x3a9   :  { %v1650_v20 = vpop.f32.mrf.mxu2  ;;  %2191 = vmatpush.bf16.msrb.mxu0 %v4352_v13  ;;  %2454 = vmatpush.bf16.msra.mxu1 %v4592_v31  ;;  %v4557_v31 = vld [vmem:[#allocation15 + $0xb8] sm:$0xf0] }
 0x3aa   :  { %v6134_v21 = vsel %vm1693_vm10, %v1691_v17, %v1695_v18  ;;  %v5309_v17 = vld [vmem:[#allocation13 + $0x4] sm:$0xf]  ;;  %v4340_v18 = vor.u32 %v5310_v16, %v4339_v14  ;;  %v4341_v20 = vld [vmem:[#allocation13 + $0x8] sm:$0xf0]  ;;  %v4560_v34 = vor.u32 %v5363_v30, %v4557_v31  ;;  %v4651_v30 = vld [vmem:[#allocation16 + $0x70] sm:$0xf] }
 0x3ab   :  { %v1732_v22 = vpack.c.bf16 %v6134_v21, %v6134_v21  ;;  %v5388_v31 = vld [vmem:[#allocation16 + $0x74] sm:$0xf0] }
 0x3ac   :  { %2166 = vmatpush.bf16.msra.mxu2 %v4340_v18  ;;  %2428 = vmatpush.bf16.msrb.mxu3 %v4588_v27  ;;  %v4512_v27 = vor.u32 %v5351_v23, %v4509_v25  ;;  %v4717_v23 = vld [vmem:[#allocation16 + $0xf8] sm:$0xf0]  ;;  %v5402_v25 = vld [vmem:[#allocation16 + $0xe4] sm:$0xf0] }
 0x3ad   :  { %1907 = vmatmul.bf16.vlgmr.msrb.gmra.mxu2 %v1732_v22  ;;  %1933 = vmatmul.bf16.vlgmr.msra.gmra.mxu0 %v1732_v22  ;;  %v4344_v22 = vor.u32 %v5309_v17, %v4341_v20 }
 0x3ae   :  { %2455 = vmatpush.bf16.msra.mxu1 %v4584_v39  ;;  %v4547_v39 = vld [vmem:[#allocation15 + $0xa0] sm:$0xf] }
 0x3af   :  { %2192 = vmatpush.bf16.msrb.mxu0 %v4344_v22  ;;  %v5352_v22 = vld [vmem:[#allocation15 + $0x54] sm:$0xf0] }
 0x3b0   :  { %2415 = vmatpush.bf16.msrb.mxu2 %v4524_v40  ;;  %2429 = vmatpush.bf16.msrb.mxu3 %v4580_v35  ;;  %v4500_v35 = vor.u32 %v5350_v33, %v4499_v32  ;;  %v5362_v40 = vld [vmem:[#allocation15 + $0xa4] sm:$0xf0]  ;;  %v5387_v32 = vld [vmem:[#allocation16 + $0x74] sm:$0xf]  ;;  %v4653_v33 = vld [vmem:[#allocation16 + $0x78] sm:$0xf0] }
 0x3b1   :  { %v4548_v43 = vor.u32 %v5362_v40, %v4547_v39  ;;  %v4656_v36 = vor.u32 %v5387_v32, %v4653_v33  ;;  %v5399_v39 = vld [vmem:[#allocation16 + $0xd4] sm:$0xf]  ;;  %v4701_v40 = vld [vmem:[#allocation16 + $0xd8] sm:$0xf0]  ;;  %v5393_v32 = vld [vmem:[#allocation16 + $0xa4] sm:$0xf] }
 0x3b2   :  { %2456 = vmatpush.bf16.msra.mxu1 %v4576_v55  ;;  %v4541_v55 = vld [vmem:[#allocation15 + $0x98] sm:$0xf0]  ;;  %v4677_v33 = vld [vmem:[#allocation16 + $0xa8] sm:$0xf0] }
 0x3b3   :  { %2441 = vmatpush.bf16.msra.mxu0 %v4528_v41  ;;  %v5361_v41 = vld [vmem:[#allocation15 + $0xa4] sm:$0xf] }
 0x3b4   :  { %2416 = vmatpush.bf16.msrb.mxu2 %v4516_v49  ;;  %2430 = vmatpush.bf16.msrb.mxu3 %v4572_v51  ;;  %v4552_v45 = vor.u32 %v5361_v41, %v4549_v44  ;;  %v5347_v49 = vld [vmem:[#allocation15 + $0x34] sm:$0xf]  ;;  %v4539_v51 = vld [vmem:[#allocation15 + $0x90] sm:$0xf]  ;;  %v4643_v41 = vld [vmem:[#allocation16 + $0x60] sm:$0xf] }
 0x3b5   :  { %v4496_v50 = vor.u32 %v5347_v49, %v4493_v7  ;;  %v4691_v7 = vld [vmem:[#allocation16 + $0xc0] sm:$0xf] }
 0x3b6   :  { %2457 = vmatpush.bf16.msra.mxu1 %v4568_v60 }
 0x3b7   :  { %2442 = vmatpush.bf16.msra.mxu0 %v4520_v52  ;;  %v5360_v52 = vld [vmem:[#allocation15 + $0x94] sm:$0xf0] }
 0x3b8   :  { %2431 = vmatpush.bf16.msrb.mxu3 %v4564_v59  ;;  %v4540_v54 = vor.u32 %v5360_v52, %v4539_v51  ;;  %v4485_v59 = vld [vmem:[#allocation15 + $0x28] sm:$0xf0]  ;;  %v4704_v51 = vor.u32 %v5399_v39, %v4701_v40  ;;  %v4635_v52 = vld [vmem:[#allocation16 + $0x50] sm:$0xf]  ;;  %v5379_v39 = vld [vmem:[#allocation16 + $0x34] sm:$0xf] }
 0x3b9   :  { %v4488_v60 = vor.u32 %v5345_v57, %v4485_v59  ;;  %v4621_v40 = vld [vmem:[#allocation16 + $0x38] sm:$0xf0] }
 0x3ba   :  { %2458 = vmatpush.bf16.msra.mxu1 %v4560_v34 }
 0x3bb   :  { %2443 = vmatpush.bf16.msra.mxu0 %v4512_v27 }
 0x3be   :  { %2459 = vmatpush.bf16.msra.mxu1 %v4552_v45  ;;  %v5385_v45 = vld [vmem:[#allocation16 + $0x64] sm:$0xf] }
 0x3bf   :  { %2444 = vmatpush.bf16.msra.mxu0 %v4504_v38  ;;  %v5400_v38 = vld [vmem:[#allocation16 + $0xd4] sm:$0xf0]  ;;  %v4648_v49 = vor.u32 %v5385_v45, %v4645_v46  ;;  %v5391_v45 = vld [vmem:[#allocation16 + $0x94] sm:$0xf] }
 0x3c3   :  { %2445 = vmatpush.bf16.msra.mxu0 %v4496_v50  ;;  %v5398_v50 = vld [vmem:[#allocation16 + $0xc4] sm:$0xf0] }
 0x3c4   :  { %v4692_v59 = vor.u32 %v5398_v50, %v4691_v7  ;;  %v5378_v7 = vld [vmem:[#allocation16 + $0x24] sm:$0xf0]  ;;  %v5377_v50 = vld [vmem:[#allocation16 + $0x24] sm:$0xf] }
 0x3c7   :  { %2446 = vmatpush.bf16.msra.mxu0 %v4488_v60  ;;  %v1996_v60 = vperm.slane %v1991_v47, 1 }
 0x424   :  { %v1947_v53 = vpop.f32.mrf.mxu1 }
 0x42a   :  { %v1921_v61 = vpop.f32.mrf.mxu3  ;;  %v1934_v62 = vpop.f32.mrf.mxu0 }
 0x42b   :  { %v1935_v63 = vadd.f32 %v1934_v62, %v1736_v58  ;;  %v4484_v58 = vor.u32 %v5346_v5, %v4483_v48  ;;  %v5358_v62 = vld [vmem:[#allocation15 + $0x84] sm:$0xf0]  ;;  %v4693_v48 = vld [vmem:[#allocation16 + $0xc8] sm:$0xf0]  ;;  %v4637_v5 = vld [vmem:[#allocation16 + $0x58] sm:$0xf0] }
 0x42c   :  { %v1949_v0 = vpop.f32.mrf.mxu1 }
 0x42d   :  { %v1948_v1 = vadd.f32 %v1947_v53, %v1935_v63  ;;  %v5359_v53 = vld [vmem:[#allocation15 + $0x94] sm:$0xf]  ;;  %v5357_v0 = vld [vmem:[#allocation15 + $0x84] sm:$0xf] }
 0x42e   :  { %v4544_v56 = vor.u32 %v5359_v53, %v4541_v55  ;;  %v5384_v53 = vld [vmem:[#allocation16 + $0x54] sm:$0xf0] }
 0x42f   :  { %v1952_v3 = vadd.f32 %v1948_v1, %v6129_v15  ;;  %v4507_v15 = vld [vmem:[#allocation15 + $0x50] sm:$0xf]  ;;  %v4533_v1 = vld [vmem:[#allocation15 + $0x88] sm:$0xf0]  ;;  %v4636_v57 = vor.u32 %v5384_v53, %v4635_v52 }
 0x430   :  { %v1908_v4 = vpop.f32.mrf.mxu2  ;;  %v4508_v24 = vor.u32 %v5352_v22, %v4507_v15  ;;  %2460 = vmatpush.bf16.msra.mxu1 %v4544_v56  ;;  %v5403_v15 = vld [vmem:[#allocation16 + $0xf4] sm:$0xf]  ;;  %v5397_v56 = vld [vmem:[#allocation16 + $0xc4] sm:$0xf]  ;;  %v4613_v52 = vld [vmem:[#allocation16 + $0x28] sm:$0xf0] }
 0x431   :  { %vm1954_vm11 = vcmp.ge.f32.partialorder %v1952_v3, 0.0  ;;  %v1956_v6 = vmul.f32 0.2, %v1952_v3  ;;  %v1909_v8 = vadd.f32 %v1908_v4, %v1735_v2  ;;  %v4536_v2 = vor.u32 %v5357_v0, %v4533_v1  ;;  %v5344_v4 = vld [vmem:[#allocation15 + $0x14] sm:$0xf0] }
 0x432   :  { %v1923_v9 = vpop.f32.mrf.mxu3  ;;  %v1936_v10 = vpop.f32.mrf.mxu0  ;;  %2417 = vmatpush.bf16.msrb.mxu2 %v4508_v24  ;;  %v4707_v24 = vld [vmem:[#allocation16 + $0xe0] sm:$0xf]  ;;  %v4720_v27 = vor.u32 %v5403_v15, %v4717_v23  ;;  %v5396_v15 = vld [vmem:[#allocation16 + $0xb4] sm:$0xf0]  ;;  %v4685_v23 = vld [vmem:[#allocation16 + $0xb8] sm:$0xf0]  ;;  %v4616_v53 = vor.u32 %v5377_v50, %v4613_v52 }
 0x433   :  { %v1922_v11 = vadd.f32 %v1921_v61, %v1909_v8  ;;  %v1958_v12 = vsel %vm1954_vm11, %v1952_v3, %v1956_v6  ;;  %v4531_v61 = vld [vmem:[#allocation15 + $0x80] sm:$0xf]  ;;  %v4475_v3 = vld [vmem:[#allocation15 + $0x10] sm:$0xf]  ;;  %v5343_v6 = vld [vmem:[#allocation15 + $0x14] sm:$0xf] }
 0x434   :  { %v1993_v13 = vpack.c.bf16 %v1958_v12, %v1958_v12  ;;  %v4532_v63 = vor.u32 %v5358_v62, %v4531_v61  ;;  %v4476_v8 = vor.u32 %v5344_v4, %v4475_v3  ;;  %v4477_v9 = vld [vmem:[#allocation15 + $0x18] sm:$0xf0]  ;;  %2461 = vmatpush.bf16.msra.mxu1 %v4536_v2  ;;  %v5342_v12 = vld [vmem:[#allocation15 + $0x4] sm:$0xf0]  ;;  %v4696_v61 = vor.u32 %v5397_v56, %v4693_v48  ;;  %v5389_v56 = vld [vmem:[#allocation16 + $0x84] sm:$0xf] }
 0x435   :  { %v1951_v14 = vadd.f32 %v1922_v11, %v6134_v21  ;;  %v4556_v21 = vor.u32 %v5364_v29, %v4555_v28  ;;  %v4480_v10 = vor.u32 %v5343_v6, %v4477_v9  ;;  %v4467_v11 = vld [vmem:[#allocation15] sm:$0xf]  ;;  %v5401_v28 = vld [vmem:[#allocation16 + $0xe4] sm:$0xf]  ;;  %v4709_v29 = vld [vmem:[#allocation16 + $0xe8] sm:$0xf0] }
 0x436   :  { %2180 = vmatmul.bf16.vlgmr.msra.gmra.mxu3 %v1993_v13  ;;  %2206 = vmatmul.bf16.vlgmr.msrb.gmra.mxu1 %v1993_v13  ;;  %v5341_v13 = vld [vmem:[#allocation15 + $0x4] sm:$0xf]  ;;  %v4712_v34 = vor.u32 %v5401_v28, %v4709_v29  ;;  %v1995_v3 = vperm.slane %v1991_v47, 0  ;;  %v4669_v47 = vld [vmem:[#allocation16 + $0x98] sm:$0xf0] }
 0x437   :  { %vm1953_vm12 = vcmp.ge.f32.partialorder %v1951_v14, 0.0  ;;  %v1955_v16 = vmul.f32 0.2, %v1951_v14  ;;  %2432 = vmatpush.bf16.msrb.mxu3 %v4556_v21  ;;  %2418 = vmatpush.bf16.msrb.mxu2 %v4500_v35  ;;  %v4708_v21 = vor.u32 %v5402_v25, %v4707_v24  ;;  %v4652_v35 = vor.u32 %v5388_v31, %v4651_v30  ;;  %v4627_v24 = vld [vmem:[#allocation16 + $0x40] sm:$0xf] }
 0x438   :  { %v1910_v17 = vpop.f32.mrf.mxu2  ;;  %2447 = vmatpush.bf16.msra.mxu0 %v4480_v10  ;;  %2712 = vmatpush.bf16.msrb.mxu1 %v4720_v27  ;;  %v5382_v25 = vld [vmem:[#allocation16 + $0x44] sm:$0xf0]  ;;  %v5381_v29 = vld [vmem:[#allocation16 + $0x44] sm:$0xf]  ;;  %v4629_v30 = vld [vmem:[#allocation16 + $0x48] sm:$0xf0] }
 0x439   :  { %v1957_v18 = vsel %vm1953_vm12, %v1951_v14, %v1955_v16  ;;  %v4468_v14 = vor.u32 %v5342_v12, %v4467_v11  ;;  %v4469_v16 = vld [vmem:[#allocation15 + $0x8] sm:$0xf0]  ;;  %v4628_v28 = vor.u32 %v5382_v25, %v4627_v24  ;;  %v5394_v31 = vld [vmem:[#allocation16 + $0xa4] sm:$0xf0] }
 0x43a   :  { %v1992_v20 = vpack.c.bf16 %v1957_v18, %v1957_v18  ;;  %v4472_v17 = vor.u32 %v5341_v13, %v4469_v16  ;;  %v4715_v18 = vld [vmem:[#allocation16 + $0xf0] sm:$0xf] }
 0x43b   :  { %2433 = vmatpush.bf16.msrb.mxu3 %v4548_v43  ;;  %2419 = vmatpush.bf16.msrb.mxu2 %v4492_v42  ;;  %v5386_v43 = vld [vmem:[#allocation16 + $0x64] sm:$0xf0]  ;;  %v4700_v42 = vor.u32 %v5400_v38, %v4699_v37  ;;  %v5380_v37 = vld [vmem:[#allocation16 + $0x34] sm:$0xf0] }
 0x43c   :  { %2167 = vmatmul.bf16.vlgmr.msra.gmra.mxu2 %v1992_v20  ;;  %2193 = vmatmul.bf16.vlgmr.msrb.gmra.mxu0 %v1992_v20  ;;  %v5404_v20 = vld [vmem:[#allocation16 + $0xf4] sm:$0xf0]  ;;  %v4644_v44 = vor.u32 %v5386_v43, %v4643_v41  ;;  %v4624_v41 = vor.u32 %v5379_v39, %v4621_v40  ;;  %v4667_v43 = vld [vmem:[#allocation16 + $0x90] sm:$0xf]  ;;  %v5430_v39 = vld [vmem:[#allocation18 + $0xc4] sm:$0xf0] }
 0x43d   :  { %2448 = vmatpush.bf16.msra.mxu0 %v4472_v17  ;;  %v4716_v22 = vor.u32 %v5404_v20, %v4715_v18  ;;  %2713 = vmatpush.bf16.msrb.mxu1 %v4712_v34  ;;  %v4683_v20 = vld [vmem:[#allocation16 + $0xb0] sm:$0xf]  ;;  %v5429_v40 = vld [vmem:[#allocation18 + $0xc4] sm:$0xf] }
 0x43f   :  { %2434 = vmatpush.bf16.msrb.mxu3 %v4540_v54  ;;  %2420 = vmatpush.bf16.msrb.mxu2 %v4484_v58  ;;  %v5383_v54 = vld [vmem:[#allocation16 + $0x54] sm:$0xf] }
 0x440   :  { %v4640_v58 = vor.u32 %v5383_v54, %v4637_v5  ;;  %v4659_v54 = vld [vmem:[#allocation16 + $0x80] sm:$0xf]  ;;  %v4661_v5 = vld [vmem:[#allocation16 + $0x88] sm:$0xf0] }
 0x441   :  { %2699 = vmatpush.bf16.msrb.mxu0 %v4656_v36  ;;  %2714 = vmatpush.bf16.msrb.mxu1 %v4704_v51  ;;  %v4619_v36 = vld [vmem:[#allocation16 + $0x30] sm:$0xf] }
 0x442   :  { %v4620_v38 = vor.u32 %v5380_v37, %v4619_v36 }
 0x443   :  { %2435 = vmatpush.bf16.msrb.mxu3 %v4532_v63  ;;  %2421 = vmatpush.bf16.msrb.mxu2 %v4476_v8 }
 0x445   :  { %2700 = vmatpush.bf16.msrb.mxu0 %v4648_v49  ;;  %2715 = vmatpush.bf16.msrb.mxu1 %v4696_v61  ;;  %v4611_v49 = vld [vmem:[#allocation16 + $0x20] sm:$0xf] }
 0x446   :  { %v4612_v51 = vor.u32 %v5378_v7, %v4611_v49 }
 0x447   :  { %2422 = vmatpush.bf16.msrb.mxu2 %v4468_v14  ;;  %2686 = vmatpush.bf16.msra.mxu3 %v4716_v22  ;;  %v5395_v22 = vld [vmem:[#allocation16 + $0xb4] sm:$0xf] }
 0x448   :  { %v4688_v27 = vor.u32 %v5395_v22, %v4685_v23  ;;  %v5420_v22 = vld [vmem:[#allocation18 + $0x74] sm:$0xf0]  ;;  %v4781_v23 = vld [vmem:[#allocation18 + $0x78] sm:$0xf0] }
 0x449   :  { %2701 = vmatpush.bf16.msrb.mxu0 %v4640_v58  ;;  %v4603_v58 = vld [vmem:[#allocation16 + $0x10] sm:$0xf] }
 0x44a   :  { %2716 = vmatpush.bf16.msrb.mxu1 %v4688_v27 }
 0x44b   :  { %2673 = vmatpush.bf16.msra.mxu2 %v4652_v35  ;;  %2687 = vmatpush.bf16.msra.mxu3 %v4708_v21  ;;  %v4675_v21 = vld [vmem:[#allocation16 + $0xa0] sm:$0xf]  ;;  %v4680_v35 = vor.u32 %v5393_v32, %v4677_v33  ;;  %v5417_v33 = vld [vmem:[#allocation18 + $0x64] sm:$0xf] }
 0x44c   :  { %v4676_v34 = vor.u32 %v5394_v31, %v4675_v21  ;;  %v4829_v21 = vld [vmem:[#allocation18 + $0xd8] sm:$0xf0]  ;;  %v5418_v31 = vld [vmem:[#allocation18 + $0x64] sm:$0xf0] }
 0x44e   :  { %2717 = vmatpush.bf16.msrb.mxu1 %v4680_v35 }
 0x44f   :  { %2674 = vmatpush.bf16.msra.mxu2 %v4644_v44  ;;  %2688 = vmatpush.bf16.msra.mxu3 %v4700_v42  ;;  %v5392_v44 = vld [vmem:[#allocation16 + $0x94] sm:$0xf0]  ;;  %v4672_v42 = vor.u32 %v5391_v45, %v4669_v47 }
 0x450   :  { %v4668_v46 = vor.u32 %v5392_v44, %v4667_v43  ;;  %v2247_v44 = vld [vmem:[%s6206_s18] sm:$0x3] }
 0x451   :  { %v2252_v47 = vperm.slane %v2247_v44, 1  ;;  %v2251_v52 = vperm.slane %v2247_v44, 0  ;;  %v4787_v44 = vld [vmem:[#allocation18 + $0x80] sm:$0xf] }
 0x452   :  { %2718 = vmatpush.bf16.msrb.mxu1 %v4672_v42 }
 0x453   :  { %2675 = vmatpush.bf16.msra.mxu2 %v4636_v57  ;;  %2689 = vmatpush.bf16.msra.mxu3 %v4692_v59  ;;  %v4664_v57 = vor.u32 %v5389_v56, %v4661_v5  ;;  %v5376_v59 = vld [vmem:[#allocation16 + $0x14] sm:$0xf0] }
 0x454   :  { %v4604_v61 = vor.u32 %v5376_v59, %v4603_v58 }
 0x456   :  { %2719 = vmatpush.bf16.msrb.mxu1 %v4664_v57 }
 0x457   :  { %2676 = vmatpush.bf16.msra.mxu2 %v4628_v28  ;;  %v4827_v28 = vld [vmem:[#allocation18 + $0xd0] sm:$0xf] }
 0x45b   :  { %2677 = vmatpush.bf16.msra.mxu2 %v4620_v38  ;;  %v4819_v38 = vld [vmem:[#allocation18 + $0xc0] sm:$0xf] }
 0x45c   :  { %v4820_v45 = vor.u32 %v5430_v39, %v4819_v38  ;;  %v5410_v38 = vld [vmem:[#allocation18 + $0x24] sm:$0xf0]  ;;  %v5409_v39 = vld [vmem:[#allocation18 + $0x24] sm:$0xf] }
 0x45f   :  { %2678 = vmatpush.bf16.msra.mxu2 %v4612_v51 }
 0x463   :  { %2679 = vmatpush.bf16.msra.mxu2 %v4604_v61 }
 0x4b3   :  { %v2207_v55 = vpop.f32.mrf.mxu1 }
 0x4b9   :  { %v2181_v62 = vpop.f32.mrf.mxu3  ;;  %v2194_v63 = vpop.f32.mrf.mxu0 }
 0x4ba   :  { %v2195_v0 = vadd.f32 %v2194_v63, %v1996_v60  ;;  %v5375_v60 = vld [vmem:[#allocation16 + $0x14] sm:$0xf] }
 0x4bb   :  { %v2209_v1 = vpop.f32.mrf.mxu1 }
 0x4bc   :  { %v2208_v2 = vadd.f32 %v2207_v55, %v2195_v0  ;;  %v5390_v55 = vld [vmem:[#allocation16 + $0x84] sm:$0xf0]  ;;  %v4595_v0 = vld [vmem:[#allocation16] sm:$0xf] }
 0x4bd   :  { %v4660_v48 = vor.u32 %v5390_v55, %v4659_v54  ;;  %v5374_v1 = vld [vmem:[#allocation16 + $0x4] sm:$0xf0] }
 0x4be   :  { %v2212_v4 = vadd.f32 %v2208_v2, %v6117_v19  ;;  %v4684_v19 = vor.u32 %v5396_v15, %v4683_v20  ;;  %v5373_v2 = vld [vmem:[#allocation16 + $0x4] sm:$0xf]  ;;  %v4779_v20 = vld [vmem:[#allocation18 + $0x70] sm:$0xf] }
 0x4bf   :  { %v2168_v6 = vpop.f32.mrf.mxu2  ;;  %v4780_v25 = vor.u32 %v5420_v22, %v4779_v20  ;;  %v5426_v22 = vld [vmem:[#allocation18 + $0xa4] sm:$0xf0] }
 0x4c0   :  { %v2214_v8 = vmax.f32 %v2212_v4, 0.0  ;;  %v2169_v9 = vadd.f32 %v2168_v6, %v1995_v3  ;;  %2690 = vmatpush.bf16.msra.mxu3 %v4684_v19  ;;  %v4596_v3 = vor.u32 %v5374_v1, %v4595_v0  ;;  %v4597_v4 = vld [vmem:[#allocation16 + $0x8] sm:$0xf0]  ;;  %v5419_v19 = vld [vmem:[#allocation18 + $0x74] sm:$0xf] }
 0x4c1   :  { %v2183_v10 = vpop.f32.mrf.mxu3  ;;  %v2196_v11 = vpop.f32.mrf.mxu0  ;;  %v4600_v6 = vor.u32 %v5373_v2, %v4597_v4  ;;  %v4784_v27 = vor.u32 %v5419_v19, %v4781_v23  ;;  %v5416_v0 = vld [vmem:[#allocation18 + $0x54] sm:$0xf0]  ;;  %v5415_v1 = vld [vmem:[#allocation18 + $0x54] sm:$0xf]  ;;  %v4811_v4 = vld [vmem:[#allocation18 + $0xb0] sm:$0xf] }
 0x4c2   :  { %v2249_v12 = vpack.c.bf16 %v2214_v8, %v2214_v8  ;;  %v2182_v13 = vadd.f32 %v2181_v62, %v2169_v9  ;;  %v4605_v62 = vld [vmem:[#allocation16 + $0x18] sm:$0xf0]  ;;  %2680 = vmatpush.bf16.msra.mxu2 %v4596_v3  ;;  %v4843_v8 = vld [vmem:[#allocation18 + $0xf0] sm:$0xf]  ;;  %v5436_v9 = vld [vmem:[#allocation18 + $0xf4] sm:$0xf0] }
 0x4c3   :  { %v4608_v63 = vor.u32 %v5375_v60, %v4605_v62  ;;  %v5435_v10 = vld [vmem:[#allocation18 + $0xf4] sm:$0xf]  ;;  %v4844_v11 = vor.u32 %v5436_v9, %v4843_v8  ;;  %v4765_v3 = vld [vmem:[#allocation18 + $0x58] sm:$0xf0]  ;;  %v5425_v23 = vld [vmem:[#allocation18 + $0xa4] sm:$0xf] }
 0x4c4   :  { %v2211_v14 = vadd.f32 %v2182_v13, %v6121_v26  ;;  %2436 = vmatmul.bf16.vlgmr.msrb.gmra.mxu3 %v2249_v12  ;;  %2462 = vmatmul.bf16.vlgmr.msra.gmra.mxu1 %v2249_v12  ;;  %v4632_v26 = vor.u32 %v5381_v29, %v4629_v30  ;;  %v4845_v12 = vld [vmem:[#allocation18 + $0xf8] sm:$0xf0]  ;;  %v4835_v13 = vld [vmem:[#allocation18 + $0xe0] sm:$0xf]  ;;  %v5432_v29 = vld [vmem:[#allocation18 + $0xd4] sm:$0xf0]  ;;  %v4768_v8 = vor.u32 %v5415_v1, %v4765_v3 }
 0x4c5   :  { %2691 = vmatpush.bf16.msra.mxu3 %v4676_v34  ;;  %v5431_v30 = vld [vmem:[#allocation18 + $0xd4] sm:$0xf]  ;;  %v4773_v34 = vld [vmem:[#allocation18 + $0x68] sm:$0xf0]  ;;  %v4828_v35 = vor.u32 %v5432_v29, %v4827_v28  ;;  %v5412_v28 = vld [vmem:[#allocation18 + $0x34] sm:$0xf0] }
 0x4c6   :  { %v2213_v16 = vmax.f32 %v2211_v14, 0.0  ;;  %2702 = vmatpush.bf16.msrb.mxu0 %v4632_v26  ;;  %v5434_v14 = vld [vmem:[#allocation18 + $0xe4] sm:$0xf0]  ;;  %v4771_v26 = vld [vmem:[#allocation18 + $0x60] sm:$0xf]  ;;  %v4776_v36 = vor.u32 %v5417_v33, %v4773_v34  ;;  %v4832_v37 = vor.u32 %v5431_v30, %v4829_v21 }
 0x4c7   :  { %v2170_v17 = vpop.f32.mrf.mxu2  ;;  %v4836_v15 = vor.u32 %v5434_v14, %v4835_v13  ;;  %v4772_v32 = vor.u32 %v5418_v31, %v4771_v26  ;;  %v5414_v14 = vld [vmem:[#allocation18 + $0x44] sm:$0xf0]  ;;  %v5411_v29 = vld [vmem:[#allocation18 + $0x34] sm:$0xf]  ;;  %v4749_v21 = vld [vmem:[#allocation18 + $0x38] sm:$0xf0] }
 0x4c8   :  { %v2248_v18 = vpack.c.bf16 %v2213_v16, %v2213_v16  ;;  %v4848_v16 = vor.u32 %v5435_v10, %v4845_v12  ;;  %v5433_v17 = vld [vmem:[#allocation18 + $0xe4] sm:$0xf]  ;;  %v5427_v10 = vld [vmem:[#allocation18 + $0xb4] sm:$0xf]  ;;  %v4755_v12 = vld [vmem:[#allocation18 + $0x40] sm:$0xf]  ;;  %v4752_v26 = vor.u32 %v5411_v29, %v4749_v21 }
 0x4c9   :  { %2692 = vmatpush.bf16.msra.mxu3 %v4668_v46  ;;  %v4795_v31 = vld [vmem:[#allocation18 + $0x90] sm:$0xf]  ;;  %v5423_v33 = vld [vmem:[#allocation18 + $0x94] sm:$0xf]  ;;  %v4973_v1 = vld [vmem:[#allocation19 + $0xf8] sm:$0xf0] }
 0x4ca   :  { %2423 = vmatmul.bf16.vlgmr.msrb.gmra.mxu2 %v2248_v18  ;;  %2449 = vmatmul.bf16.vlgmr.msra.gmra.mxu0 %v2248_v18  ;;  %v4837_v18 = vld [vmem:[#allocation18 + $0xe8] sm:$0xf0]  ;;  %v5466_v3 = vld [vmem:[#allocation19 + $0xe4] sm:$0xf0]  ;;  %v2505_v21 = vld [vmem:[%s6208_s20] sm:$0x3] }
 0x4cb   :  { %2703 = vmatpush.bf16.msrb.mxu0 %v4624_v41  ;;  %2972 = vmatpush.bf16.msra.mxu1 %v4848_v16  ;;  %v4840_v24 = vor.u32 %v5433_v17, %v4837_v18  ;;  %v4821_v41 = vld [vmem:[#allocation18 + $0xc8] sm:$0xf0]  ;;  %v5413_v16 = vld [vmem:[#allocation18 + $0x44] sm:$0xf]  ;;  %v4756_v18 = vor.u32 %v5414_v14, %v4755_v12  ;;  %v5451_v12 = vld [vmem:[#allocation19 + $0x74] sm:$0xf] }
 0x4cc   :  { %2933 = vmatpush.bf16.msrb.mxu2 %v4780_v25  ;;  %v4824_v46 = vor.u32 %v5429_v40, %v4821_v41  ;;  %v4757_v17 = vld [vmem:[#allocation18 + $0x48] sm:$0xf0] }
 0x4cd   :  { %2693 = vmatpush.bf16.msra.mxu3 %v4660_v48  ;;  %v4760_v20 = vor.u32 %v5413_v16, %v4757_v17  ;;  %v4741_v41 = vld [vmem:[#allocation18 + $0x28] sm:$0xf0] }
 0x4cf   :  { %2704 = vmatpush.bf16.msrb.mxu0 %v4616_v53  ;;  %2973 = vmatpush.bf16.msra.mxu1 %v4840_v24  ;;  %v4805_v24 = vld [vmem:[#allocation18 + $0xa8] sm:$0xf0] }
 0x4d0   :  { %2934 = vmatpush.bf16.msrb.mxu2 %v4772_v32  ;;  %v4808_v25 = vor.u32 %v5425_v23, %v4805_v24  ;;  %v5424_v32 = vld [vmem:[#allocation18 + $0x94] sm:$0xf0]  ;;  %v5450_v23 = vld [vmem:[#allocation19 + $0x64] sm:$0xf0] }
 0x4d1   :  { %2946 = vmatpush.bf16.msrb.mxu3 %v4844_v11  ;;  %v4813_v11 = vld [vmem:[#allocation18 + $0xb8] sm:$0xf0]  ;;  %v4796_v34 = vor.u32 %v5424_v32, %v4795_v31  ;;  %v4947_v31 = vld [vmem:[#allocation19 + $0xc0] sm:$0xf]  ;;  %v5462_v32 = vld [vmem:[#allocation19 + $0xc4] sm:$0xf0] }
 0x4d2   :  { %v4816_v13 = vor.u32 %v5427_v10, %v4813_v11  ;;  %v5452_v11 = vld [vmem:[#allocation19 + $0x74] sm:$0xf0] }
 0x4d3   :  { %2705 = vmatpush.bf16.msrb.mxu0 %v4608_v63  ;;  %2974 = vmatpush.bf16.msra.mxu1 %v4832_v37  ;;  %v4763_v63 = vld [vmem:[#allocation18 + $0x50] sm:$0xf]  ;;  %v4739_v37 = vld [vmem:[#allocation18 + $0x20] sm:$0xf] }
 0x4d4   :  { %v4764_v2 = vor.u32 %v5416_v0, %v4763_v63  ;;  %v4740_v40 = vor.u32 %v5410_v38, %v4739_v37  ;;  %v5467_v63 = vld [vmem:[#allocation19 + $0xf4] sm:$0xf] }
 0x4d5   :  { %2947 = vmatpush.bf16.msrb.mxu3 %v4836_v15  ;;  %v4803_v15 = vld [vmem:[#allocation18 + $0xa0] sm:$0xf] }
 0x4d6   :  { %2935 = vmatpush.bf16.msrb.mxu2 %v4764_v2  ;;  %v4804_v19 = vor.u32 %v5426_v22, %v4803_v15  ;;  %v4963_v2 = vld [vmem:[#allocation19 + $0xe0] sm:$0xf]  ;;  %v5463_v15 = vld [vmem:[#allocation19 + $0xd4] sm:$0xf]  ;;  %v4957_v22 = vld [vmem:[#allocation19 + $0xd8] sm:$0xf0] }
 0x4d7   :  { %2706 = vmatpush.bf16.msrb.mxu0 %v4600_v6  ;;  %2975 = vmatpush.bf16.msra.mxu1 %v4824_v46  ;;  %v5428_v6 = vld [vmem:[#allocation18 + $0xb4] sm:$0xf0]  ;;  %v5421_v46 = vld [vmem:[#allocation18 + $0x84] sm:$0xf]  ;;  %v4964_v10 = vor.u32 %v5466_v3, %v4963_v2  ;;  %v5459_v3 = vld [vmem:[#allocation19 + $0xb4] sm:$0xf] }
 0x4d8   :  { %v4812_v9 = vor.u32 %v5428_v6, %v4811_v4  ;;  %v4976_v4 = vor.u32 %v5467_v63, %v4973_v1  ;;  %v5465_v6 = vld [vmem:[#allocation19 + $0xe4] sm:$0xf]  ;;  %v4939_v63 = vld [vmem:[#allocation19 + $0xb0] sm:$0xf] }
 0x4d9   :  { %2948 = vmatpush.bf16.msrb.mxu3 %v4828_v35  ;;  %v4797_v35 = vld [vmem:[#allocation18 + $0x98] sm:$0xf0] }
 0x4da   :  { %2936 = vmatpush.bf16.msrb.mxu2 %v4756_v18  ;;  %v4955_v18 = vld [vmem:[#allocation19 + $0xd0] sm:$0xf] }
 0x4db   :  { %2959 = vmatpush.bf16.msra.mxu0 %v4784_v27  ;;  %2976 = vmatpush.bf16.msra.mxu1 %v4816_v13  ;;  %v4747_v27 = vld [vmem:[#allocation18 + $0x30] sm:$0xf]  ;;  %v4909_v13 = vld [vmem:[#allocation19 + $0x78] sm:$0xf0] }
 0x4dc   :  { %v4748_v30 = vor.u32 %v5412_v28, %v4747_v27  ;;  %v4912_v17 = vor.u32 %v5451_v12, %v4909_v13  ;;  %v4901_v27 = vld [vmem:[#allocation19 + $0x68] sm:$0xf0] }
 0x4dd   :  { %2949 = vmatpush.bf16.msrb.mxu3 %v4820_v45  ;;  %v5422_v45 = vld [vmem:[#allocation18 + $0x84] sm:$0xf0] }
 0x4de   :  { %2937 = vmatpush.bf16.msrb.mxu2 %v4748_v30 }
 0x4df   :  { %2960 = vmatpush.bf16.msra.mxu0 %v4776_v36  ;;  %2977 = vmatpush.bf16.msra.mxu1 %v4808_v25  ;;  %v4800_v36 = vor.u32 %v5423_v33, %v4797_v35  ;;  %v5449_v25 = vld [vmem:[#allocation19 + $0x64] sm:$0xf]  ;;  %v2510_v35 = vperm.slane %v2505_v21, 1 }
 0x4e0   :  { %v4904_v29 = vor.u32 %v5449_v25, %v4901_v27  ;;  %v5461_v33 = vld [vmem:[#allocation19 + $0xc4] sm:$0xf]  ;;  %v4877_v25 = vld [vmem:[#allocation19 + $0x38] sm:$0xf0] }
 0x4e1   :  { %2950 = vmatpush.bf16.msrb.mxu3 %v4812_v9  ;;  %v4907_v9 = vld [vmem:[#allocation19 + $0x70] sm:$0xf] }
 0x4e2   :  { %2938 = vmatpush.bf16.msrb.mxu2 %v4740_v40  ;;  %v4908_v16 = vor.u32 %v5452_v11, %v4907_v9  ;;  %v5446_v9 = vld [vmem:[#allocation19 + $0x44] sm:$0xf0]  ;;  %v4885_v11 = vld [vmem:[#allocation19 + $0x48] sm:$0xf0] }
 0x4e3   :  { %2961 = vmatpush.bf16.msra.mxu0 %v4768_v8  ;;  %2978 = vmatpush.bf16.msra.mxu1 %v4800_v36  ;;  %v4965_v8 = vld [vmem:[#allocation19 + $0xe8] sm:$0xf0]  ;;  %v4948_v36 = vor.u32 %v5462_v32, %v4947_v31  ;;  %v4867_v32 = vld [vmem:[#allocation19 + $0x20] sm:$0xf] }
 0x4e4   :  { %v4968_v14 = vor.u32 %v5465_v6, %v4965_v8  ;;  %v4883_v6 = vld [vmem:[#allocation19 + $0x40] sm:$0xf] }
 0x4e5   :  { %2951 = vmatpush.bf16.msrb.mxu3 %v4804_v19  ;;  %v4899_v19 = vld [vmem:[#allocation19 + $0x60] sm:$0xf]  ;;  %v4884_v12 = vor.u32 %v5446_v9, %v4883_v6  ;;  %v5483_v9 = vld [vmem:[#allocation21 + $0x74] sm:$0xf] }
 0x4e6   :  { %v4900_v24 = vor.u32 %v5450_v23, %v4899_v19  ;;  %v5444_v19 = vld [vmem:[#allocation19 + $0x34] sm:$0xf0]  ;;  %v5443_v23 = vld [vmem:[#allocation19 + $0x34] sm:$0xf] }
 0x4e7   :  { %2962 = vmatpush.bf16.msra.mxu0 %v4760_v20  ;;  %v5464_v20 = vld [vmem:[#allocation19 + $0xd4] sm:$0xf0]  ;;  %v4880_v27 = vor.u32 %v5443_v23, %v4877_v25  ;;  %v5029_v23 = vld [vmem:[#allocation21 + $0x68] sm:$0xf0] }
 0x4e8   :  { %v4956_v28 = vor.u32 %v5464_v20, %v4955_v18  ;;  %v5457_v18 = vld [vmem:[#allocation19 + $0xa4] sm:$0xf]  ;;  %v4933_v20 = vld [vmem:[#allocation19 + $0xa8] sm:$0xf0] }
 0x4e9   :  { %2952 = vmatpush.bf16.msrb.mxu3 %v4796_v34  ;;  %v4949_v34 = vld [vmem:[#allocation19 + $0xc8] sm:$0xf0] }
 0x4ea   :  { %v4952_v37 = vor.u32 %v5461_v33, %v4949_v34  ;;  %v5442_v33 = vld [vmem:[#allocation19 + $0x24] sm:$0xf0]  ;;  %v5441_v34 = vld [vmem:[#allocation19 + $0x24] sm:$0xf] }
 0x4eb   :  { %2963 = vmatpush.bf16.msra.mxu0 %v4752_v26  ;;  %v4960_v26 = vor.u32 %v5463_v15, %v4957_v22  ;;  %v4936_v15 = vor.u32 %v5457_v18, %v4933_v20  ;;  %v4875_v22 = vld [vmem:[#allocation19 + $0x30] sm:$0xf]  ;;  %v5085_v18 = vld [vmem:[#allocation21 + $0xd8] sm:$0xf0]  ;;  %v5027_v20 = vld [vmem:[#allocation21 + $0x60] sm:$0xf] }
 0x541   :  { %v2463_v43 = vpop.f32.mrf.mxu1 }
 0x547   :  { %v2437_v42 = vpop.f32.mrf.mxu3  ;;  %v2450_v49 = vpop.f32.mrf.mxu0 }
 0x548   :  { %v2451_v7 = vadd.f32 %v2450_v49, %v2252_v47  ;;  %v4788_v47 = vor.u32 %v5422_v45, %v4787_v44  ;;  %v2509_v44 = vperm.slane %v2505_v21, 0 }
 0x549   :  { %v2465_v50 = vpop.f32.mrf.mxu1 }
 0x54a   :  { %v2464_v51 = vadd.f32 %v2463_v43, %v2451_v7  ;;  %v4744_v43 = vor.u32 %v5409_v39, %v4741_v41  ;;  %v4731_v7 = vld [vmem:[#allocation18 + $0x10] sm:$0xf]  ;;  %v5408_v50 = vld [vmem:[#allocation18 + $0x14] sm:$0xf0]  ;;  %2953 = vmatpush.bf16.msrb.mxu3 %v4788_v47 }
 0x54c   :  { %vm2468_vm13 = vcmp.ge.f32.partialorder %v2464_v51, 0.0  ;;  %v2470_v53 = vmul.f32 0.2, %v2464_v51  ;;  %2964 = vmatpush.bf16.msra.mxu0 %v4744_v43 }
 0x54d   :  { %v2424_v54 = vpop.f32.mrf.mxu2 }
 0x54e   :  { %v6151_v55 = vsel %vm2468_vm13, %v2464_v51, %v2470_v53  ;;  %v2425_v56 = vadd.f32 %v2424_v54, %v2251_v52  ;;  %v5407_v51 = vld [vmem:[#allocation18 + $0x14] sm:$0xf]  ;;  %v4732_v52 = vor.u32 %v5408_v50, %v4731_v7  ;;  %v4733_v53 = vld [vmem:[#allocation18 + $0x18] sm:$0xf0] }
 0x54f   :  { %v2439_v48 = vpop.f32.mrf.mxu3  ;;  %v2452_v5 = vpop.f32.mrf.mxu0  ;;  %v2507_v57 = vpack.c.bf16 %v6151_v55, %v6151_v55  ;;  %v4736_v54 = vor.u32 %v5407_v51, %v4733_v53 }
 0x550   :  { %v2438_v58 = vadd.f32 %v2437_v42, %v2425_v56  ;;  %v4789_v42 = vld [vmem:[#allocation18 + $0x88] sm:$0xf0]  ;;  %2939 = vmatpush.bf16.msrb.mxu2 %v4732_v52  ;;  %v4723_v56 = vld [vmem:[#allocation18] sm:$0xf]  ;;  %v5406_v48 = vld [vmem:[#allocation18 + $0x4] sm:$0xf0] }
 0x551   :  { %2694 = vmatmul.bf16.vlgmr.msra.gmra.mxu3 %v2507_v57  ;;  %2720 = vmatmul.bf16.vlgmr.msrb.gmra.mxu1 %v2507_v57  ;;  %v4792_v49 = vor.u32 %v5421_v46, %v4789_v42  ;;  %v5405_v5 = vld [vmem:[#allocation18 + $0x4] sm:$0xf]  ;;  %v4724_v57 = vor.u32 %v5406_v48, %v4723_v56 }
 0x552   :  { %vm2467_vm14 = vcmp.ge.f32.partialorder %v2438_v58, 0.0  ;;  %v2469_v59 = vmul.f32 0.2, %v2438_v58  ;;  %2965 = vmatpush.bf16.msra.mxu0 %v4736_v54 }
 0x553   :  { %2979 = vmatpush.bf16.msra.mxu1 %v4792_v49 }
 0x554   :  { %v6155_v60 = vsel %vm2467_vm14, %v2438_v58, %v2469_v59  ;;  %v4725_v58 = vld [vmem:[#allocation18 + $0x8] sm:$0xf0]  ;;  %2940 = vmatpush.bf16.msrb.mxu2 %v4724_v57  ;;  %v4891_v57 = vld [vmem:[#allocation19 + $0x50] sm:$0xf] }
 0x555   :  { %v2426_v61 = vpop.f32.mrf.mxu2  ;;  %v2506_v62 = vpack.c.bf16 %v6155_v60, %v6155_v60  ;;  %v4728_v59 = vor.u32 %v5405_v5, %v4725_v58  ;;  %v5448_v58 = vld [vmem:[#allocation19 + $0x54] sm:$0xf0] }
 0x556   :  { %v4971_v61 = vld [vmem:[#allocation19 + $0xf0] sm:$0xf] }
 0x557   :  { %2681 = vmatmul.bf16.vlgmr.msra.gmra.mxu2 %v2506_v62  ;;  %2707 = vmatmul.bf16.vlgmr.msrb.gmra.mxu0 %v2506_v62  ;;  %v5468_v62 = vld [vmem:[#allocation19 + $0xf4] sm:$0xf0] }
 0x558   :  { %2966 = vmatpush.bf16.msra.mxu0 %v4728_v59  ;;  %v4972_v0 = vor.u32 %v5468_v62, %v4971_v61  ;;  %3232 = vmatpush.bf16.msrb.mxu1 %v4976_v4  ;;  %v5447_v59 = vld [vmem:[#allocation19 + $0x54] sm:$0xf]  ;;  %v4892_v61 = vor.u32 %v5448_v58, %v4891_v57  ;;  %v4893_v62 = vld [vmem:[#allocation19 + $0x58] sm:$0xf0]  ;;  %v5099_v57 = vld [vmem:[#allocation21 + $0xf0] sm:$0xf] }
 0x559   :  { %3193 = vmatpush.bf16.msra.mxu2 %v4908_v16  ;;  %v4896_v1 = vor.u32 %v5447_v59, %v4893_v62  ;;  %v4941_v4 = vld [vmem:[#allocation19 + $0xb8] sm:$0xf0]  ;;  %v5458_v16 = vld [vmem:[#allocation19 + $0xa4] sm:$0xf0]  ;;  %v5500_v58 = vld [vmem:[#allocation21 + $0xf4] sm:$0xf0] }
 0x55a   :  { %3206 = vmatpush.bf16.msra.mxu3 %v4972_v0  ;;  %v5460_v0 = vld [vmem:[#allocation19 + $0xb4] sm:$0xf0]  ;;  %v4944_v8 = vor.u32 %v5459_v3, %v4941_v4  ;;  %v5499_v59 = vld [vmem:[#allocation21 + $0xf4] sm:$0xf]  ;;  %v5101_v62 = vld [vmem:[#allocation21 + $0xf8] sm:$0xf0] }
 0x55b   :  { %v4940_v2 = vor.u32 %v5460_v0, %v4939_v63  ;;  %v5091_v63 = vld [vmem:[#allocation21 + $0xe0] sm:$0xf]  ;;  %v5498_v0 = vld [vmem:[#allocation21 + $0xe4] sm:$0xf0]  ;;  %v5093_v3 = vld [vmem:[#allocation21 + $0xe8] sm:$0xf0] }
 0x55c   :  { %3219 = vmatpush.bf16.msrb.mxu0 %v4912_v17  ;;  %3233 = vmatpush.bf16.msrb.mxu1 %v4968_v14  ;;  %v4931_v14 = vld [vmem:[#allocation19 + $0xa0] sm:$0xf]  ;;  %v5035_v4 = vld [vmem:[#allocation21 + $0x70] sm:$0xf]  ;;  %v5092_v6 = vor.u32 %v5498_v0, %v5091_v63  ;;  %v5492_v63 = vld [vmem:[#allocation21 + $0xb4] sm:$0xf0] }
 0x55d   :  { %3194 = vmatpush.bf16.msra.mxu2 %v4900_v24  ;;  %v4932_v17 = vor.u32 %v5458_v16, %v4931_v14  ;;  %v4876_v24 = vor.u32 %v5444_v19, %v4875_v22  ;;  %v5083_v14 = vld [vmem:[#allocation21 + $0xd0] sm:$0xf]  ;;  %v5496_v16 = vld [vmem:[#allocation21 + $0xd4] sm:$0xf0]  ;;  %v5481_v19 = vld [vmem:[#allocation21 + $0x64] sm:$0xf] }
 0x55e   :  { %3207 = vmatpush.bf16.msra.mxu3 %v4964_v10  ;;  %v5445_v10 = vld [vmem:[#allocation19 + $0x44] sm:$0xf]  ;;  %v5032_v25 = vor.u32 %v5481_v19, %v5029_v23  ;;  %v5491_v0 = vld [vmem:[#allocation21 + $0xb4] sm:$0xf]  ;;  %v5005_v19 = vld [vmem:[#allocation21 + $0x38] sm:$0xf0] }
 0x55f   :  { %v4888_v13 = vor.u32 %v5445_v10, %v4885_v11  ;;  %v5037_v10 = vld [vmem:[#allocation21 + $0x78] sm:$0xf0] }
 0x560   :  { %3220 = vmatpush.bf16.msrb.mxu0 %v4904_v29  ;;  %3234 = vmatpush.bf16.msrb.mxu1 %v4960_v26  ;;  %v5456_v29 = vld [vmem:[#allocation19 + $0x94] sm:$0xf0]  ;;  %v4925_v26 = vld [vmem:[#allocation19 + $0x98] sm:$0xf0] }
 0x561   :  { %3195 = vmatpush.bf16.msra.mxu2 %v4892_v61  ;;  %v5100_v61 = vor.u32 %v5500_v58, %v5099_v57  ;;  %v5479_v57 = vld [vmem:[#allocation21 + $0x54] sm:$0xf] }
 0x562   :  { %3208 = vmatpush.bf16.msra.mxu3 %v4956_v28  ;;  %v4923_v28 = vld [vmem:[#allocation19 + $0x90] sm:$0xf] }
 0x563   :  { %v4924_v21 = vor.u32 %v5456_v29, %v4923_v28  ;;  %v2765_v28 = vld [vmem:[%s6210_s22] sm:$0x3] }
 0x564   :  { %3235 = vmatpush.bf16.msrb.mxu1 %v4952_v37  ;;  %3221 = vmatpush.bf16.msrb.mxu0 %v4896_v1  ;;  %v5104_v1 = vor.u32 %v5499_v59, %v5101_v62  ;;  %v5021_v59 = vld [vmem:[#allocation21 + $0x58] sm:$0xf0]  ;;  %v5067_v62 = vld [vmem:[#allocation21 + $0xb0] sm:$0xf] }
 0x565   :  { %3196 = vmatpush.bf16.msra.mxu2 %v4884_v12 }
 0x566   :  { %3209 = vmatpush.bf16.msra.mxu3 %v4948_v36  ;;  %v4869_v36 = vld [vmem:[#allocation19 + $0x28] sm:$0xf0] }
 0x567   :  { %v4872_v37 = vor.u32 %v5441_v34, %v4869_v36 }
 0x568   :  { %3236 = vmatpush.bf16.msrb.mxu1 %v4944_v8  ;;  %3222 = vmatpush.bf16.msrb.mxu0 %v4888_v13  ;;  %v5484_v8 = vld [vmem:[#allocation21 + $0x74] sm:$0xf0]  ;;  %v5040_v13 = vor.u32 %v5483_v9, %v5037_v10  ;;  %v5013_v9 = vld [vmem:[#allocation21 + $0x48] sm:$0xf0] }
 0x569   :  { %3197 = vmatpush.bf16.msra.mxu2 %v4876_v24  ;;  %v5036_v12 = vor.u32 %v5484_v8, %v5035_v4  ;;  %v5084_v24 = vor.u32 %v5496_v16, %v5083_v14  ;;  %v5477_v8 = vld [vmem:[#allocation21 + $0x44] sm:$0xf]  ;;  %v5061_v16 = vld [vmem:[#allocation21 + $0xa8] sm:$0xf0] }
 0x56a   :  { %3210 = vmatpush.bf16.msra.mxu3 %v4940_v2  ;;  %v5497_v2 = vld [vmem:[#allocation21 + $0xe4] sm:$0xf]  ;;  %v5016_v10 = vor.u32 %v5477_v8, %v5013_v9 }
 0x56b   :  { %v5096_v11 = vor.u32 %v5497_v2, %v5093_v3  ;;  %v5011_v2 = vld [vmem:[#allocation21 + $0x40] sm:$0xf]  ;;  %v5478_v3 = vld [vmem:[#allocation21 + $0x44] sm:$0xf0] }
 0x56c   :  { %3237 = vmatpush.bf16.msrb.mxu1 %v4936_v15  ;;  %3223 = vmatpush.bf16.msrb.mxu0 %v4880_v27  ;;  %v5482_v15 = vld [vmem:[#allocation21 + $0x64] sm:$0xf0] }
 0x56d   :  { %v5028_v22 = vor.u32 %v5482_v15, %v5027_v20  ;;  %v5476_v20 = vld [vmem:[#allocation21 + $0x34] sm:$0xf0] }
 0x56e   :  { %3211 = vmatpush.bf16.msra.mxu3 %v4932_v17  ;;  %v5495_v17 = vld [vmem:[#allocation21 + $0xd4] sm:$0xf] }
 0x56f   :  { %v5088_v29 = vor.u32 %v5495_v17, %v5085_v18  ;;  %v5003_v18 = vld [vmem:[#allocation21 + $0x30] sm:$0xf] }
 0x570   :  { %3224 = vmatpush.bf16.msrb.mxu0 %v4872_v37  ;;  %v5004_v15 = vor.u32 %v5476_v20, %v5003_v18 }
 0x572   :  { %3212 = vmatpush.bf16.msra.mxu3 %v4924_v21  ;;  %v5494_v21 = vld [vmem:[#allocation21 + $0xc4] sm:$0xf0] }
 0x5ce   :  { %v2721_v30 = vpop.f32.mrf.mxu1 }
 0x5d4   :  { %v2695_v38 = vpop.f32.mrf.mxu3  ;;  %v2708_v39 = vpop.f32.mrf.mxu0 }
 0x5d5   :  { %v2709_v40 = vadd.f32 %v2708_v39, %v2510_v35  ;;  %v4868_v35 = vor.u32 %v5442_v33, %v4867_v32  ;;  %v5454_v39 = vld [vmem:[#allocation19 + $0x84] sm:$0xf0]  ;;  %v2770_v32 = vperm.slane %v2765_v28, 1 }
 0x5d6   :  { %v2723_v41 = vpop.f32.mrf.mxu1 }
 0x5d7   :  { %v2722_v43 = vadd.f32 %v2721_v30, %v2709_v40  ;;  %v5455_v30 = vld [vmem:[#allocation19 + $0x94] sm:$0xf]  ;;  %v5453_v40 = vld [vmem:[#allocation19 + $0x84] sm:$0xf]  ;;  %3198 = vmatpush.bf16.msra.mxu2 %v4868_v35 }
 0x5d8   :  { %v4928_v31 = vor.u32 %v5455_v30, %v4925_v26  ;;  %v5075_v30 = vld [vmem:[#allocation21 + $0xc0] sm:$0xf]  ;;  %v5493_v26 = vld [vmem:[#allocation21 + $0xc4] sm:$0xf] }
 0x5d9   :  { %v2726_v45 = vadd.f32 %v2722_v43, %v6151_v55  ;;  %v4917_v43 = vld [vmem:[#allocation19 + $0x88] sm:$0xf0]  ;;  %v5076_v33 = vor.u32 %v5494_v21, %v5075_v30  ;;  %v4995_v21 = vld [vmem:[#allocation21 + $0x20] sm:$0xf] }
 0x5da   :  { %v2682_v46 = vpop.f32.mrf.mxu2  ;;  %3238 = vmatpush.bf16.msrb.mxu1 %v4928_v31  ;;  %v5077_v31 = vld [vmem:[#allocation21 + $0xc8] sm:$0xf0] }
 0x5db   :  { %vm2728_vm15 = vcmp.ge.f32.partialorder %v2726_v45, 0.0  ;;  %v2730_v47 = vmul.f32 0.2, %v2726_v45  ;;  %v2683_v42 = vadd.f32 %v2682_v46, %v2509_v44  ;;  %v4920_v44 = vor.u32 %v5453_v40, %v4917_v43  ;;  %v5440_v46 = vld [vmem:[#allocation19 + $0x14] sm:$0xf0] }
 0x5dc   :  { %v2697_v49 = vpop.f32.mrf.mxu3  ;;  %v2710_v7 = vpop.f32.mrf.mxu0  ;;  %v5080_v34 = vor.u32 %v5493_v26, %v5077_v31  ;;  %v2769_v40 = vperm.slane %v2765_v28, 0  ;;  %v5474_v26 = vld [vmem:[#allocation21 + $0x24] sm:$0xf0]  ;;  %v5473_v31 = vld [vmem:[#allocation21 + $0x24] sm:$0xf] }
 0x5dd   :  { %v2696_v50 = vadd.f32 %v2695_v38, %v2683_v42  ;;  %v6163_v51 = vsel %vm2728_vm15, %v2726_v45, %v2730_v47  ;;  %v4915_v38 = vld [vmem:[#allocation19 + $0x80] sm:$0xf]  ;;  %v4859_v45 = vld [vmem:[#allocation19 + $0x10] sm:$0xf]  ;;  %v5439_v47 = vld [vmem:[#allocation19 + $0x14] sm:$0xf] }
 0x5de   :  { %v2767_v52 = vpack.c.bf16 %v6163_v51, %v6163_v51  ;;  %v4916_v41 = vor.u32 %v5454_v39, %v4915_v38  ;;  %v4860_v42 = vor.u32 %v5440_v46, %v4859_v45  ;;  %v4861_v49 = vld [vmem:[#allocation19 + $0x18] sm:$0xf0]  ;;  %3239 = vmatpush.bf16.msrb.mxu1 %v4920_v44 }
 0x5df   :  { %v2725_v53 = vadd.f32 %v2696_v50, %v6155_v60  ;;  %v4864_v7 = vor.u32 %v5439_v47, %v4861_v49  ;;  %v4851_v50 = vld [vmem:[#allocation19] sm:$0xf] }
 0x5e0   :  { %2954 = vmatmul.bf16.vlgmr.msrb.gmra.mxu3 %v2767_v52  ;;  %2980 = vmatmul.bf16.vlgmr.msra.gmra.mxu1 %v2767_v52  ;;  %v5438_v52 = vld [vmem:[#allocation19 + $0x4] sm:$0xf0] }
 0x5e1   :  { %vm2727_vm0 = vcmp.ge.f32.partialorder %v2725_v53, 0.0  ;;  %v2729_v54 = vmul.f32 0.2, %v2725_v53  ;;  %3213 = vmatpush.bf16.msra.mxu3 %v4916_v41  ;;  %3199 = vmatpush.bf16.msra.mxu2 %v4860_v42 }
 0x5e2   :  { %v2684_v56 = vpop.f32.mrf.mxu2  ;;  %3225 = vmatpush.bf16.msrb.mxu0 %v4864_v7  ;;  %3488 = vmatpush.bf16.msra.mxu1 %v5104_v1  ;;  %v5069_v1 = vld [vmem:[#allocation21 + $0xb8] sm:$0xf0] }
 0x5e3   :  { %v6168_v48 = vsel %vm2727_vm0, %v2725_v53, %v2729_v54  ;;  %v5437_v53 = vld [vmem:[#allocation19 + $0x4] sm:$0xf]  ;;  %v4852_v54 = vor.u32 %v5438_v52, %v4851_v50  ;;  %v4853_v56 = vld [vmem:[#allocation19 + $0x8] sm:$0xf0]  ;;  %v5072_v4 = vor.u32 %v5491_v0, %v5069_v1 }
 0x5e4   :  { %v2766_v5 = vpack.c.bf16 %v6168_v48, %v6168_v48 }
 0x5e5   :  { %3200 = vmatpush.bf16.msra.mxu2 %v4852_v54  ;;  %3462 = vmatpush.bf16.msrb.mxu3 %v5100_v61  ;;  %v5024_v61 = vor.u32 %v5479_v57, %v5021_v59 }
 0x5e6   :  { %2941 = vmatmul.bf16.vlgmr.msrb.gmra.mxu2 %v2766_v5  ;;  %2967 = vmatmul.bf16.vlgmr.msra.gmra.mxu0 %v2766_v5  ;;  %v4856_v5 = vor.u32 %v5437_v53, %v4853_v56 }
 0x5e7   :  { %3489 = vmatpush.bf16.msra.mxu1 %v5096_v11  ;;  %v5059_v11 = vld [vmem:[#allocation21 + $0xa0] sm:$0xf] }
 0x5e8   :  { %3226 = vmatpush.bf16.msrb.mxu0 %v4856_v5  ;;  %v5480_v5 = vld [vmem:[#allocation21 + $0x54] sm:$0xf0] }
 0x5e9   :  { %3449 = vmatpush.bf16.msrb.mxu2 %v5036_v12  ;;  %3463 = vmatpush.bf16.msrb.mxu3 %v5092_v6  ;;  %v5012_v6 = vor.u32 %v5478_v3, %v5011_v2  ;;  %v5490_v12 = vld [vmem:[#allocation21 + $0xa4] sm:$0xf0] }
 0x5ea   :  { %v5060_v14 = vor.u32 %v5490_v12, %v5059_v11 }
 0x5eb   :  { %3490 = vmatpush.bf16.msra.mxu1 %v5088_v29  ;;  %v5053_v29 = vld [vmem:[#allocation21 + $0x98] sm:$0xf0] }
 0x5ec   :  { %3475 = vmatpush.bf16.msra.mxu0 %v5040_v13  ;;  %v5489_v13 = vld [vmem:[#allocation21 + $0xa4] sm:$0xf] }
 0x5ed   :  { %3450 = vmatpush.bf16.msrb.mxu2 %v5028_v22  ;;  %3464 = vmatpush.bf16.msrb.mxu3 %v5084_v24  ;;  %v5064_v17 = vor.u32 %v5489_v13, %v5061_v16  ;;  %v5475_v22 = vld [vmem:[#allocation21 + $0x34] sm:$0xf]  ;;  %v5051_v24 = vld [vmem:[#allocation21 + $0x90] sm:$0xf] }
 0x5ee   :  { %v5008_v23 = vor.u32 %v5475_v22, %v5005_v19 }
 0x5ef   :  { %3491 = vmatpush.bf16.msra.mxu1 %v5080_v34 }
 0x5f0   :  { %3476 = vmatpush.bf16.msra.mxu0 %v5032_v25  ;;  %v5488_v25 = vld [vmem:[#allocation21 + $0x94] sm:$0xf0] }
 0x5f1   :  { %3465 = vmatpush.bf16.msrb.mxu3 %v5076_v33  ;;  %v5052_v28 = vor.u32 %v5488_v25, %v5051_v24  ;;  %v4997_v33 = vld [vmem:[#allocation21 + $0x28] sm:$0xf0] }
 0x5f2   :  { %v5000_v34 = vor.u32 %v5473_v31, %v4997_v33 }
 0x5f3   :  { %3492 = vmatpush.bf16.msra.mxu1 %v5072_v4 }
 0x5f4   :  { %3477 = vmatpush.bf16.msra.mxu0 %v5024_v61 }
 0x5f7   :  { %3493 = vmatpush.bf16.msra.mxu1 %v5064_v17 }
 0x5f8   :  { %3478 = vmatpush.bf16.msra.mxu0 %v5016_v10 }
 0x5fc   :  { %3479 = vmatpush.bf16.msra.mxu0 %v5008_v23 }
 0x600   :  { %3480 = vmatpush.bf16.msra.mxu0 %v5000_v34 }
 0x65d   :  { %v2981_v27 = vpop.f32.mrf.mxu1 }
 0x663   :  { %v2955_v35 = vpop.f32.mrf.mxu3  ;;  %v2968_v36 = vpop.f32.mrf.mxu0 }
 0x664   :  { %v2969_v37 = vadd.f32 %v2968_v36, %v2770_v32  ;;  %v4996_v32 = vor.u32 %v5474_v26, %v4995_v21  ;;  %v5486_v36 = vld [vmem:[#allocation21 + $0x84] sm:$0xf0] }
 0x665   :  { %v2983_v38 = vpop.f32.mrf.mxu1 }
 0x666   :  { %v2982_v39 = vadd.f32 %v2981_v27, %v2969_v37  ;;  %v5487_v27 = vld [vmem:[#allocation21 + $0x94] sm:$0xf]  ;;  %v5485_v38 = vld [vmem:[#allocation21 + $0x84] sm:$0xf] }
 0x667   :  { %v5056_v30 = vor.u32 %v5487_v27, %v5053_v29 }
 0x668   :  { %v2986_v41 = vadd.f32 %v2982_v39, %v6163_v51  ;;  %v5019_v51 = vld [vmem:[#allocation21 + $0x50] sm:$0xf]  ;;  %v5045_v39 = vld [vmem:[#allocation21 + $0x88] sm:$0xf0] }
 0x669   :  { %v2942_v43 = vpop.f32.mrf.mxu2  ;;  %v5020_v58 = vor.u32 %v5480_v5, %v5019_v51  ;;  %3494 = vmatpush.bf16.msra.mxu1 %v5056_v30 }
 0x66a   :  { %vm2988_vm1 = vcmp.ge.f32.partialorder %v2986_v41, 0.0  ;;  %v2990_v44 = vmul.f32 0.2, %v2986_v41  ;;  %v2943_v45 = vadd.f32 %v2942_v43, %v2769_v40  ;;  %v5048_v40 = vor.u32 %v5485_v38, %v5045_v39  ;;  %v5472_v43 = vld [vmem:[#allocation21 + $0x14] sm:$0xf0] }
 0x66b   :  { %v2957_v46 = vpop.f32.mrf.mxu3  ;;  %v2970_v47 = vpop.f32.mrf.mxu0  ;;  %3451 = vmatpush.bf16.msrb.mxu2 %v5020_v58 }
 0x66c   :  { %v2956_v42 = vadd.f32 %v2955_v35, %v2943_v45  ;;  %v2992_v49 = vsel %vm2988_vm1, %v2986_v41, %v2990_v44  ;;  %v5043_v35 = vld [vmem:[#allocation21 + $0x80] sm:$0xf]  ;;  %v4987_v41 = vld [vmem:[#allocation21 + $0x10] sm:$0xf]  ;;  %v5471_v44 = vld [vmem:[#allocation21 + $0x14] sm:$0xf] }
 0x66d   :  { %v3027_v7 = vpack.c.bf16 %v2992_v49, %v2992_v49  ;;  %v5044_v37 = vor.u32 %v5486_v36, %v5043_v35  ;;  %v4988_v45 = vor.u32 %v5472_v43, %v4987_v41  ;;  %v4989_v46 = vld [vmem:[#allocation21 + $0x18] sm:$0xf0]  ;;  %3495 = vmatpush.bf16.msra.mxu1 %v5048_v40  ;;  %v5470_v49 = vld [vmem:[#allocation21 + $0x4] sm:$0xf0] }
 0x66e   :  { %v2985_v50 = vadd.f32 %v2956_v42, %v6168_v48  ;;  %v5068_v48 = vor.u32 %v5492_v63, %v5067_v62  ;;  %v4992_v47 = vor.u32 %v5471_v44, %v4989_v46  ;;  %v4979_v42 = vld [vmem:[#allocation21] sm:$0xf] }
 0x66f   :  { %3214 = vmatmul.bf16.vlgmr.msra.gmra.mxu3 %v3027_v7  ;;  %3240 = vmatmul.bf16.vlgmr.msrb.gmra.mxu1 %v3027_v7  ;;  %v5469_v7 = vld [vmem:[#allocation21 + $0x4] sm:$0xf] }
 0x670   :  { %vm2987_vm2 = vcmp.ge.f32.partialorder %v2985_v50, 0.0  ;;  %v2989_v52 = vmul.f32 0.2, %v2985_v50  ;;  %3466 = vmatpush.bf16.msrb.mxu3 %v5068_v48  ;;  %3452 = vmatpush.bf16.msrb.mxu2 %v5012_v6 }
 0x671   :  { %v2944_v53 = vpop.f32.mrf.mxu2  ;;  %3481 = vmatpush.bf16.msra.mxu0 %v4992_v47 }
 0x672   :  { %v2991_v54 = vsel %vm2987_vm2, %v2985_v50, %v2989_v52  ;;  %v4980_v50 = vor.u32 %v5470_v49, %v4979_v42  ;;  %v4981_v52 = vld [vmem:[#allocation21 + $0x8] sm:$0xf0] }
 0x673   :  { %v3026_v56 = vpack.c.bf16 %v2991_v54, %v2991_v54  ;;  %v4984_v53 = vor.u32 %v5469_v7, %v4981_v52 }
 0x674   :  { %3467 = vmatpush.bf16.msrb.mxu3 %v5060_v14  ;;  %3453 = vmatpush.bf16.msrb.mxu2 %v5004_v15 }
 0x675   :  { %3201 = vmatmul.bf16.vlgmr.msra.gmra.mxu2 %v3026_v56  ;;  %3227 = vmatmul.bf16.vlgmr.msrb.gmra.mxu0 %v3026_v56  ;;  %v3025_v56 = vld [vmem:[%s6212_s24] sm:$0x3] }
 0x676   :  { %3482 = vmatpush.bf16.msra.mxu0 %v4984_v53  ;;  %v3030_v51 = vperm.slane %v3025_v56, 1  ;;  %v3029_v62 = vperm.slane %v3025_v56, 0 }
 0x678   :  { %3468 = vmatpush.bf16.msrb.mxu3 %v5052_v28  ;;  %3454 = vmatpush.bf16.msrb.mxu2 %v4996_v32 }
 0x67c   :  { %3469 = vmatpush.bf16.msrb.mxu3 %v5044_v37  ;;  %3455 = vmatpush.bf16.msrb.mxu2 %v4988_v45 }
 0x680   :  { %3456 = vmatpush.bf16.msrb.mxu2 %v4980_v50 }
 0x6ec   :  { %v3241_v54 = vpop.f32.mrf.mxu1 }
 0x6f2   :  { %v3215_v5 = vpop.f32.mrf.mxu3  ;;  %v3228_v57 = vpop.f32.mrf.mxu0 }
 0x6f3   :  { %v3229_v58 = vadd.f32 %v3228_v57, %v3030_v51 }
 0x6f4   :  { %v3243_v59 = vpop.f32.mrf.mxu1 }
 0x6f5   :  { %v3242_v61 = vadd.f32 %v3241_v54, %v3229_v58 }
 0x6f7   :  { %v3246_v63 = vadd.f32 %v3242_v61, %v6151_v55  ;;  %v3281_v55 = vld [vmem:[%s6214_s26] sm:$0x3] }
 0x6f8   :  { %v3202_v0 = vpop.f32.mrf.mxu2  ;;  %v3286_v13 = vperm.slane %v3281_v55, 1  ;;  %v3285_v20 = vperm.slane %v3281_v55, 0 }
 0x6f9   :  { %v3248_v48 = vmax.f32 %v3246_v63, 0.0  ;;  %v3203_v1 = vadd.f32 %v3202_v0, %v3029_v62 }
 0x6fa   :  { %v3217_v2 = vpop.f32.mrf.mxu3  ;;  %v3230_v3 = vpop.f32.mrf.mxu0 }
 0x6fb   :  { %v3283_v4 = vpack.c.bf16 %v3248_v48, %v3248_v48  ;;  %v3216_v6 = vadd.f32 %v3215_v5, %v3203_v1 }
 0x6fd   :  { %v3245_v8 = vadd.f32 %v3216_v6, %v6155_v60  ;;  %3470 = vmatmul.bf16.vlgmr.msrb.gmra.mxu3 %v3283_v4  ;;  %3496 = vmatmul.bf16.vlgmr.msra.gmra.mxu1 %v3283_v4 }
 0x6ff   :  { %v3247_v9 = vmax.f32 %v3245_v8, 0.0 }
 0x700   :  { %v3204_v10 = vpop.f32.mrf.mxu2 }
 0x701   :  { %v3282_v11 = vpack.c.bf16 %v3247_v9, %v3247_v9 }
 0x703   :  { %3457 = vmatmul.bf16.vlgmr.msrb.gmra.mxu2 %v3282_v11  ;;  %3483 = vmatmul.bf16.vlgmr.msra.gmra.mxu0 %v3282_v11 }
 0x77a   :  { %v3497_v12 = vpop.f32.mrf.mxu1 }
 0x780   :  { %v3471_v14 = vpop.f32.mrf.mxu3  ;;  %v3484_v16 = vpop.f32.mrf.mxu0 }
 0x781   :  { %v3485_v17 = vadd.f32 %v3484_v16, %v3286_v13 }
 0x782   :  { %v3499_v18 = vpop.f32.mrf.mxu1 }
 0x783   :  { %v3498_v15 = vadd.f32 %v3497_v12, %v3485_v17 }
 0x785   :  { %v3503_v24 = vrot.slane %v3498_v15, 6 }
 0x786   :  { %v3458_v60 = vpop.f32.mrf.mxu2 }
 0x787   :  { %v3459_v22 = vadd.f32 %v3458_v60, %v3285_v20 }
 0x788   :  { %v3473_v19 = vpop.f32.mrf.mxu3  ;;  %v3486_v23 = vpop.f32.mrf.mxu0 }
 0x789   :  { %v3472_v25 = vadd.f32 %v3471_v14, %v3459_v22 }
 0x78b   :  { %v3505_v27 = vsel %vm3504_vm3, %v3472_v25, %v3503_v24 }
 0x78c   :  { %3507 = vst [vmem:[%s6241_s30] sm:$0xf] %v3505_v27 }
 0x78e   :  { %v3460_v28 = vpop.f32.mrf.mxu2 }
 0x78f   :  { %3512 = vsyncpa [#allocation3], 1 }
 0x790   :  { %3513 = vsyncpa [#allocation5], 1 }
 0x791   :  { %3514 = vsyncpa [#allocation8], 1 }
 0x792   :  { %3515 = vsyncpa [#allocation11], 1 }
 0x793   :  { %3516 = vsyncpa [#allocation14], 1 }
 0x794   :  { %3517 = vsyncpa [#allocation17], 1 }
 0x795   :  { %3518 = vsyncpa [#allocation20], 1 }

</bundles_post_ra>
